<compile_context>
chip_gen: v6e
topology: v6e:2x2x1
jax: 0.10.0
libtpu: 0.0.40
codegen_flags: <defaults>
</compile_context>

<pallas_src>
import functools
import math

import jax
import jax.numpy as jnp
from jax.experimental import pallas as pl
from jax.experimental.pallas import tpu as pltpu


# ----------------------------------------------------------------------------
# Fused kernel: one encoder layer per grid step, activations resident in VMEM.
# ----------------------------------------------------------------------------
def encoder_stack_kernel(
    x_ref,                                   # (TB, S, H)  input (read at layer 0)
    wqkv_ref, bqkv_ref,                      # (H, 3*nh*d) bf16 / (1, 3*nh*d) f32
    wo_ref, bo_ref,                          # (nh*d, H) bf16   / (1, H) f32
    g1_ref, be1_ref,                         # LayerNorm 1 affine, (1, H) f32
    w1_ref, b1_ref, w2_ref, b2_ref,          # (H,FF) bf16,(1,FF),(FF,H) bf16,(1,H)
    g2_ref, be2_ref,                         # LayerNorm 2 affine, (1, H) f32
    o_ref,                                   # (TB, S, H)  output (written at last layer)
    act_ref,                                 # VMEM scratch (TB*S, H) f32 residual stream
    *, num_heads: int, kqv_dim: int, eps: float = 1e-5,
):
    layer = pl.program_id(1)
    nh, d = num_heads, kqv_dim
    M, H = act_ref.shape
    TB, S, _ = x_ref.shape
    bf16, f32 = jnp.bfloat16, jnp.float32

    # Load this batch tile's activations into the resident f32 slab once.
    @pl.when(layer == 0)
    def _():
        act_ref[...] = x_ref[...].reshape(M, H).astype(f32)

    x = act_ref[...]                          # (M, H) f32 residual stream
    xb = x.astype(bf16)

    # ---- fused QKV projection: single lane-dense GEMM, N = 3*nh*d -----------
    qkv = jnp.dot(xb, wqkv_ref[...], preferred_element_type=f32) + bqkv_ref[...]
    # column layout: [q_h0 .. q_h{nh-1} | k_h0 .. | v_h0 ..], each block d wide.

    scale = 1.0 / math.sqrt(d)
    ctx_heads = []
    for h in range(nh):
        qh = (qkv[:, h * d:(h + 1) * d] * scale).reshape(TB, S, d)
        kh = qkv[:, (nh + h) * d:(nh + h + 1) * d].reshape(TB, S, d)
        vh = qkv[:, (2 * nh + h) * d:(2 * nh + h + 1) * d].reshape(TB, S, d)

        # TODO(synk): src_mask would be applied to s here.
        s = jnp.einsum('bqd,bkd->bqk', qh.astype(bf16), kh.astype(bf16),
                       preferred_element_type=f32)                 # (TB, S, S)
        s = s - jnp.max(s, axis=-1, keepdims=True)
        p = jnp.exp(s)
        p = p * (1.0 / jnp.sum(p, axis=-1, keepdims=True))          # exact f32 normalize
        ch = jnp.einsum('bqk,bkd->bqd', p.astype(bf16), vh.astype(bf16),
                        preferred_element_type=f32)                 # (TB, S, d)
        ctx_heads.append(ch.reshape(M, d))

    # ---- output projection: head sum folded into the K = nh*d contraction ---
    ctx = jnp.concatenate(ctx_heads, axis=-1)                       # (M, nh*d)
    attn = jnp.dot(ctx.astype(bf16), wo_ref[...],
                   preferred_element_type=f32) + bo_ref[...]        # (M, H)

    # ---- Add & Norm (1)  (single-pass mean / E[x^2]) -------------------------
    y = x + attn
    mu1 = jnp.mean(y, axis=-1, keepdims=True)
    ex1 = jnp.mean(y * y, axis=-1, keepdims=True)
    y = (y - mu1) * jax.lax.rsqrt(ex1 - mu1 * mu1 + eps) * g1_ref[...] + be1_ref[...]

    # ---- feed forward --------------------------------------------------------
    h1 = jnp.dot(y.astype(bf16), w1_ref[...], preferred_element_type=f32) + b1_ref[...]
    h1 = jnp.maximum(h1, 0.0)
    h2 = jnp.dot(h1.astype(bf16), w2_ref[...], preferred_element_type=f32) + b2_ref[...]

    # ---- Add & Norm (2) ------------------------------------------------------
    z = y + h2
    mu2 = jnp.mean(z, axis=-1, keepdims=True)
    ex2 = jnp.mean(z * z, axis=-1, keepdims=True)
    z = (z - mu2) * jax.lax.rsqrt(ex2 - mu2 * mu2 + eps) * g2_ref[...] + be2_ref[...]

    act_ref[...] = z                          # stays resident for the next layer

    @pl.when(layer == pl.num_programs(1) - 1)
    def _():
        o_ref[...] = z.reshape(TB, S, H).astype(o_ref.dtype)   # lane-dense store, once


# ----------------------------------------------------------------------------
# Wrapper: single pallas_call over grid (batch_tiles, layer).
# ----------------------------------------------------------------------------
def _weight_spec(per_layer_shape):
    # Stacked parameter (L, *per_layer_shape): pick layer l, full extent otherwise.
    n = len(per_layer_shape)
    return pl.BlockSpec(
        (None,) + tuple(per_layer_shape),
        lambda b, l, _n=n: (l,) + (0,) * _n,
    )


def _pick_batch_tile(B, S):
    # Fill the MXU M dimension: largest divisor of B with TB*S <= 512 rows.
    best = 1
    for tb in range(1, B + 1):
        if B % tb == 0 and tb * S <= 512:
            best = tb
    return best


def _vmem_cap_bytes():
    # ~80% of physical VMEM: ~51 MiB on v7x (64 MiB/TC), ~102 MiB on v5e/v6e (128 MiB).
    try:
        phys = int(pltpu.get_tpu_info().vmem_capacity_bytes)
    except Exception:  # conservative fallback works on every generation
        phys = 64 * 1024 * 1024
    return int(phys * 0.8)


def _vmem_limit_bytes(TB, S, H, FF, nh, d):
    bf2, f4 = 2, 4
    M = TB * S
    # Streamed per-layer blocks (the pipeline double-buffers each of them).
    w_bytes = (H * 3 * nh * d + nh * d * H + H * FF + FF * H) * bf2
    b_bytes = (3 * nh * d + FF + 6 * H) * f4
    io_bytes = 2 * TB * S * H * f4                      # x block + out block
    streamed = 2 * (w_bytes + b_bytes + io_bytes)       # 2 buffers each
    resident = M * H * f4                               # residual-stream scratch
    # f32 working set: qkv, per-head scores, ctx, attn/y/h2/z, h1.
    work = (M * 3 * nh * d + 3 * TB * S * S + M * nh * d + 4 * M * H + M * FF) * f4
    need = streamed + resident + work
    return int(min(_vmem_cap_bytes(), max(2 * need, 32 * 1024 * 1024)))


def encoder_stack_forward(x, stacked_params, *, num_heads, kqv_dim, eps=1e-5,
                          batch_tile=None):
    B, S, H = x.shape
    L = stacked_params[0].shape[0]
    FF = stacked_params[6].shape[-1]          # w1: (L, H, FF)
    nh, d = num_heads, kqv_dim

    TB = batch_tile or _pick_batch_tile(B, S)
    assert B % TB == 0, (B, TB)

    in_specs = [pl.BlockSpec((TB, S, H), lambda b, l: (b, 0, 0))]
    in_specs += [_weight_spec(p.shape[1:]) for p in stacked_params]
    out_spec = pl.BlockSpec((TB, S, H), lambda b, l: (b, 0, 0))   # resident across l

    # Advisory cost estimate so XLA schedules around the long fused call.
    flops_per_tok = 2 * (3 * H * nh * d + 2 * nh * S * d + nh * d * H + 2 * H * FF)
    flops = int(B * S * L * flops_per_tok)
    transcendentals = int(B * L * nh * S * S + 2 * B * L * S)
    w_stream = ((H * 3 * nh * d + nh * d * H + 2 * H * FF) * 2
                + (3 * nh * d + FF + 6 * H) * 4)
    bytes_accessed = int(2 * B * S * H * 4 + (B // TB) * L * w_stream)

    return pl.pallas_call(
        functools.partial(encoder_stack_kernel, num_heads=nh, kqv_dim=d, eps=eps),
        out_shape=jax.ShapeDtypeStruct((B, S, H), x.dtype),
        grid_spec=pltpu.PrefetchScalarGridSpec(
            num_scalar_prefetch=0,
            grid=(B // TB, L),                                     # layer axis innermost
            in_specs=in_specs,
            out_specs=out_spec,
            scratch_shapes=[pltpu.VMEM((TB * S, H), jnp.float32)],  # residual stream
        ),
        compiler_params=pltpu.CompilerParams(
            dimension_semantics=("parallel", "arbitrary"),
            vmem_limit_bytes=_vmem_limit_bytes(TB, S, H, FF, nh, d),
        ),
        cost_estimate=pl.CostEstimate(flops=flops,
                                      transcendentals=transcendentals,
                                      bytes_accessed=bytes_accessed),
    )(x, *stacked_params)


# ----------------------------------------------------------------------------
# Deterministic synthetic parameters (PyTorch nn.Linear-like init).
# Matmul weights stored bf16 in fused layouts; biases / LN affine in f32.
# ----------------------------------------------------------------------------
def make_block_params(key, hidden_dim, kqv_dim, ff_dim, num_heads):
    H, d, nh, FF = hidden_dim, kqv_dim, num_heads, ff_dim
    keys = jax.random.split(key, 8)

    def u(k, shape, fan_in):
        bound = 1.0 / math.sqrt(fan_in)
        return jax.random.uniform(k, shape, jnp.float32, -bound, bound)

    # Fused QKV weight: columns [q heads | k heads | v heads], each head d wide.
    wqkv = u(keys[0], (H, 3 * nh * d), H)
    bqkv = u(keys[1], (1, 3 * nh * d), H)
    wo = u(keys[2], (nh * d, H), nh * d)       # rows head-major
    bo = u(keys[3], (1, H), nh * d)
    g1, be1 = jnp.ones((1, H), jnp.float32), jnp.zeros((1, H), jnp.float32)
    w1, b1 = u(keys[4], (H, FF), H), u(keys[5], (1, FF), H)
    w2, b2 = u(keys[6], (FF, H), FF), u(keys[7], (1, H), FF)
    g2, be2 = jnp.ones((1, H), jnp.float32), jnp.zeros((1, H), jnp.float32)

    bf = jnp.bfloat16
    return (wqkv.astype(bf), bqkv, wo.astype(bf), bo, g1, be1,
            w1.astype(bf), b1, w2.astype(bf), b2, g2, be2)


def make_stacked_params(key, num_layers, hidden_dim, kqv_dim, ff_dim, num_heads):
    keys = jax.random.split(key, num_layers)
    per_layer = [make_block_params(k, hidden_dim, kqv_dim, ff_dim, num_heads)
                 for k in keys]
    return tuple(jnp.stack(ps, axis=0) for ps in zip(*per_layer))


# ----------------------------------------------------------------------------
# Pure-JAX reference (f32 math, same bf16-quantized weights) for validation.
# ----------------------------------------------------------------------------
def _ln(x, g, b, eps):
    mu = jnp.mean(x, axis=-1, keepdims=True)
    var = jnp.mean((x - mu) ** 2, axis=-1, keepdims=True)
    return (x - mu) * jax.lax.rsqrt(var + eps) * g + b


def reference_forward(x, stacked_params, num_heads, kqv_dim, eps=1e-5):
    L = stacked_params[0].shape[0]
    nh, d = num_heads, kqv_dim
    out = x.astype(jnp.float32)
    for l in range(L):
        (wqkv, bqkv, wo, bo, g1, be1, w1, b1, w2, b2, g2, be2) = [
            p[l].astype(jnp.float32) for p in stacked_params]
        B, S, _ = out.shape
        qkv = out @ wqkv + bqkv                                     # (B, S, 3*nh*d)
        q = qkv[..., :nh * d].reshape(B, S, nh, d).transpose(0, 2, 1, 3)
        k = qkv[..., nh * d:2 * nh * d].reshape(B, S, nh, d).transpose(0, 2, 1, 3)
        v = qkv[..., 2 * nh * d:].reshape(B, S, nh, d).transpose(0, 2, 1, 3)
        s = jnp.einsum('bhqd,bhkd->bhqk', q, k) / math.sqrt(d)
        p = jax.nn.softmax(s, axis=-1)
        ctx = jnp.einsum('bhqk,bhkd->bhqd', p, v)                   # (B, nh, S, d)
        ctx = ctx.transpose(0, 2, 1, 3).reshape(B, S, nh * d)
        attn = ctx @ wo + bo
        y = _ln(out + attn, g1, be1, eps)
        ff = jnp.maximum(y @ w1 + b1, 0.0) @ w2 + b2
        out = _ln(y + ff, g2, be2, eps)
    return out


if __name__ == "__main__":
    # Small but lane-dense shapes: H = num_heads * kqv_dim = 128, FF = 256.
    # Batch is tiled into the kernel (TB=8 here) so the MXU M dim is TB*S=128.
    B, S, H = 8, 16, 128
    NUM_HEADS, KQV_DIM, FF_DIM = 4, 32, 256
    NUM_BLOCKS = 2

    root = jax.random.PRNGKey(0)
    kx, kp = jax.random.split(root)
    x = jax.random.normal(kx, (B, S, H), jnp.float32)
    params = make_stacked_params(kp, NUM_BLOCKS, H, KQV_DIM, FF_DIM, NUM_HEADS)

    out = encoder_stack_forward(x, params, num_heads=NUM_HEADS, kqv_dim=KQV_DIM)
    out = jax.block_until_ready(out)
    assert out.shape == (B, S, H), out.shape
    assert bool(jnp.all(jnp.isfinite(out)))

    ref = reference_forward(x, params, NUM_HEADS, KQV_DIM)
    max_err = float(jnp.max(jnp.abs(out - ref)))
    assert max_err < 0.1, f"max abs error vs reference: {max_err}"

    print("KERNEL_OK")
</pallas_src>

<mosaic_0001>
module attributes {stable_mosaic.version = 11 : i64} {
  func.func @encoder_stack_kernel(%arg0: i32, %arg1: i32, %arg2: memref<8x16x128xf32, #tpu.memory_space<vmem>>, %arg3: memref<1x128x384xbf16, #tpu.memory_space<vmem>>, %arg4: memref<1x1x384xf32, #tpu.memory_space<vmem>>, %arg5: memref<1x128x128xbf16, #tpu.memory_space<vmem>>, %arg6: memref<1x1x128xf32, #tpu.memory_space<vmem>>, %arg7: memref<1x1x128xf32, #tpu.memory_space<vmem>>, %arg8: memref<1x1x128xf32, #tpu.memory_space<vmem>>, %arg9: memref<1x128x256xbf16, #tpu.memory_space<vmem>>, %arg10: memref<1x1x256xf32, #tpu.memory_space<vmem>>, %arg11: memref<1x256x128xbf16, #tpu.memory_space<vmem>>, %arg12: memref<1x1x128xf32, #tpu.memory_space<vmem>>, %arg13: memref<1x1x128xf32, #tpu.memory_space<vmem>>, %arg14: memref<1x1x128xf32, #tpu.memory_space<vmem>>, %arg15: memref<8x16x128xf32, #tpu.memory_space<vmem>>, %arg16: memref<128x128xf32, #tpu.memory_space<vmem>>) attributes {dimension_semantics = [#tpu.dimension_semantics<parallel>, #tpu.dimension_semantics<arbitrary>], iteration_bounds = array<i64: 1, 2>, scalar_prefetch = 0 : i64, scratch_operands = 1 : i64, tpu.core_type = #tpu.core_type<tc>, window_params = [{transform_indices = @transform_0, window_bounds = array<i64: 8, 16, 128>}, {transform_indices = @transform_1, window_bounds = array<i64: 1, 128, 384>}, {transform_indices = @transform_2, window_bounds = array<i64: 1, 1, 384>}, {transform_indices = @transform_3, window_bounds = array<i64: 1, 128, 128>}, {transform_indices = @transform_4, window_bounds = array<i64: 1, 1, 128>}, {transform_indices = @transform_5, window_bounds = array<i64: 1, 1, 128>}, {transform_indices = @transform_6, window_bounds = array<i64: 1, 1, 128>}, {transform_indices = @transform_7, window_bounds = array<i64: 1, 128, 256>}, {transform_indices = @transform_8, window_bounds = array<i64: 1, 1, 256>}, {transform_indices = @transform_9, window_bounds = array<i64: 1, 256, 128>}, {transform_indices = @transform_10, window_bounds = array<i64: 1, 1, 128>}, {transform_indices = @transform_11, window_bounds = array<i64: 1, 1, 128>}, {transform_indices = @transform_12, window_bounds = array<i64: 1, 1, 128>}, {transform_indices = @transform_13, window_bounds = array<i64: 8, 16, 128>}]} {
    %c0_i32 = arith.constant 0 : i32
    %0 = arith.cmpi eq, %arg1, %c0_i32 : i32
    %1 = arith.extui %0 : i1 to i32
    %c0_i32_0 = arith.constant 0 : i32
    %2 = arith.cmpi ne, %1, %c0_i32_0 : i32
    scf.if %2 {
      %c0_79 = arith.constant 0 : index
      %c0_80 = arith.constant 0 : index
      %c0_81 = arith.constant 0 : index
      %201 = vector.load %arg2[%c0_79, %c0_80, %c0_81] : memref<8x16x128xf32, #tpu.memory_space<vmem>>, vector<8x16x128xf32>
      %202 = vector.shape_cast %201 : vector<8x16x128xf32> to vector<128x128xf32>
      %c0_82 = arith.constant 0 : index
      %c0_83 = arith.constant 0 : index
      %203 = vector.load %arg16[%c0_82, %c0_83] : memref<128x128xf32, #tpu.memory_space<vmem>>, vector<128x128xf32>
      tpu.vector_store %arg16[%c0_82, %c0_83], %202 {strides = array<i32>} : memref<128x128xf32, #tpu.memory_space<vmem>>, vector<128x128xf32>,
    } else {
    }
    %c0 = arith.constant 0 : index
    %c0_1 = arith.constant 0 : index
    %3 = vector.load %arg16[%c0, %c0_1] : memref<128x128xf32, #tpu.memory_space<vmem>>, vector<128x128xf32>
    %4 = arith.truncf %3 : vector<128x128xf32> to vector<128x128xbf16>
    %c0_2 = arith.constant 0 : index
    %c0_3 = arith.constant 0 : index
    %c0_4 = arith.constant 0 : index
    %5 = vector.load %arg3[%c0_2, %c0_3, %c0_4] : memref<1x128x384xbf16, #tpu.memory_space<vmem>>, vector<1x128x384xbf16>
    %6 = vector.shape_cast %5 : vector<1x128x384xbf16> to vector<128x384xbf16>
    %cst = arith.constant dense<0.000000e+00> : vector<128x384xf32>
    %7 = tpu.matmul %4, %6, %cst {dimension_numbers = #tpu.dot_dimension_numbers<[1], [0], [0], [1], [0, 0, 1, 1], [], []>} : vector<128x128xbf16>, vector<128x384xbf16>, vector<128x384xf32> -> vector<128x384xf32>
    %c0_5 = arith.constant 0 : index
    %c0_6 = arith.constant 0 : index
    %c0_7 = arith.constant 0 : index
    %8 = vector.load %arg4[%c0_5, %c0_6, %c0_7] : memref<1x1x384xf32, #tpu.memory_space<vmem>>, vector<1x1x384xf32>
    %9 = vector.shape_cast %8 : vector<1x1x384xf32> to vector<1x384xf32>
    %10 = vector.broadcast %9 : vector<1x384xf32> to vector<128x384xf32>
    %11 = arith.addf %7, %10 : vector<128x384xf32>
    %12 = vector.extract_strided_slice %11 {offsets = [0, 0], sizes = [128, 32], strides = [1, 1]} : vector<128x384xf32> to vector<128x32xf32>
    %cst_8 = arith.constant 0.176776692 : f32
    %13 = vector.broadcast %cst_8 : f32 to vector<128x32xf32>
    %14 = arith.mulf %12, %13 : vector<128x32xf32>
    %15 = vector.shape_cast %14 : vector<128x32xf32> to vector<8x16x32xf32>
    %16 = vector.extract_strided_slice %11 {offsets = [0, 128], sizes = [128, 32], strides = [1, 1]} : vector<128x384xf32> to vector<128x32xf32>
    %17 = vector.shape_cast %16 : vector<128x32xf32> to vector<8x16x32xf32>
    %18 = vector.extract_strided_slice %11 {offsets = [0, 256], sizes = [128, 32], strides = [1, 1]} : vector<128x384xf32> to vector<128x32xf32>
    %19 = vector.shape_cast %18 : vector<128x32xf32> to vector<8x16x32xf32>
    %20 = arith.truncf %15 : vector<8x16x32xf32> to vector<8x16x32xbf16>
    %21 = arith.truncf %17 : vector<8x16x32xf32> to vector<8x16x32xbf16>
    "tpu.trace_start"() <{level = 10 : i32, message = "bqd,bkd->bqk"}> : () -> ()
    %cst_9 = arith.constant dense<0.000000e+00> : vector<8x16x16xf32>
    %22 = tpu.matmul %20, %21, %cst_9 {dimension_numbers = #tpu.dot_dimension_numbers<[2], [2], [1], [1], [0, 0, 0, 1, 1, 1], [0], [0]>} : vector<8x16x32xbf16>, vector<8x16x32xbf16>, vector<8x16x16xf32> -> vector<8x16x16xf32>
    "tpu.trace_stop"() : () -> ()
    %cst_10 = arith.constant dense<0xFF800000> : vector<8x16xf32>
    %23 = vector.multi_reduction <maximumf>, %22, %cst_10 [2] : vector<8x16x16xf32> to vector<8x16xf32>
    %24 = vector.shape_cast %23 : vector<8x16xf32> to vector<8x16x1xf32>
    %25 = vector.broadcast %24 : vector<8x16x1xf32> to vector<8x16x16xf32>
    %26 = arith.subf %22, %25 : vector<8x16x16xf32>
    %27 = math.exp %26 : vector<8x16x16xf32>
    %cst_11 = arith.constant dense<0.000000e+00> : vector<8x16xf32>
    %28 = vector.multi_reduction <add>, %27, %cst_11 [2] : vector<8x16x16xf32> to vector<8x16xf32>
    %29 = vector.shape_cast %28 : vector<8x16xf32> to vector<8x16x1xf32>
    %cst_12 = arith.constant 1.000000e+00 : f32
    %30 = vector.broadcast %cst_12 : f32 to vector<8x16x1xf32>
    %31 = arith.divf %30, %29 : vector<8x16x1xf32>
    %32 = vector.broadcast %31 : vector<8x16x1xf32> to vector<8x16x16xf32>
    %33 = arith.mulf %27, %32 : vector<8x16x16xf32>
    %34 = arith.truncf %33 : vector<8x16x16xf32> to vector<8x16x16xbf16>
    %35 = arith.truncf %19 : vector<8x16x32xf32> to vector<8x16x32xbf16>
    "tpu.trace_start"() <{level = 10 : i32, message = "bqk,bkd->bqd"}> : () -> ()
    %cst_13 = arith.constant dense<0.000000e+00> : vector<8x16x32xf32>
    %36 = tpu.matmul %34, %35, %cst_13 {dimension_numbers = #tpu.dot_dimension_numbers<[2], [1], [1], [2], [0, 0, 0, 1, 1, 2], [0], [0]>} : vector<8x16x16xbf16>, vector<8x16x32xbf16>, vector<8x16x32xf32> -> vector<8x16x32xf32>
    "tpu.trace_stop"() : () -> ()
    %37 = vector.shape_cast %36 : vector<8x16x32xf32> to vector<128x32xf32>
    %38 = vector.extract_strided_slice %11 {offsets = [0, 32], sizes = [128, 32], strides = [1, 1]} : vector<128x384xf32> to vector<128x32xf32>
    %cst_14 = arith.constant 0.176776692 : f32
    %39 = vector.broadcast %cst_14 : f32 to vector<128x32xf32>
    %40 = arith.mulf %38, %39 : vector<128x32xf32>
    %41 = vector.shape_cast %40 : vector<128x32xf32> to vector<8x16x32xf32>
    %42 = vector.extract_strided_slice %11 {offsets = [0, 160], sizes = [128, 32], strides = [1, 1]} : vector<128x384xf32> to vector<128x32xf32>
    %43 = vector.shape_cast %42 : vector<128x32xf32> to vector<8x16x32xf32>
    %44 = vector.extract_strided_slice %11 {offsets = [0, 288], sizes = [128, 32], strides = [1, 1]} : vector<128x384xf32> to vector<128x32xf32>
    %45 = vector.shape_cast %44 : vector<128x32xf32> to vector<8x16x32xf32>
    %46 = arith.truncf %41 : vector<8x16x32xf32> to vector<8x16x32xbf16>
    %47 = arith.truncf %43 : vector<8x16x32xf32> to vector<8x16x32xbf16>
    "tpu.trace_start"() <{level = 10 : i32, message = "bqd,bkd->bqk"}> : () -> ()
    %cst_15 = arith.constant dense<0.000000e+00> : vector<8x16x16xf32>
    %48 = tpu.matmul %46, %47, %cst_15 {dimension_numbers = #tpu.dot_dimension_numbers<[2], [2], [1], [1], [0, 0, 0, 1, 1, 1], [0], [0]>} : vector<8x16x32xbf16>, vector<8x16x32xbf16>, vector<8x16x16xf32> -> vector<8x16x16xf32>
    "tpu.trace_stop"() : () -> ()
    %cst_16 = arith.constant dense<0xFF800000> : vector<8x16xf32>
    %49 = vector.multi_reduction <maximumf>, %48, %cst_16 [2] : vector<8x16x16xf32> to vector<8x16xf32>
    %50 = vector.shape_cast %49 : vector<8x16xf32> to vector<8x16x1xf32>
    %51 = vector.broadcast %50 : vector<8x16x1xf32> to vector<8x16x16xf32>
    %52 = arith.subf %48, %51 : vector<8x16x16xf32>
    %53 = math.exp %52 : vector<8x16x16xf32>
    %cst_17 = arith.constant dense<0.000000e+00> : vector<8x16xf32>
    %54 = vector.multi_reduction <add>, %53, %cst_17 [2] : vector<8x16x16xf32> to vector<8x16xf32>
    %55 = vector.shape_cast %54 : vector<8x16xf32> to vector<8x16x1xf32>
    %cst_18 = arith.constant 1.000000e+00 : f32
    %56 = vector.broadcast %cst_18 : f32 to vector<8x16x1xf32>
    %57 = arith.divf %56, %55 : vector<8x16x1xf32>
    %58 = vector.broadcast %57 : vector<8x16x1xf32> to vector<8x16x16xf32>
    %59 = arith.mulf %53, %58 : vector<8x16x16xf32>
    %60 = arith.truncf %59 : vector<8x16x16xf32> to vector<8x16x16xbf16>
    %61 = arith.truncf %45 : vector<8x16x32xf32> to vector<8x16x32xbf16>
    "tpu.trace_start"() <{level = 10 : i32, message = "bqk,bkd->bqd"}> : () -> ()
    %cst_19 = arith.constant dense<0.000000e+00> : vector<8x16x32xf32>
    %62 = tpu.matmul %60, %61, %cst_19 {dimension_numbers = #tpu.dot_dimension_numbers<[2], [1], [1], [2], [0, 0, 0, 1, 1, 2], [0], [0]>} : vector<8x16x16xbf16>, vector<8x16x32xbf16>, vector<8x16x32xf32> -> vector<8x16x32xf32>
    "tpu.trace_stop"() : () -> ()
    %63 = vector.shape_cast %62 : vector<8x16x32xf32> to vector<128x32xf32>
    %64 = vector.extract_strided_slice %11 {offsets = [0, 64], sizes = [128, 32], strides = [1, 1]} : vector<128x384xf32> to vector<128x32xf32>
    %cst_20 = arith.constant 0.176776692 : f32
    %65 = vector.broadcast %cst_20 : f32 to vector<128x32xf32>
    %66 = arith.mulf %64, %65 : vector<128x32xf32>
    %67 = vector.shape_cast %66 : vector<128x32xf32> to vector<8x16x32xf32>
    %68 = vector.extract_strided_slice %11 {offsets = [0, 192], sizes = [128, 32], strides = [1, 1]} : vector<128x384xf32> to vector<128x32xf32>
    %69 = vector.shape_cast %68 : vector<128x32xf32> to vector<8x16x32xf32>
    %70 = vector.extract_strided_slice %11 {offsets = [0, 320], sizes = [128, 32], strides = [1, 1]} : vector<128x384xf32> to vector<128x32xf32>
    %71 = vector.shape_cast %70 : vector<128x32xf32> to vector<8x16x32xf32>
    %72 = arith.truncf %67 : vector<8x16x32xf32> to vector<8x16x32xbf16>
    %73 = arith.truncf %69 : vector<8x16x32xf32> to vector<8x16x32xbf16>
    "tpu.trace_start"() <{level = 10 : i32, message = "bqd,bkd->bqk"}> : () -> ()
    %cst_21 = arith.constant dense<0.000000e+00> : vector<8x16x16xf32>
    %74 = tpu.matmul %72, %73, %cst_21 {dimension_numbers = #tpu.dot_dimension_numbers<[2], [2], [1], [1], [0, 0, 0, 1, 1, 1], [0], [0]>} : vector<8x16x32xbf16>, vector<8x16x32xbf16>, vector<8x16x16xf32> -> vector<8x16x16xf32>
    "tpu.trace_stop"() : () -> ()
    %cst_22 = arith.constant dense<0xFF800000> : vector<8x16xf32>
    %75 = vector.multi_reduction <maximumf>, %74, %cst_22 [2] : vector<8x16x16xf32> to vector<8x16xf32>
    %76 = vector.shape_cast %75 : vector<8x16xf32> to vector<8x16x1xf32>
    %77 = vector.broadcast %76 : vector<8x16x1xf32> to vector<8x16x16xf32>
    %78 = arith.subf %74, %77 : vector<8x16x16xf32>
    %79 = math.exp %78 : vector<8x16x16xf32>
    %cst_23 = arith.constant dense<0.000000e+00> : vector<8x16xf32>
    %80 = vector.multi_reduction <add>, %79, %cst_23 [2] : vector<8x16x16xf32> to vector<8x16xf32>
    %81 = vector.shape_cast %80 : vector<8x16xf32> to vector<8x16x1xf32>
    %cst_24 = arith.constant 1.000000e+00 : f32
    %82 = vector.broadcast %cst_24 : f32 to vector<8x16x1xf32>
    %83 = arith.divf %82, %81 : vector<8x16x1xf32>
    %84 = vector.broadcast %83 : vector<8x16x1xf32> to vector<8x16x16xf32>
    %85 = arith.mulf %79, %84 : vector<8x16x16xf32>
    %86 = arith.truncf %85 : vector<8x16x16xf32> to vector<8x16x16xbf16>
    %87 = arith.truncf %71 : vector<8x16x32xf32> to vector<8x16x32xbf16>
    "tpu.trace_start"() <{level = 10 : i32, message = "bqk,bkd->bqd"}> : () -> ()
    %cst_25 = arith.constant dense<0.000000e+00> : vector<8x16x32xf32>
    %88 = tpu.matmul %86, %87, %cst_25 {dimension_numbers = #tpu.dot_dimension_numbers<[2], [1], [1], [2], [0, 0, 0, 1, 1, 2], [0], [0]>} : vector<8x16x16xbf16>, vector<8x16x32xbf16>, vector<8x16x32xf32> -> vector<8x16x32xf32>
    "tpu.trace_stop"() : () -> ()
    %89 = vector.shape_cast %88 : vector<8x16x32xf32> to vector<128x32xf32>
    %90 = vector.extract_strided_slice %11 {offsets = [0, 96], sizes = [128, 32], strides = [1, 1]} : vector<128x384xf32> to vector<128x32xf32>
    %cst_26 = arith.constant 0.176776692 : f32
    %91 = vector.broadcast %cst_26 : f32 to vector<128x32xf32>
    %92 = arith.mulf %90, %91 : vector<128x32xf32>
    %93 = vector.shape_cast %92 : vector<128x32xf32> to vector<8x16x32xf32>
    %94 = vector.extract_strided_slice %11 {offsets = [0, 224], sizes = [128, 32], strides = [1, 1]} : vector<128x384xf32> to vector<128x32xf32>
    %95 = vector.shape_cast %94 : vector<128x32xf32> to vector<8x16x32xf32>
    %96 = vector.extract_strided_slice %11 {offsets = [0, 352], sizes = [128, 32], strides = [1, 1]} : vector<128x384xf32> to vector<128x32xf32>
    %97 = vector.shape_cast %96 : vector<128x32xf32> to vector<8x16x32xf32>
    %98 = arith.truncf %93 : vector<8x16x32xf32> to vector<8x16x32xbf16>
    %99 = arith.truncf %95 : vector<8x16x32xf32> to vector<8x16x32xbf16>
    "tpu.trace_start"() <{level = 10 : i32, message = "bqd,bkd->bqk"}> : () -> ()
    %cst_27 = arith.constant dense<0.000000e+00> : vector<8x16x16xf32>
    %100 = tpu.matmul %98, %99, %cst_27 {dimension_numbers = #tpu.dot_dimension_numbers<[2], [2], [1], [1], [0, 0, 0, 1, 1, 1], [0], [0]>} : vector<8x16x32xbf16>, vector<8x16x32xbf16>, vector<8x16x16xf32> -> vector<8x16x16xf32>
    "tpu.trace_stop"() : () -> ()
    %cst_28 = arith.constant dense<0xFF800000> : vector<8x16xf32>
    %101 = vector.multi_reduction <maximumf>, %100, %cst_28 [2] : vector<8x16x16xf32> to vector<8x16xf32>
    %102 = vector.shape_cast %101 : vector<8x16xf32> to vector<8x16x1xf32>
    %103 = vector.broadcast %102 : vector<8x16x1xf32> to vector<8x16x16xf32>
    %104 = arith.subf %100, %103 : vector<8x16x16xf32>
    %105 = math.exp %104 : vector<8x16x16xf32>
    %cst_29 = arith.constant dense<0.000000e+00> : vector<8x16xf32>
    %106 = vector.multi_reduction <add>, %105, %cst_29 [2] : vector<8x16x16xf32> to vector<8x16xf32>
    %107 = vector.shape_cast %106 : vector<8x16xf32> to vector<8x16x1xf32>
    %cst_30 = arith.constant 1.000000e+00 : f32
    %108 = vector.broadcast %cst_30 : f32 to vector<8x16x1xf32>
    %109 = arith.divf %108, %107 : vector<8x16x1xf32>
    %110 = vector.broadcast %109 : vector<8x16x1xf32> to vector<8x16x16xf32>
    %111 = arith.mulf %105, %110 : vector<8x16x16xf32>
    %112 = arith.truncf %111 : vector<8x16x16xf32> to vector<8x16x16xbf16>
    %113 = arith.truncf %97 : vector<8x16x32xf32> to vector<8x16x32xbf16>
    "tpu.trace_start"() <{level = 10 : i32, message = "bqk,bkd->bqd"}> : () -> ()
    %cst_31 = arith.constant dense<0.000000e+00> : vector<8x16x32xf32>
    %114 = tpu.matmul %112, %113, %cst_31 {dimension_numbers = #tpu.dot_dimension_numbers<[2], [1], [1], [2], [0, 0, 0, 1, 1, 2], [0], [0]>} : vector<8x16x16xbf16>, vector<8x16x32xbf16>, vector<8x16x32xf32> -> vector<8x16x32xf32>
    "tpu.trace_stop"() : () -> ()
    %115 = vector.shape_cast %114 : vector<8x16x32xf32> to vector<128x32xf32>
    %116 = tpu.concatenate %37, %63, %89, %115 in 1 : vector<128x32xf32>, vector<128x32xf32>, vector<128x32xf32>, vector<128x32xf32> -> vector<128x128xf32>
    %117 = arith.truncf %116 : vector<128x128xf32> to vector<128x128xbf16>
    %c0_32 = arith.constant 0 : index
    %c0_33 = arith.constant 0 : index
    %c0_34 = arith.constant 0 : index
    %118 = vector.load %arg5[%c0_32, %c0_33, %c0_34] : memref<1x128x128xbf16, #tpu.memory_space<vmem>>, vector<1x128x128xbf16>
    %119 = vector.shape_cast %118 : vector<1x128x128xbf16> to vector<128x128xbf16>
    %cst_35 = arith.constant dense<0.000000e+00> : vector<128x128xf32>
    %120 = tpu.matmul %117, %119, %cst_35 {dimension_numbers = #tpu.dot_dimension_numbers<[1], [0], [0], [1], [0, 0, 1, 1], [], []>} : vector<128x128xbf16>, vector<128x128xbf16>, vector<128x128xf32> -> vector<128x128xf32>
    %c0_36 = arith.constant 0 : index
    %c0_37 = arith.constant 0 : index
    %c0_38 = arith.constant 0 : index
    %121 = vector.load %arg6[%c0_36, %c0_37, %c0_38] : memref<1x1x128xf32, #tpu.memory_space<vmem>>, vector<1x1x128xf32>
    %122 = vector.shape_cast %121 : vector<1x1x128xf32> to vector<1x128xf32>
    %123 = vector.broadcast %122 : vector<1x128xf32> to vector<128x128xf32>
    %124 = arith.addf %120, %123 : vector<128x128xf32>
    %125 = arith.addf %3, %124 : vector<128x128xf32>
    %cst_39 = arith.constant dense<0.000000e+00> : vector<128xf32>
    %126 = vector.multi_reduction <add>, %125, %cst_39 [1] : vector<128x128xf32> to vector<128xf32>
    %127 = vector.shape_cast %126 : vector<128xf32> to vector<128x1xf32>
    %cst_40 = arith.constant 1.280000e+02 : f32
    %128 = vector.broadcast %cst_40 : f32 to vector<128x1xf32>
    %129 = arith.divf %127, %128 : vector<128x1xf32>
    %130 = arith.mulf %125, %125 : vector<128x128xf32>
    %cst_41 = arith.constant dense<0.000000e+00> : vector<128xf32>
    %131 = vector.multi_reduction <add>, %130, %cst_41 [1] : vector<128x128xf32> to vector<128xf32>
    %132 = vector.shape_cast %131 : vector<128xf32> to vector<128x1xf32>
    %cst_42 = arith.constant 1.280000e+02 : f32
    %133 = vector.broadcast %cst_42 : f32 to vector<128x1xf32>
    %134 = arith.divf %132, %133 : vector<128x1xf32>
    %135 = vector.broadcast %129 : vector<128x1xf32> to vector<128x128xf32>
    %136 = arith.subf %125, %135 : vector<128x128xf32>
    %137 = arith.mulf %129, %129 : vector<128x1xf32>
    %138 = arith.subf %134, %137 : vector<128x1xf32>
    %cst_43 = arith.constant 9.99999974E-6 : f32
    %139 = vector.broadcast %cst_43 : f32 to vector<128x1xf32>
    %140 = arith.addf %138, %139 : vector<128x1xf32>
    %141 = math.rsqrt %140 : vector<128x1xf32>
    %142 = vector.broadcast %141 : vector<128x1xf32> to vector<128x128xf32>
    %143 = arith.mulf %136, %142 : vector<128x128xf32>
    %c0_44 = arith.constant 0 : index
    %c0_45 = arith.constant 0 : index
    %c0_46 = arith.constant 0 : index
    %144 = vector.load %arg7[%c0_44, %c0_45, %c0_46] : memref<1x1x128xf32, #tpu.memory_space<vmem>>, vector<1x1x128xf32>
    %145 = vector.shape_cast %144 : vector<1x1x128xf32> to vector<1x128xf32>
    %146 = vector.broadcast %145 : vector<1x128xf32> to vector<128x128xf32>
    %147 = arith.mulf %143, %146 : vector<128x128xf32>
    %c0_47 = arith.constant 0 : index
    %c0_48 = arith.constant 0 : index
    %c0_49 = arith.constant 0 : index
    %148 = vector.load %arg8[%c0_47, %c0_48, %c0_49] : memref<1x1x128xf32, #tpu.memory_space<vmem>>, vector<1x1x128xf32>
    %149 = vector.shape_cast %148 : vector<1x1x128xf32> to vector<1x128xf32>
    %150 = vector.broadcast %149 : vector<1x128xf32> to vector<128x128xf32>
    %151 = arith.addf %147, %150 : vector<128x128xf32>
    %152 = arith.truncf %151 : vector<128x128xf32> to vector<128x128xbf16>
    %c0_50 = arith.constant 0 : index
    %c0_51 = arith.constant 0 : index
    %c0_52 = arith.constant 0 : index
    %153 = vector.load %arg9[%c0_50, %c0_51, %c0_52] : memref<1x128x256xbf16, #tpu.memory_space<vmem>>, vector<1x128x256xbf16>
    %154 = vector.shape_cast %153 : vector<1x128x256xbf16> to vector<128x256xbf16>
    %cst_53 = arith.constant dense<0.000000e+00> : vector<128x256xf32>
    %155 = tpu.matmul %152, %154, %cst_53 {dimension_numbers = #tpu.dot_dimension_numbers<[1], [0], [0], [1], [0, 0, 1, 1], [], []>} : vector<128x128xbf16>, vector<128x256xbf16>, vector<128x256xf32> -> vector<128x256xf32>
    %c0_54 = arith.constant 0 : index
    %c0_55 = arith.constant 0 : index
    %c0_56 = arith.constant 0 : index
    %156 = vector.load %arg10[%c0_54, %c0_55, %c0_56] : memref<1x1x256xf32, #tpu.memory_space<vmem>>, vector<1x1x256xf32>
    %157 = vector.shape_cast %156 : vector<1x1x256xf32> to vector<1x256xf32>
    %158 = vector.broadcast %157 : vector<1x256xf32> to vector<128x256xf32>
    %159 = arith.addf %155, %158 : vector<128x256xf32>
    %cst_57 = arith.constant 0.000000e+00 : f32
    %160 = vector.broadcast %cst_57 : f32 to vector<128x256xf32>
    %161 = arith.maximumf %159, %160 : vector<128x256xf32>
    %162 = arith.truncf %161 : vector<128x256xf32> to vector<128x256xbf16>
    %c0_58 = arith.constant 0 : index
    %c0_59 = arith.constant 0 : index
    %c0_60 = arith.constant 0 : index
    %163 = vector.load %arg11[%c0_58, %c0_59, %c0_60] : memref<1x256x128xbf16, #tpu.memory_space<vmem>>, vector<1x256x128xbf16>
    %164 = vector.shape_cast %163 : vector<1x256x128xbf16> to vector<256x128xbf16>
    %cst_61 = arith.constant dense<0.000000e+00> : vector<128x128xf32>
    %165 = tpu.matmul %162, %164, %cst_61 {dimension_numbers = #tpu.dot_dimension_numbers<[1], [0], [0], [1], [0, 0, 1, 1], [], []>} : vector<128x256xbf16>, vector<256x128xbf16>, vector<128x128xf32> -> vector<128x128xf32>
    %c0_62 = arith.constant 0 : index
    %c0_63 = arith.constant 0 : index
    %c0_64 = arith.constant 0 : index
    %166 = vector.load %arg12[%c0_62, %c0_63, %c0_64] : memref<1x1x128xf32, #tpu.memory_space<vmem>>, vector<1x1x128xf32>
    %167 = vector.shape_cast %166 : vector<1x1x128xf32> to vector<1x128xf32>
    %168 = vector.broadcast %167 : vector<1x128xf32> to vector<128x128xf32>
    %169 = arith.addf %165, %168 : vector<128x128xf32>
    %170 = arith.addf %151, %169 : vector<128x128xf32>
    %cst_65 = arith.constant dense<0.000000e+00> : vector<128xf32>
    %171 = vector.multi_reduction <add>, %170, %cst_65 [1] : vector<128x128xf32> to vector<128xf32>
    %172 = vector.shape_cast %171 : vector<128xf32> to vector<128x1xf32>
    %cst_66 = arith.constant 1.280000e+02 : f32
    %173 = vector.broadcast %cst_66 : f32 to vector<128x1xf32>
    %174 = arith.divf %172, %173 : vector<128x1xf32>
    %175 = arith.mulf %170, %170 : vector<128x128xf32>
    %cst_67 = arith.constant dense<0.000000e+00> : vector<128xf32>
    %176 = vector.multi_reduction <add>, %175, %cst_67 [1] : vector<128x128xf32> to vector<128xf32>
    %177 = vector.shape_cast %176 : vector<128xf32> to vector<128x1xf32>
    %cst_68 = arith.constant 1.280000e+02 : f32
    %178 = vector.broadcast %cst_68 : f32 to vector<128x1xf32>
    %179 = arith.divf %177, %178 : vector<128x1xf32>
    %180 = vector.broadcast %174 : vector<128x1xf32> to vector<128x128xf32>
    %181 = arith.subf %170, %180 : vector<128x128xf32>
    %182 = arith.mulf %174, %174 : vector<128x1xf32>
    %183 = arith.subf %179, %182 : vector<128x1xf32>
    %cst_69 = arith.constant 9.99999974E-6 : f32
    %184 = vector.broadcast %cst_69 : f32 to vector<128x1xf32>
    %185 = arith.addf %183, %184 : vector<128x1xf32>
    %186 = math.rsqrt %185 : vector<128x1xf32>
    %187 = vector.broadcast %186 : vector<128x1xf32> to vector<128x128xf32>
    %188 = arith.mulf %181, %187 : vector<128x128xf32>
    %c0_70 = arith.constant 0 : index
    %c0_71 = arith.constant 0 : index
    %c0_72 = arith.constant 0 : index
    %189 = vector.load %arg13[%c0_70, %c0_71, %c0_72] : memref<1x1x128xf32, #tpu.memory_space<vmem>>, vector<1x1x128xf32>
    %190 = vector.shape_cast %189 : vector<1x1x128xf32> to vector<1x128xf32>
    %191 = vector.broadcast %190 : vector<1x128xf32> to vector<128x128xf32>
    %192 = arith.mulf %188, %191 : vector<128x128xf32>
    %c0_73 = arith.constant 0 : index
    %c0_74 = arith.constant 0 : index
    %c0_75 = arith.constant 0 : index
    %193 = vector.load %arg14[%c0_73, %c0_74, %c0_75] : memref<1x1x128xf32, #tpu.memory_space<vmem>>, vector<1x1x128xf32>
    %194 = vector.shape_cast %193 : vector<1x1x128xf32> to vector<1x128xf32>
    %195 = vector.broadcast %194 : vector<1x128xf32> to vector<128x128xf32>
    %196 = arith.addf %192, %195 : vector<128x128xf32>
    %c0_76 = arith.constant 0 : index
    %c0_77 = arith.constant 0 : index
    %197 = vector.load %arg16[%c0_76, %c0_77] : memref<128x128xf32, #tpu.memory_space<vmem>>, vector<128x128xf32>
    tpu.vector_store %arg16[%c0_76, %c0_77], %196 {strides = array<i32>} : memref<128x128xf32, #tpu.memory_space<vmem>>, vector<128x128xf32>,
    %c1_i32 = arith.constant 1 : i32
    %198 = arith.cmpi eq, %arg1, %c1_i32 : i32
    %199 = arith.extui %198 : i1 to i32
    %c0_i32_78 = arith.constant 0 : i32
    %200 = arith.cmpi ne, %199, %c0_i32_78 : i32
    scf.if %200 {
      %201 = vector.shape_cast %196 : vector<128x128xf32> to vector<8x16x128xf32>
      %c0_79 = arith.constant 0 : index
      %c0_80 = arith.constant 0 : index
      %c0_81 = arith.constant 0 : index
      %202 = vector.load %arg15[%c0_79, %c0_80, %c0_81] : memref<8x16x128xf32, #tpu.memory_space<vmem>>, vector<8x16x128xf32>
      tpu.vector_store %arg15[%c0_79, %c0_80, %c0_81], %201 {strides = array<i32>} : memref<8x16x128xf32, #tpu.memory_space<vmem>>, vector<8x16x128xf32>,
    } else {
    }
    return
  }
  func.func @transform_0(%arg0: i32, %arg1: i32) -> (i32, i32, i32) {
    %c0_i32 = arith.constant 0 : i32
    %c0_i32_0 = arith.constant 0 : i32
    %c0_i32_1 = arith.constant 0 : i32
    return %arg0, %c0_i32, %c0_i32_0 : i32, i32, i32
  }
  func.func @transform_1(%arg0: i32, %arg1: i32) -> (i32, i32, i32) {
    %c0_i32 = arith.constant 0 : i32
    %c0_i32_0 = arith.constant 0 : i32
    %c0_i32_1 = arith.constant 0 : i32
    return %arg1, %c0_i32, %c0_i32_0 : i32, i32, i32
  }
  func.func @transform_2(%arg0: i32, %arg1: i32) -> (i32, i32, i32) {
    %c0_i32 = arith.constant 0 : i32
    %c0_i32_0 = arith.constant 0 : i32
    %c0_i32_1 = arith.constant 0 : i32
    return %arg1, %c0_i32, %c0_i32_0 : i32, i32, i32
  }
  func.func @transform_3(%arg0: i32, %arg1: i32) -> (i32, i32, i32) {
    %c0_i32 = arith.constant 0 : i32
    %c0_i32_0 = arith.constant 0 : i32
    %c0_i32_1 = arith.constant 0 : i32
    return %arg1, %c0_i32, %c0_i32_0 : i32, i32, i32
  }
  func.func @transform_4(%arg0: i32, %arg1: i32) -> (i32, i32, i32) {
    %c0_i32 = arith.constant 0 : i32
    %c0_i32_0 = arith.constant 0 : i32
    %c0_i32_1 = arith.constant 0 : i32
    return %arg1, %c0_i32, %c0_i32_0 : i32, i32, i32
  }
  func.func @transform_5(%arg0: i32, %arg1: i32) -> (i32, i32, i32) {
    %c0_i32 = arith.constant 0 : i32
    %c0_i32_0 = arith.constant 0 : i32
    %c0_i32_1 = arith.constant 0 : i32
    return %arg1, %c0_i32, %c0_i32_0 : i32, i32, i32
  }
  func.func @transform_6(%arg0: i32, %arg1: i32) -> (i32, i32, i32) {
    %c0_i32 = arith.constant 0 : i32
    %c0_i32_0 = arith.constant 0 : i32
    %c0_i32_1 = arith.constant 0 : i32
    return %arg1, %c0_i32, %c0_i32_0 : i32, i32, i32
  }
  func.func @transform_7(%arg0: i32, %arg1: i32) -> (i32, i32, i32) {
    %c0_i32 = arith.constant 0 : i32
    %c0_i32_0 = arith.constant 0 : i32
    %c0_i32_1 = arith.constant 0 : i32
    return %arg1, %c0_i32, %c0_i32_0 : i32, i32, i32
  }
  func.func @transform_8(%arg0: i32, %arg1: i32) -> (i32, i32, i32) {
    %c0_i32 = arith.constant 0 : i32
    %c0_i32_0 = arith.constant 0 : i32
    %c0_i32_1 = arith.constant 0 : i32
    return %arg1, %c0_i32, %c0_i32_0 : i32, i32, i32
  }
  func.func @transform_9(%arg0: i32, %arg1: i32) -> (i32, i32, i32) {
    %c0_i32 = arith.constant 0 : i32
    %c0_i32_0 = arith.constant 0 : i32
    %c0_i32_1 = arith.constant 0 : i32
    return %arg1, %c0_i32, %c0_i32_0 : i32, i32, i32
  }
  func.func @transform_10(%arg0: i32, %arg1: i32) -> (i32, i32, i32) {
    %c0_i32 = arith.constant 0 : i32
    %c0_i32_0 = arith.constant 0 : i32
    %c0_i32_1 = arith.constant 0 : i32
    return %arg1, %c0_i32, %c0_i32_0 : i32, i32, i32
  }
  func.func @transform_11(%arg0: i32, %arg1: i32) -> (i32, i32, i32) {
    %c0_i32 = arith.constant 0 : i32
    %c0_i32_0 = arith.constant 0 : i32
    %c0_i32_1 = arith.constant 0 : i32
    return %arg1, %c0_i32, %c0_i32_0 : i32, i32, i32
  }
  func.func @transform_12(%arg0: i32, %arg1: i32) -> (i32, i32, i32) {
    %c0_i32 = arith.constant 0 : i32
    %c0_i32_0 = arith.constant 0 : i32
    %c0_i32_1 = arith.constant 0 : i32
    return %arg1, %c0_i32, %c0_i32_0 : i32, i32, i32
  }
  func.func @transform_13(%arg0: i32, %arg1: i32) -> (i32, i32, i32) {
    %c0_i32 = arith.constant 0 : i32
    %c0_i32_0 = arith.constant 0 : i32
    %c0_i32_1 = arith.constant 0 : i32
    return %arg0, %c0_i32, %c0_i32_0 : i32, i32, i32
  }
}

</mosaic_0001>

<bundles_post_ra>
// kernel: tpu_custom_call.1
= control target key start
LH: loop header
LB: loop body
LE: loop exit
PB: predicated region body
PF: predicated region fallthrough
CT: control target
= control target key end

     0   :  { %s11094_s0 = inlined_call_operand.hbm [shape: f32[8,16,128], index: 0, kind: input, shape index: {}]   ;;  %s11095_s1 = inlined_call_operand.hbm [shape: bf16[2,128,384], index: 1, kind: input, shape index: {}]   ;;  %s11096_s2 = inlined_call_operand.hbm [shape: f32[2,1,384], index: 2, kind: input, shape index: {}]   ;;  %s11097_s3 = inlined_call_operand.hbm [shape: bf16[2,128,128], index: 3, kind: input, shape index: {}]   ;;  %s11098_s4 = inlined_call_operand.vmem [shape: f32[2,1,128], index: 4, kind: input, shape index: {}]   ;;  %s11099_s5 = inlined_call_operand.vmem [shape: f32[2,1,128], index: 5, kind: input, shape index: {}]   ;;  %s11100_s6 = inlined_call_operand.vmem [shape: f32[2,1,128], index: 6, kind: input, shape index: {}]   ;;  %s11101_s7 = inlined_call_operand.hbm [shape: bf16[2,128,256], index: 7, kind: input, shape index: {}]   ;;  %s11102_s8 = inlined_call_operand.vmem [shape: f32[2,1,256], index: 8, kind: input, shape index: {}]   ;;  %s11103_s9 = inlined_call_operand.hbm [shape: bf16[2,256,128], index: 9, kind: input, shape index: {}]   ;;  %s11104_s10 = inlined_call_operand.vmem [shape: f32[2,1,128], index: 10, kind: input, shape index: {}]   ;;  %s11105_s11 = inlined_call_operand.vmem [shape: f32[2,1,128], index: 11, kind: input, shape index: {}]   ;;  %s11106_s12 = inlined_call_operand.vmem [shape: f32[2,1,128], index: 12, kind: input, shape index: {}]   ;;  %s11107_s13 = inlined_call_operand.hbm [shape: f32[8,16,128], index: 13, kind: output, shape index: {}]  }
   0x1   :  { %11130 = sst [smem:[#allocation49_spill]] %s11094_s0 }
   0x2   :  { %11131 = sst [smem:[#allocation50_spill]] %s11095_s1 }
   0x3   :  { %11132 = sst [smem:[#allocation51_spill]] %s11096_s2 }
   0x4   :  { %11133 = sst [smem:[#allocation52_spill]] %s11097_s3 }
   0x5   :  { %11134 = sst [smem:[#allocation53_spill]] %s11099_s5 }
   0x6   :  { %11135 = sst [smem:[#allocation54_spill]] %s11100_s6 }
   0x7   :  { %11136 = sst [smem:[#allocation55_spill]] %s11101_s7 }
   0x8   :  { %11137 = sst [smem:[#allocation56_spill]] %s11102_s8 }
   0x9   :  { %11138 = sst [smem:[#allocation57_spill]] %s11103_s9 }
   0xa   :  { %11139 = sst [smem:[#allocation58_spill]] %s11104_s10 }
   0xb   :  { %11140 = sst [smem:[#allocation59_spill]] %s11105_s11 }
   0xc   :  { %11141 = sst [smem:[#allocation60_spill]] %s11106_s12 }
   0xd   :  { %11142 = sst [smem:[#allocation61_spill]] %s11107_s13 }
   0xe   :  { %18 = vsyncpa [#allocation4], 0 }
   0xf   :  { %19 = vsyncpa [#allocation7], 0 }
  0x10   :  { %21 = vsyncpa [#allocation7 + $0x1], 0 }
  0x11   :  { %22 = vsyncpa [#allocation10], 0 }
  0x12   :  { %24 = vsyncpa [#allocation10 + $0x1], 0 }
  0x13   :  { %25 = vsyncpa [#allocation13], 0 }
  0x14   :  { %27 = vsyncpa [#allocation13 + $0x1], 0 }
  0x15   :  { %28 = vsyncpa [#allocation5], 0  ;;  %s8731_s25 = smov 0   ;;  %s8733_s26 = smov 0  }
  0x16   :  { %s8735_s27 = smov 0   ;;  %s8737_s28 = smov 0  }
  0x17   :  { %s8739_s29 = smov 0   ;;  %s8741_s30 = smov 0  }
  0x18 LB: > { %11143 = sst [smem:[#allocation20_spill]] %s8626_s27  ;;  %s43_s14 = sadd.s32 1, %s8634_s29  ;;  %s8638_s30 = sphi %s8741_s30, %s34_s30   ;;  %s8634_s29 = sphi %s8739_s29, %s11248_s29   ;;  %s8630_s28 = sphi %s8737_s28, %s11247_s28   ;;  %s8626_s27 = sphi %s8735_s27, %s11246_s27   ;;  %s8622_s26 = sphi %s8733_s26, %s11250_s26   ;;  %s8618_s25 = sphi %s8731_s25, %s11249_s25  }
  0x19   : > { %11144 = sst [smem:[#allocation21_spill]] %s8634_s29  ;;  %s79_s15 = sadd.s32 1, %s8626_s27 }
  0x1a   : > { %11145 = sst [smem:[#allocation22_spill]] %s8638_s30  ;;  %p44_p0 = scmp.ge.s32.totalorder %s43_s14, 2 }
  0x1b   : > { %p86_p1 = scmp.ne.s32.totalorder %s8626_s27, %s8622_s26  ;;  %p87_p2 = scmp.eq.s32.totalorder %s8638_s30, 0 }
  0x1c   : > { %s11252_s14 = smov (%p44_p0, %s43_s14), 0  ;;  %p7778_p4 = scmp.lt.s32.totalorder %s8638_s30, 2 }
  0x1d   : > { %11146 = sst [smem:[#allocation23_spill]] %s11252_s14  ;;  %p88_p3 = por %p87_p2, %p86_p1 }
  0x1e   : > { %s76_s16 = ssub.s32 %s8634_s29, %s11252_s14  ;;  %s11109_s17 = sand.u32 1, %s8638_s30  }
  0x1f   : > { %p77_p5 = scmp.eq.s32.totalorder %s76_s16, 0  ;;  %s8773_s18 = sand.u32 1, %s8626_s27  }
  0x20   : > { %s7734_s19 = smul.u32 3072, %s8634_s29  ;;  %s11148_s1 = sld [smem:[#allocation50_spill]] }
  0x21   : > { %s8777_s20 = scalar_select %p77_p5, %s8626_s27, %s79_s15  }
  0x22   : > { %s7733_s21 = smul.u32 192, %s8773_s18  ;;  %p8783_p6 = pnand %p7778_p4, %p88_p3 }
  0x23   : > { %11147 = sst [smem:[#allocation24_spill]] %s8777_s20  ;;  %s8789_s16 = scalar_lea.sflag [#allocation7], %s11109_s17 }
  0x24   : > { %s449_s12 = scalar_lea.vmem [#allocation6], %s7733_s21  ;;  %p8793_p7 = pneg %p8783_p6 }
  0x25   : > { %s456_s14 = sshll.u32 %s449_s12, 4  ;;  %s457_s14 = int_to_ptr.vmem [resolvable:$true] %s456_s14 }
  0x26   : > { %s455_s24 = scalar_lea.hbm %s11148_s1, %s7734_s19  ;;  %s8395_s20 = scalar_lea.vmem %s457_s14, 3072 }
  0x27   : > { %p8396_p8 = scmp.ne.s32.totalorder %s457_s14, %s8395_s20  ;;  %s8640_s19 = smov [#allocation6]  }
  0x28   : > { %s8400_s22 = sshll.u32 %s8640_s19, 4  ;;  %s8401_s22 = int_to_ptr.vmem [resolvable:$false] %s8400_s22 }
  0x29   : > { %p8398_p9 = pnand %p8396_p8, %p8793_p7  ;;  %s8402_s21 = scalar_lea.vmem %s8401_s22, 6144 }
  0x2a   : > { %p8403_p11 = scmp.lt.s32.totalorder %s457_s14, %s8401_s22  ;;  %p8404_p12 = scmp.lt.s32.totalorder %s8402_s21, %s8395_s20 }
  0x2b   : > { %p8399_p10 = pneg %p8398_p9 }
  0x2c   : > { %p8405_p13 = por %p8404_p12, %p8403_p11 }
  0x2e   : > { %p8406_p0 = pnand %p8405_p13, %p8399_p10 }
  0x30   : > { %8409 = shalt.err (!%p8406_p0)
}
  0x31   : > { %s8641_s12 = smov 192   ;;  %s8642_s23 = smov 12  }
  0x32   : > { %7764 = dma.hbm_to_vmem [thread:$0]  (!%p8783_p6), %s455_s24, 3072, %s457_s14, %s8789_s16, %s8641_s12, %s8641_s12, %s8642_s23  }
  0x33   : > { %s6887_s17 = sshll.u32 %s8773_s18, 6  ;;  %s7042_s1 = sshll.u32 %s8634_s29, 10 }
  0x34   : > { %s11151_s3 = sld [smem:[#allocation52_spill]]  ;;  %s489_s20 = scalar_lea.vmem [#allocation9], %s6887_s17 }
  0x35   : > { %s496_s21 = sshll.u32 %s489_s20, 4  ;;  %s11152_s11 = sand.u32 1, %s8638_s30   ;;  %s497_s21 = int_to_ptr.vmem [resolvable:$true] %s496_s21 }
  0x36   : > { %s8809_s10 = scalar_lea.sflag [#allocation10], %s11152_s11  ;;  %s8423_s8 = scalar_lea.vmem %s497_s21, 1024 }
  0x37   : > { %p8424_p1 = scmp.ne.s32.totalorder %s497_s21, %s8423_s8  ;;  %s8643_s6 = smov [#allocation9]  }
  0x38   : > { %s8428_s5 = sshll.u32 %s8643_s6, 4  ;;  %s8429_s5 = int_to_ptr.vmem [resolvable:$false] %s8428_s5 }
  0x39   : > { %p8426_p2 = pnand %p8424_p1, %p8793_p7  ;;  %s8430_s14 = scalar_lea.vmem %s8429_s5, 2048 }
  0x3a   : > { %s495_s22 = scalar_lea.hbm %s11151_s3, %s7042_s1  ;;  %p8431_p4 = scmp.lt.s32.totalorder %s497_s21, %s8429_s5 }
  0x3b   : > { %p8427_p3 = pneg %p8426_p2  ;;  %p8432_p5 = scmp.lt.s32.totalorder %s8430_s14, %s8423_s8 }
  0x3d   : > { %p8433_p8 = por %p8432_p5, %p8431_p4 }
  0x3f   : > { %p8434_p9 = pnand %p8433_p8, %p8427_p3 }
  0x41   : > { %8437 = shalt.err (!%p8434_p9)
}
  0x42   : > { %s11111_s1 = smov 64   ;;  %s11112_s11 = smov 4  }
  0x43   : > { %7770 = dma.hbm_to_vmem [thread:$0]  (!%p8783_p6), %s495_s22, 1024, %s497_s21, %s8809_s10, %s11111_s1, %s11111_s1, %s11112_s11  }
  0x44   : > { %s8820_s5 = sadd.s32 4294967295, %s8638_s30   ;;  %p92_p10 = scmp.ne.s32.totalorder %s8622_s26, %s8618_s25 }
  0x45   : > { %p93_p11 = scmp.eq.s32.totalorder %s8820_s5, 0  ;;  %p6882_p12 = scmp.ge.s32.totalorder %s8638_s30, 1 }
  0x46   : > { %p415_p13 = scmp.lt.s32.totalorder %s8638_s30, 3  ;;  %s8646_s27 = smov [#allocation3]  }
  0x47   : > { %p8829_p0 = por %p93_p11, %p92_p10  ;;  %s431_s17 = sshll.u32 %s8646_s27, 4  ;;  %s432_s17 = int_to_ptr.vmem [resolvable:$true] %s431_s17 }
  0x48   : > { %p8833_p1 = pnand %p6882_p12, %p415_p13  ;;  %s7735_s24 = smul.u32 3, %s8773_s18 }
  0x49   : > { %s7736_s23 = smul.u32 48, %s8634_s29  ;;  %s11156_s2 = sld [smem:[#allocation51_spill]] }
  0x4a   : > { %p7757_p2 = pneg %p8833_p1  ;;  %s8449_s21 = scalar_lea.vmem %s432_s17, 2048 }
  0x4b   : > { %p8450_p5 = scmp.ne.s32.totalorder %s432_s17, %s8449_s21  ;;  %p8457_p10 = scmp.lt.s32.totalorder %s432_s17, %s432_s17 }
  0x4c   : > { %p8843_p3 = pnand %p7757_p2, %p93_p11  ;;  %p8458_p12 = scmp.lt.s32.totalorder %s8449_s21, %s8449_s21 }
  0x4e   : > { %p8440_p4 = pneg %p8843_p3  ;;  %p8459_p13 = por %p8458_p12, %p8457_p10 }
  0x4f   : > { %s8851_s20 = scalar_lea.hbm %s11156_s2, %s7736_s23 }
  0x50   : > { %p8452_p8 = pnand %p8450_p5, %p8440_p4 }
  0x52   : > { %p8453_p9 = pneg %p8452_p8 }
  0x54   : > { %p8460_p2 = pnand %p8459_p13, %p8453_p9 }
  0x56   : > { %8463 = shalt.err (!%p8460_p2)
}
  0x57   : > { %s8647_s14 = smov 128   ;;  %s8648_s27 = smov 8  }
  0x58   : > { %s11157_s0 = sld [smem:[#allocation49_spill]]  ;;  %s470_s22 = scalar_lea.vmem [#allocation8], %s7735_s24 }
  0x59   : > { %s478_s1 = sshll.u32 %s470_s22, 4  ;;  %s7043_s21 = sshll.u32 %s8634_s29, 11  ;;  %s479_s1 = int_to_ptr.vmem [resolvable:$true] %s478_s1 }
  0x5a   : > { %s11158_s7 = sld [smem:[#allocation55_spill]]  ;;  %s8477_s3 = scalar_lea.vmem %s479_s1, 48 }
  0x5b   : > { %p8478_p4 = scmp.ne.s32.totalorder %s479_s1, %s8477_s3  ;;  %s8649_s12 = smov [#allocation8]  }
  0x5c   : > { %s8482_s30 = sshll.u32 %s8649_s12, 4  ;;  %s8483_s30 = int_to_ptr.vmem [resolvable:$false] %s8482_s30 }
  0x5d   : > { %p8480_p5 = pnand %p8478_p4, %p8793_p7  ;;  %s8484_s23 = scalar_lea.vmem %s8483_s30, 96 }
  0x5e   : > { %7760 = dma.hbm_to_vmem [thread:$0]  (!%p8843_p3), %s11157_s0, 2048, %s432_s17, [#allocation4], %s8647_s14, %s8647_s14, %s8648_s27  }
  0x5f   : > { %p8481_p8 = pneg %p8480_p5  ;;  %p8485_p3 = scmp.lt.s32.totalorder %s479_s1, %s8483_s30 }
  0x60   : > { %s8869_s2 = scalar_lea.hbm %s11158_s7, %s7043_s21  ;;  %p8486_p9 = scmp.lt.s32.totalorder %s8484_s23, %s8477_s3 }
  0x62   : > { %p8487_p10 = por %p8486_p9, %p8485_p3 }
  0x64   : > { %p8488_p12 = pnand %p8487_p10, %p8481_p8 }
  0x66   : > { %8491 = shalt.err (!%p8488_p12)
}
  0x67   : > { %7767 = dma.hbm_to_vmem [thread:$0]  (!%p8783_p6), %s8851_s20, 48, %s479_s1, %s8789_s16  }
  0x68   : > { %s11159_s11 = sshll.u32 %s8773_s18, 7  ;;  %s8650_s3 = smov [#allocation11]  }
  0x69   : > { %s528_s17 = scalar_lea.vmem [#allocation11], %s11159_s11  ;;  %s8510_s30 = sshll.u32 %s8650_s3, 4  ;;  %s8511_s30 = int_to_ptr.vmem [resolvable:$false] %s8510_s30 }
  0x6a   : > { %s535_s24 = sshll.u32 %s528_s17, 4  ;;  %s8512_s19 = scalar_lea.vmem %s8511_s30, 4096  ;;  %s536_s24 = int_to_ptr.vmem [resolvable:$true] %s535_s24 }
  0x6b   : > { %s8505_s25 = scalar_lea.vmem %s536_s24, 2048  ;;  %p8513_p5 = scmp.lt.s32.totalorder %s536_s24, %s8511_s30 }
  0x6c   : > { %p8506_p13 = scmp.ne.s32.totalorder %s536_s24, %s8505_s25  ;;  %p8514_p8 = scmp.lt.s32.totalorder %s8512_s19, %s8505_s25 }
  0x6e   : > { %p8508_p2 = pnand %p8506_p13, %p8793_p7  ;;  %p8515_p3 = por %p8514_p8, %p8513_p5 }
  0x70   : > { %p8509_p4 = pneg %p8508_p2 }
  0x72   : > { %p8516_p9 = pnand %p8515_p3, %p8509_p4 }
  0x74   : > { %8519 = shalt.err (!%p8516_p9)
}
  0x75   : > { %7773 = dma.hbm_to_vmem [thread:$0]  (!%p8783_p6), %s8869_s2, 2048, %s536_s24, %s8809_s10, %s8647_s14, %s8647_s14, %s8648_s27  }
  0x76   : > { %s11160_s9 = sld [smem:[#allocation57_spill]]  ;;  %s11161_s22 = smov %s11159_s11 }
  0x77   : > { %s556_s12 = scalar_lea.vmem [#allocation12], %s11161_s22  ;;  %s553_s11 = scalar_lea.sflag [#allocation13], %s8773_s18 }
  0x78   : > { %s563_s23 = sshll.u32 %s556_s12, 4  ;;  %s8651_s25 = smov [#allocation12]   ;;  %s564_s23 = int_to_ptr.vmem [resolvable:$true] %s563_s23 }
  0x79   : > { %s8533_s17 = scalar_lea.vmem %s564_s23, 2048  ;;  %s8538_s3 = sshll.u32 %s8651_s25, 4  ;;  %s8539_s3 = int_to_ptr.vmem [resolvable:$false] %s8538_s3 }
  0x7a   : > { %p8534_p10 = scmp.ne.s32.totalorder %s564_s23, %s8533_s17  ;;  %s8540_s30 = scalar_lea.vmem %s8539_s3, 4096 }
  0x7b   : > { %p8541_p2 = scmp.lt.s32.totalorder %s564_s23, %s8539_s3  ;;  %p8542_p4 = scmp.lt.s32.totalorder %s8540_s30, %s8533_s17 }
  0x7c   : > { %s562_s20 = scalar_lea.hbm %s11160_s9, %s7043_s21  ;;  %p8536_p12 = pnand %p8534_p10, %p8793_p7 }
  0x7d   : > { %p8543_p5 = por %p8542_p4, %p8541_p2 }
  0x7e   : > { %p8537_p13 = pneg %p8536_p12 }
  0x80   : > { %p8544_p8 = pnand %p8543_p5, %p8537_p13 }
  0x82   : > { %8547 = shalt.err (!%p8544_p8)
}
  0x83   : > { %s11162_s2 = smov 4   ;;  %s11163_s10 = smov 64  }
  0x84   : > { %7776 = dma.hbm_to_vmem [thread:$0]  (!%p8783_p6), %s562_s20, 2048, %s564_s23, %s553_s11, %s11163_s10, %s11163_s10, %s11162_s2  }
  0x85   : > { %593 = sbr.rel (%p8833_p1) target bundleno = 4195 (0x1063), region = 72 }
  0x8a   : > { %8597 = dma.done.wait (%p93_p11), [#allocation4], 2048  }
  0x8b   : > { %8599 = vsyncadd (%p93_p11), [#allocation4], 4294965248  ;;  %s599_s18 = sand.u32 1, %s8820_s5   ;;  %s601_s15 = sand.u32 1, %s8622_s26  }
  0x8c   : > { %s7737_s14 = smul.u32 192, %s601_s15  ;;  %s600_s13 = scalar_lea.sflag [#allocation7], %s599_s18 }
  0x8e   : > { %s8911_s27 = scalar_lea.vmem [#allocation6], %s7737_s14 }
  0x8f   : > { %8601 = dma.done.wait (%p8829_p0), %s600_s13, 3120  }
  0x90   : > { %8603 = vsyncadd (%p8829_p0), %s600_s13, 4294964176  ;;  %s7738_s8 = smul.u32 3, %s601_s15  ;;  %s6898_s21 = sshll.u32 %s601_s15, 6 }
  0x91   : > { %s618_s19 = scalar_lea.sflag [#allocation10], %s599_s18  ;;  %s8919_s16 = scalar_lea.vmem [#allocation9], %s6898_s21 }
  0x92   : > { %s8917_s24 = scalar_lea.vmem [#allocation8], %s7738_s8 }
  0x93   : > { %8605 = dma.done.wait (%p8829_p0), %s618_s19, 3072  }
  0x94   : > { %8607 = vsyncadd (%p8829_p0), %s618_s19, 4294964224  ;;  %s6899_s1 = sshll.u32 %s601_s15, 7  ;;  %s636_s22 = scalar_lea.sflag [#allocation13], %s601_s15 }
  0x95   : > { %s8925_s20 = scalar_lea.vmem [#allocation11], %s6899_s1  ;;  %s8927_s12 = scalar_lea.vmem [#allocation12], %s6899_s1 }
  0x96   : > { %8609 = dma.done.wait (%p8829_p0), %s636_s22, 2048  }
  0x97   : > { %8611 = vsyncadd (%p8829_p0), %s636_s22, 4294965248  ;;  %p720_p6 = scmp.lt.s32.totalorder %s8630_s28, 1  ;;  %s11165_s15 = sld [smem:[#allocation54_spill]] }
  0x98   : > { %s11166_s19 = sld [smem:[#allocation56_spill]]  ;;  %p6902_p7 = scmp.ne.s32.totalorder %s8630_s28, 0 }
  0x99   : > { %s8935_s23 = scalar_select %p720_p6, %s8630_s28, 1 }
  0x9a   : > { %s11167_s17 = sld [smem:[#allocation58_spill]] }
  0x9b   : > { %s6901_s13 = sshll.u32 %s8935_s23, 1  ;;  %s11168_s9 = sld [smem:[#allocation59_spill]] }
  0x9c   : > { %s11169_s6 = sld [smem:[#allocation60_spill]] }
  0x9d   : > { %s728_s14 = scalar_lea.vmem %s11165_s15, %s8935_s23 }
  0x9e   : > { %s8953_s1 = scalar_lea.vmem %s11166_s19, %s6901_s13  ;;  %747 = sbr.rel (%p6902_p7) target bundleno = 172 (0xac), region = 100 }
  0xa0   : > { %s735_s0 = scalar_lea.vmem %s11167_s17, %s8935_s23 }
  0xa1   : > { %s738_s29 = scalar_lea.vmem %s11168_s9, %s8935_s23 }
  0xa2   : > { %s741_s2 = scalar_lea.vmem %s11169_s6, %s8935_s23 }
  0xa3   : > { %v748_v0 = vld [vmem:[#allocation3] sm:$0xff]  ;;  %v749_v1 = vld [vmem:[#allocation3 + $0x8] sm:$0xff]  ;;  %v750_v2 = vld [vmem:[#allocation3 + $0x10] sm:$0xff] }
  0xa4   : > { %764 = vst [vmem:[#allocation2 + $0x30] sm:$0xff] %v748_v0  ;;  %765 = vst [vmem:[#allocation2] sm:$0xff] %v749_v1  ;;  %v751_v3 = vld [vmem:[#allocation3 + $0x18] sm:$0xff]  ;;  %v752_v4 = vld [vmem:[#allocation3 + $0x20] sm:$0xff] }
  0xa5   : > { %766 = vst [vmem:[#allocation2 + $0x58] sm:$0xff] %v750_v2  ;;  %v753_v5 = vld [vmem:[#allocation3 + $0x28] sm:$0xff]  ;;  %767 = vst [vmem:[#allocation2 + $0x18] sm:$0xff] %v751_v3  ;;  %v754_v6 = vld [vmem:[#allocation3 + $0x30] sm:$0xff] }
  0xa6   : > { %768 = vst [vmem:[#allocation2 + $0x50] sm:$0xff] %v752_v4  ;;  %769 = vst [vmem:[#allocation2 + $0x68] sm:$0xff] %v753_v5  ;;  %v755_v7 = vld [vmem:[#allocation3 + $0x38] sm:$0xff]  ;;  %v756_v8 = vld [vmem:[#allocation3 + $0x40] sm:$0xff] }
  0xa7   : > { %770 = vst [vmem:[#allocation2 + $0x8] sm:$0xff] %v754_v6  ;;  %771 = vst [vmem:[#allocation2 + $0x48] sm:$0xff] %v755_v7  ;;  %v757_v9 = vld [vmem:[#allocation3 + $0x48] sm:$0xff]  ;;  %v758_v10 = vld [vmem:[#allocation3 + $0x50] sm:$0xff] }
  0xa8   : > { %772 = vst [vmem:[#allocation2 + $0x40] sm:$0xff] %v756_v8  ;;  %v759_v11 = vld [vmem:[#allocation3 + $0x58] sm:$0xff]  ;;  %773 = vst [vmem:[#allocation2 + $0x20] sm:$0xff] %v757_v9  ;;  %v760_v12 = vld [vmem:[#allocation3 + $0x60] sm:$0xff] }
  0xa9   : > { %774 = vst [vmem:[#allocation2 + $0x10] sm:$0xff] %v758_v10  ;;  %775 = vst [vmem:[#allocation2 + $0x38] sm:$0xff] %v759_v11  ;;  %v761_v13 = vld [vmem:[#allocation3 + $0x68] sm:$0xff]  ;;  %v762_v14 = vld [vmem:[#allocation3 + $0x70] sm:$0xff] }
  0xaa   : > { %776 = vst [vmem:[#allocation2 + $0x60] sm:$0xff] %v760_v12  ;;  %777 = vst [vmem:[#allocation2 + $0x70] sm:$0xff] %v761_v13  ;;  %v763_v15 = vld [vmem:[#allocation3 + $0x78] sm:$0xff] }
  0xab   : > { %778 = vst [vmem:[#allocation2 + $0x78] sm:$0xff] %v762_v14  ;;  %779 = vst [vmem:[#allocation2 + $0x28] sm:$0xff] %v763_v15 }
  0xac PF: > { %v7966_v16 = vld [vmem:[%s8911_s27 + $0xac] ss:$12 sps:$4 sm:$0xff]   ;;  %v7968_v17 = vld [vmem:[%s8911_s27 + $0xa8] ss:$12 sps:$4 sm:$0xff]   ;;  %v11117_v18 = vmov 0   ;;  %v781_v26 = vld [vmem:[#allocation2] sm:$0xff]  ;;  %v838_v2 = vlaneseq  ;;  %s11233_s25 = scalar_lea.vmem %s11098_s4, %s8935_s23 }
  0xad   : > { %1013 = vmatprep.mubr.bf16.mxu0 %v11117_v18  ;;  %981 = vmatprep.subr.bf16.mxu0 %v7966_v16  ;;  %v7969_v19 = vld [vmem:[%s8911_s27 + $0x94] ss:$12 sps:$4 sm:$0xff]   ;;  %v7971_v20 = vld [vmem:[%s8911_s27 + $0x90] ss:$12 sps:$4 sm:$0xff]   ;;  %v7974_v22 = vld [vmem:[%s8911_s27 + $0x78] ss:$12 sps:$4 sm:$0xff]  }
  0xae   : > { %982 = vmatpush1.bf16.msra.mxu0 %v7968_v17  ;;  %v7972_v21 = vld [vmem:[%s8911_s27 + $0x7c] ss:$12 sps:$4 sm:$0xff]   ;;  %v7975_v23 = vld [vmem:[%s8911_s27 + $0x64] ss:$12 sps:$4 sm:$0xff]   ;;  %v7977_v25 = vld [vmem:[%s8911_s27 + $0x60] ss:$12 sps:$4 sm:$0xff]  }
  0xaf   : > { %983 = vmatprep.subr.bf16.mxu0 %v7969_v19  ;;  %v780_v24 = vld [vmem:[#allocation2 + $0x30] sm:$0xff]  ;;  %v7978_v27 = vld [vmem:[%s8911_s27 + $0x4c] ss:$12 sps:$4 sm:$0xff]   ;;  %v7984_v34 = vld [vmem:[%s8911_s27 + $0x1c] ss:$12 sps:$4 sm:$0xff]   ;;  %v11119_v1 = vmov 0.0  }
  0xb0   : > { %v796_v28 = vpack.c.bf16 %v781_v26, %v780_v24  ;;  %v7980_v29 = vld [vmem:[%s8911_s27 + $0x48] ss:$12 sps:$4 sm:$0xff]   ;;  %v7990_v31 = vld [vmem:[%s8911_s27 + $0xb0] ss:$12 sps:$4 sm:$0xff]   ;;  %v7991_v32 = vld [vmem:[%s8911_s27 + $0x98] ss:$12 sps:$4 sm:$0xff]  }
  0xb1   : > { %v7981_v30 = vld [vmem:[%s8911_s27 + $0x34] ss:$12 sps:$4 sm:$0xff]   ;;  %v7983_v33 = vld [vmem:[%s8911_s27 + $0x30] ss:$12 sps:$4 sm:$0xff]   ;;  %7269 = vmatprep.subr.bf16.mxu1 %v7990_v31  ;;  %v7986_v36 = vld [vmem:[%s8911_s27 + $0x18] ss:$12 sps:$4 sm:$0xff]  }
  0xb2   : > { %984 = vmatpush1.bf16.msra.mxu0 %v7971_v20  ;;  %7285 = vmatprep.mubr.bf16.mxu1 %v796_v28  ;;  %v7992_v35 = vld [vmem:[%s8911_s27 + $0x80] ss:$12 sps:$4 sm:$0xff]   ;;  %v7987_v37 = vld [vmem:[%s8911_s27 + $0x4] ss:$12 sps:$4 sm:$0xff]   ;;  %v7993_v38 = vld [vmem:[%s8911_s27 + $0x68] ss:$12 sps:$4 sm:$0xff]  }
  0xb3   : > { %985 = vmatprep.subr.bf16.mxu0 %v7972_v21  ;;  %7270 = vmatpush3.bf16.msra.mxu1 %v7990_v31  ;;  %v7989_v39 = vld [vmem:[%s8911_s27] ss:$12 sps:$4 sm:$0xff]   ;;  %v7994_v40 = vld [vmem:[%s8911_s27 + $0x50] ss:$12 sps:$4 sm:$0xff]   ;;  %v7995_v41 = vld [vmem:[%s8911_s27 + $0x38] ss:$12 sps:$4 sm:$0xff]  }
  0xb4   : > { %7271 = vmatprep.subr.bf16.mxu1 %v7991_v32  ;;  %v782_v42 = vld [vmem:[#allocation2 + $0x58] sm:$0xff]  ;;  %v7996_v44 = vld [vmem:[%s8911_s27 + $0x20] ss:$12 sps:$4 sm:$0xff]   ;;  %v7997_v46 = vld [vmem:[%s8911_s27 + $0x8] ss:$12 sps:$4 sm:$0xff]   ;;  %vm8654_vm0 = vmmov 0  }
  0xb5   : > { %v783_v43 = vld [vmem:[#allocation2 + $0x18] sm:$0xff]  ;;  %v784_v47 = vld [vmem:[#allocation2 + $0x50] sm:$0xff]  ;;  %v785_v48 = vld [vmem:[#allocation2 + $0x68] sm:$0xff]  ;;  %v9006_v3 = vshrl.u32 %v838_v2, 7  ;;  %vm1223_vm1 = vcmask 261120   ;;  %vm1600_vm2 = vcmask 130048  }
  0xb6   : > { %986 = vmatpush1.bf16.msra.mxu0 %v7974_v22  ;;  %v797_v45 = vpack.c.bf16 %v783_v43, %v782_v42  ;;  %v798_v49 = vpack.c.bf16 %v785_v48, %v784_v47  ;;  %v786_v50 = vld [vmem:[#allocation2 + $0x8] sm:$0xff]  ;;  %v788_v53 = vld [vmem:[#allocation2 + $0x40] sm:$0xff]  ;;  %v790_v56 = vld [vmem:[#allocation2 + $0x10] sm:$0xff]  ;;  %s8655_s7 = smov 96   ;;  %s8656_s9 = smov 64   ;;  %vm5345_vm3 = vcmask 523264  }
  0xb7   : > { %987 = vmatprep.subr.bf16.mxu0 %v7975_v23  ;;  %7272 = vmatpush3.bf16.msra.mxu1 %v7991_v32  ;;  %v787_v51 = vld [vmem:[#allocation2 + $0x48] sm:$0xff]  ;;  %v789_v54 = vld [vmem:[#allocation2 + $0x20] sm:$0xff]  ;;  %v791_v57 = vld [vmem:[#allocation2 + $0x38] sm:$0xff]  ;;  %11170 = vst [vmem:[#allocation25_spill] sm:$0xff] %v9006_v3  ;;  %v11116_v4 = vsub.s32 1, %v9006_v3  ;;  %v11115_v8 = vsub.s32 0, %v9006_v3 }
  0xb8   : > { %7273 = vmatprep.subr.bf16.mxu1 %v7992_v35  ;;  %v799_v52 = vpack.c.bf16 %v787_v51, %v786_v50  ;;  %v800_v55 = vpack.c.bf16 %v789_v54, %v788_v53  ;;  %v792_v58 = vld [vmem:[#allocation2 + $0x60] sm:$0xff]  ;;  %v793_v59 = vld [vmem:[#allocation2 + $0x70] sm:$0xff]  ;;  %v801_v60 = vpack.c.bf16 %v791_v57, %v790_v56  ;;  %v794_v62 = vld [vmem:[#allocation2 + $0x78] sm:$0xff]  ;;  %s8657_s27 = smov 32   ;;  %vm5362_vm4 = vcmask 785408   ;;  %s11234_s18 = sld [smem:[#allocation53_spill]] }
  0xb9   : > { %v802_v61 = vpack.c.bf16 %v793_v59, %v792_v58  ;;  %v795_v63 = vld [vmem:[#allocation2 + $0x28] sm:$0xff]  ;;  %v836_v6 = vld [vmem:[%s8917_s24] sm:$0x7]  ;;  %p7037_p11 = scmp.ne.s32.totalorder %s8630_s28, 1 }
  0xba   : > { %988 = vmatpush1.bf16.msra.mxu0 %v7977_v25  ;;  %v803_v0 = vpack.c.bf16 %v795_v63, %v794_v62  ;;  %v9013_v9 = vrot.slane %v836_v6, %v11116_v4  ;;  %v9017_v12 = vrot.slane %v836_v6, %v11115_v8 }
  0xbb   : > { %989 = vmatprep.subr.bf16.mxu0 %v7978_v27  ;;  %7274 = vmatpush3.bf16.msra.mxu1 %v7992_v35 }
  0xbc   : > { %7275 = vmatprep.subr.bf16.mxu1 %v7993_v38 }
  0xbe   : > { %990 = vmatpush1.bf16.msra.mxu0 %v7980_v29  ;;  %s11235_s15 = scalar_lea.vmem %s11234_s18, %s8935_s23 }
  0xbf   : > { %991 = vmatprep.subr.bf16.mxu0 %v7981_v30  ;;  %7276 = vmatpush3.bf16.msra.mxu1 %v7993_v38  ;;  %v848_v38 = vsub.s32 2, %v9006_v3 }
  0xc0   : > { %7277 = vmatprep.subr.bf16.mxu1 %v7994_v40 }
  0xc1   : > { %v9054_v47 = vrot.slane %v836_v6, %v848_v38 }
  0xc2   : > { %992 = vmatpush1.bf16.msra.mxu0 %v7983_v33 }
  0xc3   : > { %993 = vmatprep.subr.bf16.mxu0 %v7984_v34  ;;  %7278 = vmatpush3.bf16.msra.mxu1 %v7994_v40 }
  0xc4   : > { %7279 = vmatprep.subr.bf16.mxu1 %v7995_v41 }
  0xc6   : > { %994 = vmatpush1.bf16.msra.mxu0 %v7986_v36 }
  0xc7   : > { %995 = vmatprep.subr.bf16.mxu0 %v7987_v37  ;;  %7280 = vmatpush3.bf16.msra.mxu1 %v7995_v41 }
  0xc8   : > { %7281 = vmatprep.subr.bf16.mxu1 %v7996_v44 }
  0xca   : > { %996 = vmatpush1.bf16.msra.mxu0 %v7989_v39 }
  0xcb   : > { %7282 = vmatpush3.bf16.msra.mxu1 %v7996_v44  ;;  %7325 = vmatprep.subr.bf16.mxu0 %v11119_v1 }
  0xcc   : > { %7283 = vmatprep.subr.bf16.mxu1 %v7997_v46 }
  0xcd   : > { %1014 = vmatmul.mubr.bf16.vlgmr.msra.gmra.mxu0 %v796_v28 }
  0xce   : > { %1023 = vmatprep.mubr.bf16.mxu0 %v11117_v18 }
  0xcf   : > { %7284 = vmatpush3.bf16.msra.mxu1 %v7997_v46 }
  0xd0   : > { %7301 = vmatprep.subr.bf16.mxu1 %v11119_v1 }
  0xd2   : > { %7286 = vmatmul.mubr.bf16.vlgmr.msra.gmra.mxu1 %v797_v45 }
  0xd3   : > { %7289 = vmatprep.mubr.bf16.mxu1 %v798_v49 }
  0xd5   : > { %1024 = vmatmul.mubr.bf16.gmra.mxu0 %v797_v45 }
  0xd6   : > { %1033 = vmatprep.mubr.bf16.mxu0 %v11117_v18 }
  0xda   : > { %7290 = vmatmul.mubr.bf16.gmra.mxu1 %v799_v52 }
  0xdb   : > { %7293 = vmatprep.mubr.bf16.mxu1 %v800_v55 }
  0xdd   : > { %1034 = vmatmul.mubr.bf16.gmra.mxu0 %v798_v49 }
  0xde   : > { %1043 = vmatprep.mubr.bf16.mxu0 %v11117_v18 }
  0xe2   : > { %7294 = vmatmul.mubr.bf16.gmra.mxu1 %v801_v60 }
  0xe3   : > { %7297 = vmatprep.mubr.bf16.mxu1 %v802_v61 }
  0xe5   : > { %1044 = vmatmul.mubr.bf16.gmra.mxu0 %v799_v52 }
  0xe6   : > { %1053 = vmatprep.mubr.bf16.mxu0 %v11117_v18 }
  0xea   : > { %7298 = vmatmul.mubr.bf16.gmra.mxu1 %v803_v0 }
  0xeb   : > { %7303 = vmatprep.mubr.msk.bf16.mxu1 %vm8654_vm0, %v11119_v1 }
  0xed   : > { %1054 = vmatmul.mubr.bf16.gmra.mxu0 %v800_v55 }
  0xee   : > { %1063 = vmatprep.mubr.bf16.mxu0 %v11117_v18 }
  0xf5   : > { %1064 = vmatmul.mubr.bf16.gmra.mxu0 %v801_v60 }
  0xf6   : > { %1073 = vmatprep.mubr.bf16.mxu0 %v11117_v18 }
  0xfd   : > { %1074 = vmatmul.mubr.bf16.gmra.mxu0 %v802_v61 }
  0xfe   : > { %1083 = vmatprep.mubr.bf16.mxu0 %v11117_v18 }
 0x105   : > { %1084 = vmatmul.mubr.bf16.gmra.mxu0 %v803_v0 }
 0x106   : > { %7327 = vmatprep.mubr.msk.bf16.mxu0 %vm8654_vm0, %v11119_v1 }
 0x18d   : > { %v1015_v5 = vpop.f32.mrf.mxu0 }
 0x18e   : > { %v1016_v20 = vadd.f32 %v1015_v5, %v9017_v12 }
 0x18f   : > { %v1017_v7 = vpop.f32.mrf.mxu0 }
 0x190   : > { %v1018_v13 = vadd.f32 %v1017_v7, %v9013_v9  ;;  %v1191_v25 = vmul.f32 0.17677669, %v1016_v20 }
 0x191   : > { %v1019_v10 = vpop.f32.mrf.mxu0 }
 0x192   : > { %v1020_v16 = vadd.f32 %v1019_v10, %v9017_v12  ;;  %v9030_v29 = vpop.f32.mrf.mxu1 }
 0x193   : > { %v1021_v11 = vpop.f32.mrf.mxu0 }
 0x194   : > { %v1022_v14 = vadd.f32 %v1021_v11, %v9013_v9  ;;  %v1192_v23 = vmul.f32 0.17677669, %v1020_v16  ;;  %v9037_v34 = vpop.f32.mrf.mxu1 }
 0x195   : > { %v1025_v15 = vpop.f32.mrf.mxu0 }
 0x196   : > { %v9022_v17 = vpack.c.bf16 %v1022_v14, %v1018_v13  ;;  %v9032_v30 = vpack.c.bf16 %v1192_v23, %v1191_v25  ;;  %v1026_v35 = vadd.f32 %v1025_v15, %v9017_v12  ;;  %v9047_v39 = vpop.f32.mrf.mxu1 }
 0x197   : > { %v1027_v19 = vpop.f32.mrf.mxu0 }
 0x198   : > { %v1228_v21 = vsel %vm1223_vm1, %v9022_v17, 0  ;;  %v1028_v26 = vadd.f32 %v1027_v19, %v9013_v9  ;;  %v9050_v42 = vpop.f32.mrf.mxu1  ;;  %v1193_v43 = vmul.f32 0.17677669, %v1026_v35 }
 0x199   : > { %v1029_v22 = vpop.f32.mrf.mxu0  ;;  %7302 = vmatpush3.bf16.xpose.msra.mxu1 %v1228_v21 }
 0x19a   : > { %7307 = vmatprep.subr.bf16.mxu1 %v11119_v1  ;;  %v1030_v31 = vadd.f32 %v1029_v22, %v9017_v12  ;;  %v7291_v48 = vpop.f32.mrf.mxu1 }
 0x19b   : > { %v1031_v24 = vpop.f32.mrf.mxu0  ;;  %v1153_v54 = vadd.f32 %v7291_v48, %v9054_v47 }
 0x19c   : > { %v1032_v27 = vadd.f32 %v1031_v24, %v9013_v9  ;;  %v1194_v40 = vmul.f32 0.17677669, %v1030_v31  ;;  %v1144_v55 = vpop.f32.mrf.mxu1 }
 0x19d   : > { %v1035_v28 = vpop.f32.mrf.mxu0  ;;  %v1145_v57 = vadd.f32 %v1144_v55, %v9054_v47 }
 0x19e   : > { %v9035_v32 = vpack.c.bf16 %v1032_v27, %v1028_v26  ;;  %v9056_v49 = vpack.c.bf16 %v1194_v40, %v1193_v43  ;;  %v1036_v52 = vadd.f32 %v1035_v28, %v9017_v12  ;;  %v7292_v59 = vpop.f32.mrf.mxu1 }
 0x19f   : > { %v1037_v33 = vpop.f32.mrf.mxu0  ;;  %v1156_v61 = vadd.f32 %v7292_v59, %v9054_v47 }
 0x1a0   : > { %7304 = vmatmul.mubr.msk.bf16.vlgmr.msra.gmra.mxu1 %vm1223_vm1, %v9032_v30  ;;  %v1275_v36 = vsel %vm1223_vm1, %v9035_v32, 0  ;;  %v1038_v44 = vadd.f32 %v1037_v33, %v9013_v9  ;;  %v1195_v62 = vmul.f32 0.17677669, %v1036_v52  ;;  %v1147_v0 = vpop.f32.mrf.mxu1 }
 0x1a1   : > { %v1039_v37 = vpop.f32.mrf.mxu0  ;;  %7308 = vmatpush3.bf16.xpose.msra.mxu1 %v1275_v36  ;;  %7309 = vmatprep.mubr.msk.bf16.mxu1 %vm8654_vm0, %v11119_v1  ;;  %v9074_v6 = vpack.c.bf16 %v1156_v61, %v1153_v54  ;;  %v1148_v7 = vadd.f32 %v1147_v0, %v9054_v47 }
 0x1a2   : > { %7313 = vmatprep.subr.bf16.mxu1 %v11119_v1  ;;  %v1040_v50 = vadd.f32 %v1039_v37, %v9017_v12  ;;  %v7295_v11 = vpop.f32.mrf.mxu1 }
 0x1a3   : > { %v1041_v41 = vpop.f32.mrf.mxu0  ;;  %v9082_v16 = vpack.c.bf16 %v1148_v7, %v1145_v57  ;;  %v1169_v21 = vadd.f32 %v7295_v11, %v9054_v47 }
 0x1a4   : > { %v1042_v45 = vadd.f32 %v1041_v41, %v9013_v9  ;;  %v1196_v60 = vmul.f32 0.17677669, %v1040_v50  ;;  %v1160_v22 = vpop.f32.mrf.mxu1 }
 0x1a5   : > { %v1045_v46 = vpop.f32.mrf.mxu0  ;;  %v1161_v24 = vadd.f32 %v1160_v22, %v9054_v47 }
 0x1a6   : > { %v9059_v51 = vpack.c.bf16 %v1042_v45, %v1038_v44  ;;  %v9077_v13 = vpack.c.bf16 %v1196_v60, %v1195_v62  ;;  %v1046_v19 = vadd.f32 %v1045_v46, %v9017_v12  ;;  %v7296_v26 = vpop.f32.mrf.mxu1 }
 0x1a7   : > { %v1047_v53 = vpop.f32.mrf.mxu0  ;;  %v1172_v28 = vadd.f32 %v7296_v26, %v9054_v47 }
 0x1a8   : > { %7310 = vmatmul.mubr.msk.bf16.vlgmr.msra.gmra.mxu1 %vm1223_vm1, %v9056_v49  ;;  %v1322_v56 = vsel %vm1223_vm1, %v9059_v51, 0  ;;  %v1048_v2 = vadd.f32 %v1047_v53, %v9013_v9  ;;  %v1197_v31 = vmul.f32 0.17677669, %v1046_v19  ;;  %v1163_v35 = vpop.f32.mrf.mxu1 }
 0x1a9   : > { %v1049_v58 = vpop.f32.mrf.mxu0  ;;  %7314 = vmatpush3.bf16.xpose.msra.mxu1 %v1322_v56  ;;  %7315 = vmatprep.mubr.msk.bf16.mxu1 %vm8654_vm0, %v11119_v1  ;;  %v9097_v38 = vpack.c.bf16 %v1172_v28, %v1169_v21  ;;  %v1164_v40 = vadd.f32 %v1163_v35, %v9054_v47 }
 0x1aa   : > { %7319 = vmatprep.subr.bf16.mxu1 %v11119_v1  ;;  %v1050_v14 = vadd.f32 %v1049_v58, %v9017_v12  ;;  %v7299_v43 = vpop.f32.mrf.mxu1 }
 0x1ab   : > { %v1051_v63 = vpop.f32.mrf.mxu0  ;;  %v9105_v48 = vpack.c.bf16 %v1164_v40, %v1161_v24  ;;  %v1185_v53 = vadd.f32 %v7299_v43, %v9054_v47 }
 0x1ac   : > { %v1052_v5 = vadd.f32 %v1051_v63, %v9013_v9  ;;  %v1198_v27 = vmul.f32 0.17677669, %v1050_v14  ;;  %v1176_v54 = vpop.f32.mrf.mxu1 }
 0x1ad   : > { %v1055_v10 = vpop.f32.mrf.mxu0  ;;  %v1177_v56 = vadd.f32 %v1176_v54, %v9054_v47 }
 0x1ae   : > { %v9080_v15 = vpack.c.bf16 %v1052_v5, %v1048_v2  ;;  %v9100_v44 = vpack.c.bf16 %v1198_v27, %v1197_v31  ;;  %v1056_v50 = vadd.f32 %v1055_v10, %v9017_v12  ;;  %v7300_v58 = vpop.f32.mrf.mxu1 }
 0x1af   : > { %v1057_v20 = vpop.f32.mrf.mxu0  ;;  %v1188_v60 = vadd.f32 %v7300_v58, %v9054_v47 }
 0x1b0   : > { %7316 = vmatmul.mubr.msk.bf16.vlgmr.msra.gmra.mxu1 %vm1223_vm1, %v9077_v13  ;;  %v1369_v23 = vsel %vm1223_vm1, %v9080_v15, 0  ;;  %v1058_v36 = vadd.f32 %v1057_v20, %v9013_v9  ;;  %v1199_v61 = vmul.f32 0.17677669, %v1056_v50  ;;  %v1179_v63 = vpop.f32.mrf.mxu1  ;;  %v1129_v50 = vadd.f32 %v9037_v34, %v9054_v47 }
 0x1b1   : > { %v1059_v25 = vpop.f32.mrf.mxu0  ;;  %7320 = vmatpush3.bf16.xpose.msra.mxu1 %v1369_v23  ;;  %7321 = vmatprep.mubr.msk.bf16.mxu1 %vm8654_vm0, %v11119_v1  ;;  %v9120_v5 = vpack.c.bf16 %v1188_v60, %v1185_v53  ;;  %v1180_v7 = vadd.f32 %v1179_v63, %v9054_v47 }
 0x1b2   : > { %7331 = vmatprep.subr.bf16.mxu1 %v11119_v1  ;;  %v1060_v45 = vadd.f32 %v1059_v25, %v9017_v12 }
 0x1b3   : > { %v1061_v33 = vpop.f32.mrf.mxu0  ;;  %v9128_v20 = vpack.c.bf16 %v1180_v7, %v1177_v56 }
 0x1b4   : > { %v1062_v37 = vadd.f32 %v1061_v33, %v9013_v9  ;;  %v1200_v59 = vmul.f32 0.17677669, %v1060_v45 }
 0x1b5   : > { %v1065_v41 = vpop.f32.mrf.mxu0 }
 0x1b6   : > { %v9103_v46 = vpack.c.bf16 %v1062_v37, %v1058_v36  ;;  %v9123_v11 = vpack.c.bf16 %v1200_v59, %v1199_v61  ;;  %v1066_v22 = vadd.f32 %v1065_v41, %v9017_v12 }
 0x1b7   : > { %v1067_v52 = vpop.f32.mrf.mxu0 }
 0x1b8   : > { %7322 = vmatmul.mubr.msk.bf16.vlgmr.msra.gmra.mxu1 %vm1223_vm1, %v9100_v44  ;;  %v1416_v55 = vsel %vm1223_vm1, %v9103_v46, 0  ;;  %v1068_v0 = vadd.f32 %v1067_v52, %v9013_v9  ;;  %v1201_v27 = vmul.f32 0.17677669, %v1066_v22  ;;  %v1132_v52 = vadd.f32 %v9050_v42, %v9054_v47 }
 0x1b9   : > { %v1069_v57 = vpop.f32.mrf.mxu0  ;;  %7326 = vmatpush3.bf16.xpose.msra.mxu0 %v1416_v55  ;;  %7333 = vmatprep.mubr.msk.bf16.mxu1 %vm8654_vm0, %v11119_v1 }
 0x1ba   : > { %7337 = vmatprep.subr.bf16.mxu0 %v11119_v1  ;;  %v1070_v14 = vadd.f32 %v1069_v57, %v9017_v12  ;;  %v9161_v60 = vpack.c.bf16 %v1132_v52, %v1129_v50 }
 0x1bb   : > { %v1071_v62 = vpop.f32.mrf.mxu0 }
 0x1bc   : > { %v1072_v2 = vadd.f32 %v1071_v62, %v9013_v9  ;;  %v1202_v25 = vmul.f32 0.17677669, %v1070_v14 }
 0x1bd   : > { %v1075_v10 = vpop.f32.mrf.mxu0 }
 0x1be   : > { %v9126_v19 = vpack.c.bf16 %v1072_v2, %v1068_v0  ;;  %v9140_v35 = vpack.c.bf16 %v1202_v25, %v1201_v27  ;;  %v1076_v41 = vadd.f32 %v1075_v10, %v9017_v12 }
 0x1bf   : > { %v1077_v21 = vpop.f32.mrf.mxu0 }
 0x1c0   : > { %7328 = vmatmul.mubr.msk.bf16.vlgmr.msra.gmra.mxu0 %vm1223_vm1, %v9123_v11  ;;  %v1463_v23 = vsel %vm1223_vm1, %v9126_v19, 0  ;;  %v1078_v28 = vadd.f32 %v1077_v21, %v9013_v9  ;;  %v1203_v56 = vmul.f32 0.17677669, %v1076_v41 }
 0x1c1   : > { %v1079_v24 = vpop.f32.mrf.mxu0  ;;  %7332 = vmatpush3.bf16.xpose.msra.mxu1 %v1463_v23  ;;  %7339 = vmatprep.mubr.msk.bf16.mxu0 %vm8654_vm0, %v11119_v1 }
 0x1c2   : > { %7343 = vmatprep.subr.bf16.mxu1 %v11119_v1  ;;  %v1080_v36 = vadd.f32 %v1079_v24, %v9017_v12 }
 0x1c3   : > { %v1081_v26 = vpop.f32.mrf.mxu0 }
 0x1c4   : > { %v1082_v31 = vadd.f32 %v1081_v26, %v9013_v9  ;;  %v1204_v53 = vmul.f32 0.17677669, %v1080_v36 }
 0x1c5   : > { %v1085_v33 = vpop.f32.mrf.mxu0 }
 0x1c6   : > { %v9143_v37 = vpack.c.bf16 %v1082_v31, %v1078_v28  ;;  %v1086_v57 = vadd.f32 %v1085_v33, %v9017_v12  ;;  %v9163_v61 = vpack.c.bf16 %v1204_v53, %v1203_v56 }
 0x1c7   : > { %v1087_v40 = vpop.f32.mrf.mxu0 }
 0x1c8   : > { %7334 = vmatmul.mubr.msk.bf16.vlgmr.msra.gmra.mxu1 %vm1223_vm1, %v9140_v35  ;;  %v1510_v43 = vsel %vm1223_vm1, %v9143_v37, 0  ;;  %v1088_v54 = vadd.f32 %v1087_v40, %v9013_v9  ;;  %v1205_v42 = vmul.f32 0.17677669, %v1086_v57 }
 0x1c9   : > { %v1089_v45 = vpop.f32.mrf.mxu0  ;;  %7338 = vmatpush3.bf16.xpose.msra.mxu0 %v1510_v43  ;;  %7345 = vmatprep.mubr.msk.bf16.mxu1 %vm8654_vm0, %v11119_v1 }
 0x1ca   : > { %7349 = vmatprep.subr.bf16.mxu0 %v11119_v1  ;;  %v1090_v58 = vadd.f32 %v1089_v45, %v9017_v12  ;;  %v1137_v12 = vadd.f32 %v9030_v29, %v9054_v47 }
 0x1cb   : > { %v1091_v55 = vpop.f32.mrf.mxu0 }
 0x1cc   : > { %v1092_v59 = vadd.f32 %v1091_v55, %v9013_v9  ;;  %v1206_v62 = vmul.f32 0.17677669, %v1090_v58  ;;  %v1140_v9 = vadd.f32 %v9047_v39, %v9054_v47 }
 0x1ce   : > { %v9165_v34 = vpack.c.bf16 %v1092_v59, %v1088_v54  ;;  %v9180_v0 = vpack.c.bf16 %v1206_v62, %v1205_v42  ;;  %v9182_v2 = vpack.c.bf16 %v1140_v9, %v1137_v12 }
 0x1d0   : > { %7340 = vmatmul.mubr.msk.bf16.vlgmr.msra.gmra.mxu0 %vm1223_vm1, %v9163_v61  ;;  %v1557_v63 = vsel %vm1223_vm1, %v9165_v34, 0 }
 0x1d1   : > { %7344 = vmatpush3.bf16.xpose.msra.mxu1 %v1557_v63  ;;  %7350 = vmatpush3.bf16.msra.mxu0 %v9161_v60 }
 0x1d2   : > { %7355 = vmatprep.subr.bf16.mxu1 %v11119_v1  ;;  %7351 = vmatprep.mubr.msk.bf16.mxu0 %vm8654_vm0, %v11119_v1 }
 0x1d3   : > { %7361 = vmatprep.subr.bf16.mxu0 %v11119_v1 }
 0x1d8   : > { %7346 = vmatmul.mubr.msk.bf16.vlgmr.msra.gmra.mxu1 %vm1223_vm1, %v9180_v0 }
 0x1d9   : > { %7356 = vmatpush3.bf16.msra.mxu1 %v9182_v2  ;;  %7357 = vmatprep.mubr.msk.bf16.mxu1 %vm8654_vm0, %v11119_v1 }
 0x1da   : > { %7367 = vmatprep.subr.bf16.mxu1 %v11119_v1 }
 0x260   : > { %v9190_v29 = vpop.f32.mrf.mxu1 }
 0x261   : > { %v1601_v39 = vsel %vm1600_vm2, %v9190_v29, -inf }
 0x262   : > { %1602 = vmax.xlane.f32.xlu0 %v1601_v39  ;;  %v7305_v47 = vpop.f32.mrf.mxu1 }
 0x264   : > { %v9194_v7 = vpop.f32.mrf.mxu1 }
 0x265   : > { %v1604_v10 = vsel %vm1600_vm2, %v9194_v7, -inf }
 0x266   : > { %1605 = vmax.xlane.f32.xlu0 %v1604_v10  ;;  %v7306_v14 = vpop.f32.mrf.mxu1 }
 0x268   : > { %v9198_v21 = vpop.f32.mrf.mxu1 }
 0x269   : > { %v1607_v22 = vsel %vm1600_vm2, %v9198_v21, -inf }
 0x26a   : > { %1608 = vmax.xlane.f32.xlu1 %v1607_v22  ;;  %v7311_v23 = vpop.f32.mrf.mxu1 }
 0x26c   : > { %v9202_v24 = vpop.f32.mrf.mxu1 }
 0x26d   : > { %v1610_v25 = vsel %vm1600_vm2, %v9202_v24, -inf }
 0x26e   : > { %1611 = vmax.xlane.f32.xlu1 %v1610_v25  ;;  %v7312_v26 = vpop.f32.mrf.mxu1 }
 0x270   : > { %v9206_v27 = vpop.f32.mrf.mxu1 }
 0x271   : > { %v1613_v28 = vsel %vm1600_vm2, %v9206_v27, -inf }
 0x272   : > { %1614 = vmax.xlane.f32.xlu0 %v1613_v28  ;;  %v7317_v31 = vpop.f32.mrf.mxu1 }
 0x274   : > { %v9210_v33 = vpop.f32.mrf.mxu1 }
 0x275   : > { %v1616_v36 = vsel %vm1600_vm2, %v9210_v33, -inf }
 0x276   : > { %1617 = vmax.xlane.f32.xlu1 %v1616_v36  ;;  %v7318_v40 = vpop.f32.mrf.mxu1 }
 0x278   : > { %v9214_v41 = vpop.f32.mrf.mxu1 }
 0x279   : > { %v1619_v43 = vsel %vm1600_vm2, %v9214_v41, -inf }
 0x27a   : > { %1620 = vmax.xlane.f32.xlu0 %v1619_v43  ;;  %v7323_v45 = vpop.f32.mrf.mxu1 }
 0x27c   : > { %v9218_v50 = vpop.f32.mrf.mxu1 }
 0x27d   : > { %v1622_v52 = vsel %vm1600_vm2, %v9218_v50, -inf }
 0x27e   : > { %1623 = vmax.xlane.f32.xlu1 %v1622_v52  ;;  %v7324_v53 = vpop.f32.mrf.mxu1 }
 0x280   : > { %v9222_v54 = vpop.f32.mrf.mxu0 }
 0x281   : > { %v1625_v55 = vsel %vm1600_vm2, %v9222_v54, -inf }
 0x282   : > { %v7329_v56 = vpop.f32.mrf.mxu0  ;;  %1626 = vmax.xlane.f32.xlu0 %v1625_v55 }
 0x284   : > { %v9226_v57 = vpop.f32.mrf.mxu0 }
 0x285   : > { %v1628_v58 = vsel %vm1600_vm2, %v9226_v57, -inf }
 0x286   : > { %v7330_v59 = vpop.f32.mrf.mxu0  ;;  %1629 = vmax.xlane.f32.xlu1 %v1628_v58 }
 0x288   : > { %v9230_v42 = vpop.f32.mrf.mxu1 }
 0x289   : > { %v1631_v62 = vsel %vm1600_vm2, %v9230_v42, -inf }
 0x28a   : > { %1632 = vmax.xlane.f32.xlu0 %v1631_v62  ;;  %v7335_v63 = vpop.f32.mrf.mxu1 }
 0x28c   : > { %v9234_v12 = vpop.f32.mrf.mxu1 }
 0x28d   : > { %v1634_v9 = vsel %vm1600_vm2, %v9234_v12, -inf }
 0x28e   : > { %1635 = vmax.xlane.f32.xlu1 %v1634_v9  ;;  %v7336_v39 = vpop.f32.mrf.mxu1 }
 0x290   : > { %v9238_v47 = vpop.f32.mrf.mxu0 }
 0x291   : > { %v1637_v10 = vsel %vm1600_vm2, %v9238_v47, -inf }
 0x292   : > { %v7341_v14 = vpop.f32.mrf.mxu0  ;;  %1638 = vmax.xlane.f32.xlu0 %v1637_v10 }
 0x294   : > { %v9242_v22 = vpop.f32.mrf.mxu0 }
 0x295   : > { %v1640_v23 = vsel %vm1600_vm2, %v9242_v22, -inf }
 0x296   : > { %1641 = vmax.xlane.f32.xlu1 %v1640_v23  ;;  %v7342_v25 = vpop.f32.mrf.mxu0 }
 0x298   : > { %v9246_v26 = vpop.f32.mrf.mxu1 }
 0x299   : > { %v1643_v28 = vsel %vm1600_vm2, %v9246_v26, -inf }
 0x29a   : > { %1644 = vmax.xlane.f32.xlu0 %v1643_v28  ;;  %v7347_v31 = vpop.f32.mrf.mxu1 }
 0x29c   : > { %v9250_v36 = vpop.f32.mrf.mxu1 }
 0x29d   : > { %v1646_v40 = vsel %vm1600_vm2, %v9250_v36, -inf }
 0x29e   : > { %1647 = vmax.xlane.f32.xlu1 %v1646_v40  ;;  %v7348_v43 = vpop.f32.mrf.mxu1 }
 0x2eb   : > { %v1603_v45 = vpop.xlane.xlu0 %1602 }
 0x2ec   : > { %v1649_v52 = vsub.f32 %v9190_v29, %v1603_v45 }
 0x2ee   : > { %v1665_v53 = vmul.f32 1.442695, %v1649_v52 }
 0x2ef   : > { %v1606_v55 = vpop.xlane.xlu0 %1605 }
 0x2f0   : > { %8046 = vpow2.f32 %v1665_v53  ;;  %v1650_v56 = vsub.f32 %v9194_v7, %v1606_v55 }
 0x2f2   : > { %v1667_v58 = vmul.f32 1.442695, %v1650_v56 }
 0x2f3   : > { %v1609_v59 = vpop.xlane.xlu1 %1608 }
 0x2f4   : > { %8048 = vpow2.f32 %v1667_v58  ;;  %v1651_v62 = vsub.f32 %v9198_v21, %v1609_v59 }
 0x2f6   : > { %v1669_v63 = vmul.f32 1.442695, %v1651_v62 }
 0x2f7   : > { %v1612_v9 = vpop.xlane.xlu1 %1611 }
 0x2f8   : > { %8050 = vpow2.f32 %v1669_v63  ;;  %v1652_v39 = vsub.f32 %v9202_v24, %v1612_v9 }
 0x2fa   : > { %v1671_v10 = vmul.f32 1.442695, %v1652_v39 }
 0x2fb   : > { %v1615_v14 = vpop.xlane.xlu0 %1614 }
 0x2fc   : > { %8052 = vpow2.f32 %v1671_v10  ;;  %v1653_v29 = vsub.f32 %v9206_v27, %v1615_v14 }
 0x2fd   : > { %v9259_v23 = vpop.eup %8046 }
 0x2fe   : > { %v1673_v25 = vmul.f32 1.442695, %v1653_v29  ;;  %v1697_v7 = vsel %vm1600_vm2, %v9259_v23, 0.0 }
 0x2ff   : > { %v1618_v28 = vpop.xlane.xlu1 %1617  ;;  %1698 = vadd.xlane.f32.xlu0 %v1697_v7 }
 0x300   : > { %8054 = vpow2.f32 %v1673_v25  ;;  %v1654_v21 = vsub.f32 %v9210_v33, %v1618_v28 }
 0x301   : > { %v9264_v31 = vpop.eup %8048 }
 0x302   : > { %v1675_v40 = vmul.f32 1.442695, %v1654_v21  ;;  %v1700_v24 = vsel %vm1600_vm2, %v9264_v31, 0.0 }
 0x303   : > { %v1621_v43 = vpop.xlane.xlu0 %1620  ;;  %1701 = vadd.xlane.f32.xlu1 %v1700_v24 }
 0x304   : > { %8056 = vpow2.f32 %v1675_v40  ;;  %v1655_v27 = vsub.f32 %v9214_v41, %v1621_v43 }
 0x305   : > { %v9269_v45 = vpop.eup %8050 }
 0x306   : > { %v1677_v52 = vmul.f32 1.442695, %v1655_v27  ;;  %v1703_v53 = vsel %vm1600_vm2, %v9269_v45, 0.0 }
 0x307   : > { %v1624_v55 = vpop.xlane.xlu1 %1623  ;;  %1704 = vadd.xlane.f32.xlu0 %v1703_v53 }
 0x308   : > { %8058 = vpow2.f32 %v1677_v52  ;;  %v1656_v33 = vsub.f32 %v9218_v50, %v1624_v55 }
 0x309   : > { %v9274_v56 = vpop.eup %8052 }
 0x30a   : > { %v1679_v58 = vmul.f32 1.442695, %v1656_v33  ;;  %v1706_v59 = vsel %vm1600_vm2, %v9274_v56, 0.0 }
 0x30b   : > { %v1627_v62 = vpop.xlane.xlu0 %1626  ;;  %1707 = vadd.xlane.f32.xlu1 %v1706_v59 }
 0x30c   : > { %8060 = vpow2.f32 %v1679_v58  ;;  %v1657_v41 = vsub.f32 %v9222_v54, %v1627_v62 }
 0x30d   : > { %v9279_v63 = vpop.eup %8054 }
 0x30e   : > { %v1681_v9 = vmul.f32 1.442695, %v1657_v41  ;;  %v1709_v39 = vsel %vm1600_vm2, %v9279_v63, 0.0 }
 0x30f   : > { %v1630_v10 = vpop.xlane.xlu1 %1629  ;;  %1710 = vadd.xlane.f32.xlu0 %v1709_v39 }
 0x310   : > { %8062 = vpow2.f32 %v1681_v9  ;;  %v1658_v50 = vsub.f32 %v9226_v57, %v1630_v10 }
 0x311   : > { %v9284_v14 = vpop.eup %8056 }
 0x312   : > { %v1683_v29 = vmul.f32 1.442695, %v1658_v50  ;;  %v1712_v25 = vsel %vm1600_vm2, %v9284_v14, 0.0 }
 0x313   : > { %v1633_v7 = vpop.xlane.xlu0 %1632  ;;  %1713 = vadd.xlane.f32.xlu1 %v1712_v25 }
 0x314   : > { %8064 = vpow2.f32 %v1683_v29  ;;  %v1659_v54 = vsub.f32 %v9230_v42, %v1633_v7 }
 0x315   : > { %v9289_v28 = vpop.eup %8058 }
 0x316   : > { %v1685_v21 = vmul.f32 1.442695, %v1659_v54  ;;  %v1715_v40 = vsel %vm1600_vm2, %v9289_v28, 0.0 }
 0x317   : > { %v1636_v24 = vpop.xlane.xlu1 %1635  ;;  %1716 = vadd.xlane.f32.xlu0 %v1715_v40 }
 0x318   : > { %8066 = vpow2.f32 %v1685_v21  ;;  %v1660_v57 = vsub.f32 %v9234_v12, %v1636_v24 }
 0x319   : > { %v9294_v43 = vpop.eup %8060 }
 0x31a   : > { %v1687_v27 = vmul.f32 1.442695, %v1660_v57  ;;  %v1718_v52 = vsel %vm1600_vm2, %v9294_v43, 0.0 }
 0x31b   : > { %v1639_v53 = vpop.xlane.xlu0 %1638  ;;  %1719 = vadd.xlane.f32.xlu1 %v1718_v52 }
 0x31c   : > { %8068 = vpow2.f32 %v1687_v27  ;;  %v1661_v42 = vsub.f32 %v9238_v47, %v1639_v53 }
 0x31d   : > { %v9299_v55 = vpop.eup %8062 }
 0x31e   : > { %v1689_v33 = vmul.f32 1.442695, %v1661_v42  ;;  %v1721_v58 = vsel %vm1600_vm2, %v9299_v55, 0.0 }
 0x31f   : > { %v1642_v59 = vpop.xlane.xlu1 %1641  ;;  %1722 = vadd.xlane.f32.xlu0 %v1721_v58 }
 0x320   : > { %8070 = vpow2.f32 %v1689_v33  ;;  %v1662_v12 = vsub.f32 %v9242_v22, %v1642_v59 }
 0x321   : > { %v9304_v62 = vpop.eup %8064 }
 0x322   : > { %v1691_v41 = vmul.f32 1.442695, %v1662_v12  ;;  %v1724_v9 = vsel %vm1600_vm2, %v9304_v62, 0.0 }
 0x323   : > { %v1645_v39 = vpop.xlane.xlu0 %1644  ;;  %1725 = vadd.xlane.f32.xlu1 %v1724_v9 }
 0x324   : > { %8072 = vpow2.f32 %v1691_v41  ;;  %v1663_v47 = vsub.f32 %v9246_v26, %v1645_v39 }
 0x325   : > { %v9309_v10 = vpop.eup %8066 }
 0x326   : > { %v1693_v50 = vmul.f32 1.442695, %v1663_v47  ;;  %v1727_v29 = vsel %vm1600_vm2, %v9309_v10, 0.0 }
 0x327   : > { %1728 = vadd.xlane.f32.xlu0 %v1727_v29  ;;  %v1648_v57 = vpop.xlane.xlu1 %1647 }
 0x328   : > { %8074 = vpow2.f32 %v1693_v50  ;;  %v1664_v27 = vsub.f32 %v9250_v36, %v1648_v57 }
 0x329   : > { %v9313_v22 = vpop.eup %8068 }
 0x32a   : > { %v1730_v25 = vsel %vm1600_vm2, %v9313_v22, 0.0  ;;  %v1695_v52 = vmul.f32 1.442695, %v1664_v27 }
 0x32b   : > { %1731 = vadd.xlane.f32.xlu1 %v1730_v25 }
 0x32c   : > { %8076 = vpow2.f32 %v1695_v52 }
 0x32d   : > { %v9317_v7 = vpop.eup %8070 }
 0x32e   : > { %v1733_v54 = vsel %vm1600_vm2, %v9317_v7, 0.0 }
 0x32f   : > { %1734 = vadd.xlane.f32.xlu0 %v1733_v54 }
 0x331   : > { %v9321_v26 = vpop.eup %8072 }
 0x332   : > { %v1736_v21 = vsel %vm1600_vm2, %v9321_v26, 0.0 }
 0x333   : > { %1737 = vadd.xlane.f32.xlu1 %v1736_v21 }
 0x335   : > { %v9325_v40 = vpop.eup %8074 }
 0x336   : > { %v1739_v24 = vsel %vm1600_vm2, %v9325_v40, 0.0 }
 0x337   : > { %1740 = vadd.xlane.f32.xlu0 %v1739_v24 }
 0x339   : > { %v9348_v53 = vpop.eup %8076 }
 0x33a   : > { %v1742_v36 = vsel %vm1600_vm2, %v9348_v53, 0.0 }
 0x344   : > { %2218 = vrot.lane.b32.xlu1 %v9035_v32, %s8655_s7 }
 0x348   : > { %2162 = vrot.lane.b32.xlu1 %v9032_v30, %s8655_s7 }
 0x34d   : > { %2165 = vrot.lane.b32.xlu0 %v9022_v17, %s8655_s7 }
 0x351   : > { %2215 = vrot.lane.b32.xlu0 %v9056_v49, %s8655_s7 }
 0x355   : > { %2268 = vrot.lane.b32.xlu0 %v9077_v13, %s8655_s7 }
 0x359   : > { %2321 = vrot.lane.b32.xlu0 %v9100_v44, %s8655_s7 }
 0x35d   : > { %2374 = vrot.lane.b32.xlu0 %v9123_v11, %s8655_s7 }
 0x361   : > { %2427 = vrot.lane.b32.xlu0 %v9140_v35, %s8655_s7 }
 0x365   : > { %2480 = vrot.lane.b32.xlu0 %v9163_v61, %s8655_s7 }
 0x36c   : > { %1743 = vadd.xlane.f32.xlu1 %v1742_v36 }
 0x37d   : > { %2271 = vrot.lane.b32.xlu1 %v9059_v51, %s8655_s7 }
 0x381   : > { %2324 = vrot.lane.b32.xlu1 %v9080_v15, %s8655_s7 }
 0x385   : > { %2377 = vrot.lane.b32.xlu1 %v9103_v46, %s8655_s7 }
 0x388   : > { %v1699_v42 = vpop.xlane.xlu0 %1698 }
 0x389   : > { %2430 = vrot.lane.b32.xlu1 %v9126_v19, %s8655_s7  ;;  %8078 = vrcp.f32 %v1699_v42 }
 0x38c   : > { %v1702_v33 = vpop.xlane.xlu1 %1701 }
 0x38d   : > { %8080 = vrcp.f32 %v1702_v33  ;;  %2483 = vrot.lane.b32.xlu1 %v9143_v37, %s8655_s7 }
 0x390   : > { %v1705_v58 = vpop.xlane.xlu0 %1704 }
 0x391   : > { %2536 = vrot.lane.b32.xlu1 %v9165_v34, %s8655_s7  ;;  %8082 = vrcp.f32 %v1705_v58 }
 0x394   : > { %v1708_v59 = vpop.xlane.xlu1 %1707 }
 0x395   : > { %8084 = vrcp.f32 %v1708_v59  ;;  %2533 = vrot.lane.b32.xlu1 %v9180_v0, %s8655_s7 }
 0x396   : > { %v8079_v12 = vpop.eup %8078 }
 0x397   : > { %v1777_v39 = vmul.f32 %v8079_v12, %v9259_v23 }
 0x398   : > { %v1711_v41 = vpop.xlane.xlu0 %1710 }
 0x399   : > { %8086 = vrcp.f32 %v1711_v41 }
 0x39a   : > { %v8081_v9 = vpop.eup %8080 }
 0x39b   : > { %v1778_v47 = vmul.f32 %v8081_v9, %v9264_v31 }
 0x39c   : > { %v1714_v50 = vpop.xlane.xlu1 %1713 }
 0x39d   : > { %8088 = vrcp.f32 %v1714_v50  ;;  %v1793_v29 = vpack.c.bf16 %v1778_v47, %v1777_v39 }
 0x39e   : > { %v8083_v25 = vpop.eup %8082 }
 0x39f   : > { %7352 = vmatmul.mubr.msk.bf16.vlgmr.msra.gmra.mxu0 %vm1600_vm2, %v1793_v29  ;;  %v1779_v23 = vmul.f32 %v8083_v25, %v9269_v45 }
 0x3a0   : > { %7362 = vmatpush3.bf16.msra.mxu0 %v9082_v16  ;;  %v1717_v54 = vpop.xlane.xlu0 %1716  ;;  %7363 = vmatprep.mubr.msk.bf16.mxu0 %vm8654_vm0, %v11119_v1 }
 0x3a1   : > { %7373 = vmatprep.subr.bf16.mxu0 %v11119_v1  ;;  %8090 = vrcp.f32 %v1717_v54 }
 0x3a2   : > { %v8085_v21 = vpop.eup %8084 }
 0x3a3   : > { %v1780_v31 = vmul.f32 %v8085_v21, %v9274_v56 }
 0x3a4   : > { %v1720_v24 = vpop.xlane.xlu1 %1719 }
 0x3a5   : > { %8092 = vrcp.f32 %v1720_v24  ;;  %v1794_v57 = vpack.c.bf16 %v1780_v31, %v1779_v23 }
 0x3a6   : > { %v8087_v27 = vpop.eup %8086 }
 0x3a7   : > { %7358 = vmatmul.mubr.msk.bf16.vlgmr.msra.gmra.mxu1 %vm1600_vm2, %v1794_v57  ;;  %v1781_v45 = vmul.f32 %v8087_v27, %v9279_v63 }
 0x3a8   : > { %7368 = vmatpush3.bf16.msra.mxu1 %v9074_v6  ;;  %v1723_v52 = vpop.xlane.xlu0 %1722  ;;  %7369 = vmatprep.mubr.msk.bf16.mxu1 %vm8654_vm0, %v11119_v1 }
 0x3a9   : > { %7379 = vmatprep.subr.bf16.mxu1 %v11119_v1  ;;  %8094 = vrcp.f32 %v1723_v52 }
 0x3aa   : > { %v8089_v36 = vpop.eup %8088 }
 0x3ab   : > { %v1782_v56 = vmul.f32 %v8089_v36, %v9284_v14 }
 0x3ac   : > { %v1726_v42 = vpop.xlane.xlu1 %1725 }
 0x3ad   : > { %8096 = vrcp.f32 %v1726_v42  ;;  %v1795_v33 = vpack.c.bf16 %v1782_v56, %v1781_v45 }
 0x3ae   : > { %v8091_v58 = vpop.eup %8090 }
 0x3af   : > { %7364 = vmatmul.mubr.msk.bf16.vlgmr.msra.gmra.mxu0 %vm1600_vm2, %v1795_v33  ;;  %v1783_v63 = vmul.f32 %v8091_v58, %v9289_v28 }
 0x3b0   : > { %7374 = vmatpush3.bf16.msra.mxu0 %v9105_v48  ;;  %v1729_v59 = vpop.xlane.xlu0 %1728  ;;  %7375 = vmatprep.mubr.msk.bf16.mxu0 %vm8654_vm0, %v11119_v1 }
 0x3b1   : > { %7385 = vmatprep.subr.bf16.mxu0 %v11119_v1  ;;  %8098 = vrcp.f32 %v1729_v59 }
 0x3b2   : > { %v8093_v12 = vpop.eup %8092 }
 0x3b3   : > { %v1784_v14 = vmul.f32 %v8093_v12, %v9294_v43 }
 0x3b4   : > { %v1732_v41 = vpop.xlane.xlu1 %1731 }
 0x3b5   : > { %8100 = vrcp.f32 %v1732_v41  ;;  %v1796_v9 = vpack.c.bf16 %v1784_v14, %v1783_v63 }
 0x3b6   : > { %v8095_v39 = vpop.eup %8094 }
 0x3b7   : > { %7370 = vmatmul.mubr.msk.bf16.vlgmr.msra.gmra.mxu1 %vm1600_vm2, %v1796_v9  ;;  %v1785_v28 = vmul.f32 %v8095_v39, %v9299_v55 }
 0x3b8   : > { %7380 = vmatpush3.bf16.msra.mxu1 %v9097_v38  ;;  %v1735_v47 = vpop.xlane.xlu0 %1734  ;;  %7381 = vmatprep.mubr.msk.bf16.mxu1 %vm8654_vm0, %v11119_v1 }
 0x3b9   : > { %7391 = vmatprep.subr.bf16.mxu1 %v11119_v1  ;;  %8102 = vrcp.f32 %v1735_v47 }
 0x3ba   : > { %v8097_v50 = vpop.eup %8096 }
 0x3bb   : > { %v1786_v43 = vmul.f32 %v8097_v50, %v9304_v62 }
 0x3bc   : > { %v1738_v29 = vpop.xlane.xlu1 %1737 }
 0x3bd   : > { %8104 = vrcp.f32 %v1738_v29  ;;  %v1797_v25 = vpack.c.bf16 %v1786_v43, %v1785_v28 }
 0x3be   : > { %v8099_v54 = vpop.eup %8098 }
 0x3bf   : > { %7376 = vmatmul.mubr.msk.bf16.vlgmr.msra.gmra.mxu0 %vm1600_vm2, %v1797_v25  ;;  %v1787_v23 = vmul.f32 %v8099_v54, %v9309_v10 }
 0x3c0   : > { %7386 = vmatpush3.bf16.msra.mxu0 %v9128_v20  ;;  %7387 = vmatprep.mubr.msk.bf16.mxu0 %vm8654_vm0, %v11119_v1  ;;  %v1741_v62 = vpop.xlane.xlu0 %1740  ;;  %v2219_v45 = vpop.permute.xlu1 %2218 }
 0x3c1   : > { %7397 = vmatprep.subr.bf16.mxu0 %v11119_v1  ;;  %8106 = vrcp.f32 %v1741_v62  ;;  %v2224_v29 = vsel %vm1223_vm1, %v2219_v45, 0 }
 0x3c2   : > { %v8101_v21 = vpop.eup %8100 }
 0x3c3   : > { %v1788_v55 = vmul.f32 %v8101_v21, %v9313_v22 }
 0x3c4   : > { %v2166_v10 = vpop.permute.xlu0 %2165  ;;  %v2163_v56 = vpop.permute.xlu1 %2162 }
 0x3c5   : > { %v1798_v31 = vpack.c.bf16 %v1788_v55, %v1787_v23  ;;  %v2171_v22 = vsel %vm1223_vm1, %v2166_v10, 0 }
 0x3c6   : > { %v8103_v24 = vpop.eup %8102 }
 0x3c7   : > { %7382 = vmatmul.mubr.msk.bf16.vlgmr.msra.gmra.mxu1 %vm1600_vm2, %v1798_v31  ;;  %v1789_v27 = vmul.f32 %v8103_v24, %v9317_v7 }
 0x3c8   : > { %7392 = vmatpush3.bf16.msra.mxu1 %v9120_v5  ;;  %7393 = vmatprep.mubr.msk.bf16.mxu1 %vm8654_vm0, %v11119_v1  ;;  %v2216_v7 = vpop.permute.xlu0 %2215 }
 0x3c9   : > { %7403 = vmatprep.subr.bf16.mxu1 %v11119_v1 }
 0x3ca   : > { %v8105_v57 = vpop.eup %8104 }
 0x3cb   : > { %v1790_v52 = vmul.f32 %v8105_v57, %v9321_v26 }
 0x3cc   : > { %v2269_v42 = vpop.permute.xlu0 %2268 }
 0x3cd   : > { %v1799_v36 = vpack.c.bf16 %v1790_v52, %v1789_v27 }
 0x3ce   : > { %v8107_v63 = vpop.eup %8106 }
 0x3cf   : > { %7388 = vmatmul.mubr.msk.bf16.vlgmr.msra.gmra.mxu0 %vm1600_vm2, %v1799_v36  ;;  %v1791_v39 = vmul.f32 %v8107_v63, %v9325_v40 }
 0x3d0   : > { %7398 = vmatpush3.bf16.xpose.msra.mxu0 %v2171_v22  ;;  %7399 = vmatprep.mubr.msk.bf16.mxu0 %vm8654_vm0, %v11119_v1  ;;  %v2322_v12 = vpop.permute.xlu0 %2321 }
 0x3d1   : > { %7409 = vmatprep.subr.bf16.mxu0 %v11119_v1 }
 0x3d4   : > { %v2375_v50 = vpop.permute.xlu0 %2374 }
 0x3d7   : > { %7400 = vmatmul.mubr.msk.bf16.vlgmr.msra.gmra.mxu0 %vm1223_vm1, %v2163_v56 }
 0x3d8   : > { %7411 = vmatprep.mubr.msk.bf16.mxu0 %vm8654_vm0, %v11119_v1  ;;  %v2428_v40 = vpop.permute.xlu0 %2427 }
 0x3dc   : > { %v2481_v21 = vpop.permute.xlu0 %2480 }
 0x3f5   : > { %v1744_v26 = vpop.xlane.xlu1 %1743 }
 0x3f6   : > { %8108 = vrcp.f32 %v1744_v26 }
 0x3f9   : > { %v2272_v33 = vpop.permute.xlu1 %2271 }
 0x3fa   : > { %v2277_v58 = vsel %vm1223_vm1, %v2272_v33, 0 }
 0x3fb   : > { %7410 = vmatpush3.bf16.xpose.msra.mxu0 %v2277_v58 }
 0x3fc   : > { %7421 = vmatprep.subr.bf16.mxu0 %v11119_v1 }
 0x3fd   : > { %v2325_v59 = vpop.permute.xlu1 %2324 }
 0x401   : > { %v2378_v14 = vpop.permute.xlu1 %2377 }
 0x402   : > { %v2383_v41 = vsel %vm1223_vm1, %v2378_v14, 0  ;;  %7412 = vmatmul.mubr.msk.bf16.vlgmr.msra.gmra.mxu0 %vm1223_vm1, %v2269_v42 }
 0x403   : > { %v8109_v9 = vpop.eup %8108  ;;  %7422 = vmatpush3.bf16.xpose.msra.mxu0 %v2383_v41  ;;  %7423 = vmatprep.mubr.msk.bf16.mxu0 %vm8654_vm0, %v11119_v1 }
 0x404   : > { %v1792_v47 = vmul.f32 %v8109_v9, %v9348_v53  ;;  %7433 = vmatprep.subr.bf16.mxu0 %v11119_v1  ;;  %v2330_v53 = vsel %vm1223_vm1, %v2325_v59, 0 }
 0x405   : > { %v2431_v28 = vpop.permute.xlu1 %2430 }
 0x406   : > { %v1800_v43 = vpack.c.bf16 %v1792_v47, %v1791_v39  ;;  %v2436_v23 = vsel %vm1223_vm1, %v2431_v28, 0 }
 0x408   : > { %7394 = vmatmul.mubr.msk.bf16.vlgmr.msra.gmra.mxu1 %vm1600_vm2, %v1800_v43 }
 0x409   : > { %7404 = vmatpush3.bf16.xpose.msra.mxu1 %v2224_v29  ;;  %v2484_v25 = vpop.permute.xlu1 %2483  ;;  %7405 = vmatprep.mubr.msk.bf16.mxu1 %vm8654_vm0, %v11119_v1 }
 0x40a   : > { %v2489_v54 = vsel %vm1223_vm1, %v2484_v25, 0  ;;  %7424 = vmatmul.mubr.msk.bf16.vlgmr.msra.gmra.mxu0 %vm1223_vm1, %v2375_v50  ;;  %7415 = vmatprep.subr.bf16.mxu1 %v11119_v1 }
 0x40b   : > { %7434 = vmatpush3.bf16.xpose.msra.mxu0 %v2489_v54  ;;  %7435 = vmatprep.mubr.msk.bf16.mxu0 %vm8654_vm0, %v11119_v1 }
 0x40c   : > { %7445 = vmatprep.subr.bf16.mxu0 %v11119_v1 }
 0x40d   : > { %v2537_v55 = vpop.permute.xlu1 %2536 }
 0x40e   : > { %v2542_v31 = vsel %vm1223_vm1, %v2537_v55, 0 }
 0x410   : > { %7406 = vmatmul.mubr.msk.bf16.vlgmr.msra.gmra.mxu1 %vm1223_vm1, %v2216_v7 }
 0x411   : > { %7416 = vmatpush3.bf16.xpose.msra.mxu1 %v2330_v53  ;;  %7417 = vmatprep.mubr.msk.bf16.mxu1 %vm8654_vm0, %v11119_v1  ;;  %v2534_v62 = vpop.permute.xlu1 %2533 }
 0x412   : > { %7436 = vmatmul.mubr.msk.bf16.vlgmr.msra.gmra.mxu0 %vm1223_vm1, %v2481_v21  ;;  %7427 = vmatprep.subr.bf16.mxu1 %v11119_v1 }
 0x413   : > { %7447 = vmatprep.mubr.msk.bf16.mxu0 %vm8654_vm0, %v11119_v1 }
 0x418   : > { %7418 = vmatmul.mubr.msk.bf16.vlgmr.msra.gmra.mxu1 %vm1223_vm1, %v2322_v12 }
 0x419   : > { %7428 = vmatpush3.bf16.xpose.msra.mxu1 %v2436_v23  ;;  %7429 = vmatprep.mubr.msk.bf16.mxu1 %vm8654_vm0, %v11119_v1 }
 0x41a   : > { %7439 = vmatprep.subr.bf16.mxu1 %v11119_v1 }
 0x420   : > { %7430 = vmatmul.mubr.msk.bf16.vlgmr.msra.gmra.mxu1 %vm1223_vm1, %v2428_v40 }
 0x421   : > { %7440 = vmatpush3.bf16.xpose.msra.mxu1 %v2542_v31  ;;  %7441 = vmatprep.mubr.msk.bf16.mxu1 %vm8654_vm0, %v11119_v1 }
 0x422   : > { %7451 = vmatprep.subr.bf16.mxu1 %v11119_v1 }
 0x428   : > { %7442 = vmatmul.mubr.msk.bf16.vlgmr.msra.gmra.mxu1 %vm1223_vm1, %v2534_v62 }
 0x429   : > { %7453 = vmatprep.mubr.msk.bf16.mxu1 %vm8654_vm0, %v11119_v1 }
 0x45f   : > { %v9458_v24 = vpop.f32.mrf.mxu0 }
 0x460   : > { %11171 = vst [vmem:[#allocation26_spill] sm:$0xff] %v9458_v24 }
 0x461   : > { %v7353_v57 = vpop.f32.mrf.mxu0 }
 0x463   : > { %v9460_v27 = vpop.f32.mrf.mxu0 }
 0x464   : > { %11172 = vst [vmem:[#allocation27_spill] sm:$0xff] %v9460_v27 }
 0x465   : > { %v7354_v52 = vpop.f32.mrf.mxu0 }
 0x467   : > { %v9462_v10 = vpop.f32.mrf.mxu1 }
 0x468   : > { %11173 = vst [vmem:[#allocation28_spill] sm:$0xff] %v9462_v10 }
 0x469   : > { %v7359_v36 = vpop.f32.mrf.mxu1 }
 0x46b   : > { %v9464_v22 = vpop.f32.mrf.mxu1 }
 0x46c   : > { %11174 = vst [vmem:[#allocation29_spill] sm:$0xff] %v9464_v22 }
 0x46d   : > { %v7360_v45 = vpop.f32.mrf.mxu1 }
 0x46f   : > { %v9466_v56 = vpop.f32.mrf.mxu0 }
 0x470   : > { %11175 = vst [vmem:[#allocation30_spill] sm:$0xff] %v9466_v56 }
 0x471   : > { %v7365_v7 = vpop.f32.mrf.mxu0 }
 0x473   : > { %v9468_v26 = vpop.f32.mrf.mxu0 }
 0x474   : > { %11176 = vst [vmem:[#allocation31_spill] sm:$0xff] %v9468_v26 }
 0x475   : > { %v7366_v42 = vpop.f32.mrf.mxu0 }
 0x477   : > { %v9470_v33 = vpop.f32.mrf.mxu1 }
 0x478   : > { %11177 = vst [vmem:[#allocation32_spill] sm:$0xff] %v9470_v33 }
 0x479   : > { %v7371_v58 = vpop.f32.mrf.mxu1 }
 0x47b   : > { %v9472_v59 = vpop.f32.mrf.mxu1 }
 0x47c   : > { %11178 = vst [vmem:[#allocation33_spill] sm:$0xff] %v9472_v59 }
 0x47d   : > { %v7372_v12 = vpop.f32.mrf.mxu1 }
 0x47f   : > { %v9474_v63 = vpop.f32.mrf.mxu0 }
 0x480   : > { %11179 = vst [vmem:[#allocation34_spill] sm:$0xff] %v9474_v63 }
 0x481   : > { %v7377_v14 = vpop.f32.mrf.mxu0 }
 0x483   : > { %v9476_v41 = vpop.f32.mrf.mxu0 }
 0x484   : > { %11180 = vst [vmem:[#allocation35_spill] sm:$0xff] %v9476_v41 }
 0x485   : > { %v7378_v9 = vpop.f32.mrf.mxu0 }
 0x487   : > { %v9478_v39 = vpop.f32.mrf.mxu1 }
 0x488   : > { %11181 = vst [vmem:[#allocation36_spill] sm:$0xff] %v9478_v39 }
 0x489   : > { %v7383_v47 = vpop.f32.mrf.mxu1 }
 0x48b   : > { %v9480_v50 = vpop.f32.mrf.mxu1 }
 0x48c   : > { %11182 = vst [vmem:[#allocation37_spill] sm:$0xff] %v9480_v50 }
 0x48d   : > { %v7384_v28 = vpop.f32.mrf.mxu1 }
 0x48f   : > { %v9482_v43 = vpop.f32.mrf.mxu0 }
 0x490   : > { %11183 = vst [vmem:[#allocation38_spill] sm:$0xff] %v9482_v43 }
 0x491   : > { %v7389_v29 = vpop.f32.mrf.mxu0 }
 0x493   : > { %v9484_v25 = vpop.f32.mrf.mxu0 }
 0x494   : > { %11184 = vst [vmem:[#allocation39_spill] sm:$0xff] %v9484_v25 }
 0x495   : > { %v7390_v54 = vpop.f32.mrf.mxu0 }
 0x497   : > { %v9486_v40 = vpop.f32.mrf.mxu0 }
 0x498   : > { %v2585_v53 = vsel %vm1600_vm2, %v9486_v40, -inf }
 0x499   : > { %2586 = vmax.xlane.f32.xlu0 %v2585_v53  ;;  %v7401_v21 = vpop.f32.mrf.mxu0 }
 0x49b   : > { %v9490_v23 = vpop.f32.mrf.mxu0 }
 0x49c   : > { %v2588_v55 = vsel %vm1600_vm2, %v9490_v23, -inf }
 0x49d   : > { %2589 = vmax.xlane.f32.xlu1 %v2588_v55  ;;  %v7402_v31 = vpop.f32.mrf.mxu0 }
 0x4c2   : > { %v9494_v62 = vpop.f32.mrf.mxu0 }
 0x4c4   : > { %v7413_v57 = vpop.f32.mrf.mxu0 }
 0x4c6   : > { %v9496_v52 = vpop.f32.mrf.mxu0 }
 0x4c7   : > { %v2600_v36 = vsel %vm1600_vm2, %v9496_v52, -inf }
 0x4c8   : > { %2601 = vmax.xlane.f32.xlu1 %v2600_v36  ;;  %v9500_v45 = vpop.f32.mrf.mxu1  ;;  %v7414_v7 = vpop.f32.mrf.mxu0 }
 0x4c9   : > { %11185 = vst [vmem:[#allocation40_spill] sm:$0xff] %v9500_v45 }
 0x4ca   : > { %v7395_v42 = vpop.f32.mrf.mxu1  ;;  %v9502_v58 = vpop.f32.mrf.mxu0 }
 0x4cc   : > { %v9504_v12 = vpop.f32.mrf.mxu1  ;;  %v7425_v14 = vpop.f32.mrf.mxu0 }
 0x4cd   : > { %11186 = vst [vmem:[#allocation41_spill] sm:$0xff] %v9504_v12 }
 0x4ce   : > { %v7396_v9 = vpop.f32.mrf.mxu1  ;;  %v9506_v47 = vpop.f32.mrf.mxu0 }
 0x4cf   : > { %v2597_v9 = vsel %vm1600_vm2, %v9494_v62, -inf }
 0x4d0   : > { %v9508_v28 = vpop.f32.mrf.mxu1  ;;  %v7426_v29 = vpop.f32.mrf.mxu0 }
 0x4d1   : > { %v2591_v54 = vsel %vm1600_vm2, %v9508_v28, -inf }
 0x4d2   : > { %v9512_v53 = vpop.f32.mrf.mxu0  ;;  %2592 = vmax.xlane.f32.xlu0 %v2591_v54  ;;  %v7407_v21 = vpop.f32.mrf.mxu1 }
 0x4d3   : > { %v2621_v18 = vsel %vm1600_vm2, %v9512_v53, -inf }
 0x4d4   : > { %v9514_v55 = vpop.f32.mrf.mxu1  ;;  %v7437_v31 = vpop.f32.mrf.mxu0 }
 0x4d5   : > { %v2594_v57 = vsel %vm1600_vm2, %v9514_v55, -inf }
 0x4d6   : > { %v9518_v36 = vpop.f32.mrf.mxu0  ;;  %2595 = vmax.xlane.f32.xlu0 %v2594_v57  ;;  %v7408_v7 = vpop.f32.mrf.mxu1 }
 0x4d8   : > { %v9520_v42 = vpop.f32.mrf.mxu1  ;;  %v7438_v14 = vpop.f32.mrf.mxu0 }
 0x4d9   : > { %v2603_v21 = vsel %vm1600_vm2, %v9520_v42, -inf  ;;  %v2609_v14 = vsel %vm1600_vm2, %v9502_v58, -inf }
 0x4da   : > { %2598 = vmax.xlane.f32.xlu0 %v2597_v9  ;;  %v7419_v29 = vpop.f32.mrf.mxu1  ;;  %v2612_v9 = vsel %vm1600_vm2, %v9506_v47, -inf }
 0x4dc   : > { %v9524_v54 = vpop.f32.mrf.mxu1 }
 0x4dd   : > { %v2606_v31 = vsel %vm1600_vm2, %v9524_v54, -inf }
 0x4de   : > { %2604 = vmax.xlane.f32.xlu0 %v2603_v21  ;;  %2607 = vmax.xlane.f32.xlu1 %v2606_v31  ;;  %v7420_v57 = vpop.f32.mrf.mxu1 }
 0x4e0   : > { %v9530_v7 = vpop.f32.mrf.mxu1 }
 0x4e1   : > { %v2615_v4 = vsel %vm1600_vm2, %v9530_v7, -inf }
 0x4e2   : > { %2610 = vmax.xlane.f32.xlu0 %v2609_v14  ;;  %2613 = vmax.xlane.f32.xlu1 %v2612_v9  ;;  %v7431_v29 = vpop.f32.mrf.mxu1  ;;  %v2624_v14 = vsel %vm1600_vm2, %v9518_v36, -inf }
 0x4e4   : > { %v9536_v8 = vpop.f32.mrf.mxu1 }
 0x4e5   : > { %v2618_v21 = vsel %vm1600_vm2, %v9536_v8, -inf }
 0x4e6   : > { %2616 = vmax.xlane.f32.xlu0 %v2615_v4  ;;  %2619 = vmax.xlane.f32.xlu1 %v2618_v21  ;;  %v7432_v31 = vpop.f32.mrf.mxu1 }
 0x4e8   : > { %v9542_v57 = vpop.f32.mrf.mxu1 }
 0x4e9   : > { %v2627_v1 = vsel %vm1600_vm2, %v9542_v57, -inf }
 0x4ea   : > { %2622 = vmax.xlane.f32.xlu0 %v2621_v18  ;;  %2625 = vmax.xlane.f32.xlu1 %v2624_v14  ;;  %v7443_v9 = vpop.f32.mrf.mxu1 }
 0x4ec   : > { %v9548_v29 = vpop.f32.mrf.mxu1 }
 0x4ed   : > { %v2630_v31 = vsel %vm1600_vm2, %v9548_v29, -inf }
 0x4ee   : > { %2628 = vmax.xlane.f32.xlu0 %v2627_v1  ;;  %v7444_v4 = vpop.f32.mrf.mxu1 }
 0x4fb   : > { %2834 = vrot.lane.b32.xlu1 %v9182_v2, %s8655_s7 }
 0x4ff   : > { %2882 = vrot.lane.b32.xlu1 %v9082_v16, %s8655_s7 }
 0x503   : > { %2930 = vrot.lane.b32.xlu1 %v9074_v6, %s8655_s7 }
 0x504   : > { %2786 = vrot.lane.b32.xlu0 %v9161_v60, %s8655_s7 }
 0x507   : > { %3026 = vrot.lane.b32.xlu1 %v9097_v38, %s8655_s7 }
 0x508   : > { %2978 = vrot.lane.b32.xlu0 %v9105_v48, %s8655_s7 }
 0x50c   : > { %3074 = vrot.lane.b32.xlu0 %v9128_v20, %s8655_s7 }
 0x522   : > { %v2587_v18 = vpop.xlane.xlu0 %2586 }
 0x523   : > { %v2633_v1 = vsub.f32 %v9486_v40, %v2587_v18 }
 0x525   : > { %v2649_v21 = vmul.f32 1.442695, %v2633_v1 }
 0x526   : > { %v2590_v4 = vpop.xlane.xlu1 %2589 }
 0x527   : > { %8110 = vpow2.f32 %v2649_v21  ;;  %v2634_v3 = vsub.f32 %v9490_v23, %v2590_v4 }
 0x529   : > { %v2651_v45 = vmul.f32 1.442695, %v2634_v3 }
 0x52b   : > { %2631 = vmax.xlane.f32.xlu1 %v2630_v31  ;;  %8112 = vpow2.f32 %v2651_v45 }
 0x534   : > { %v9569_v14 = vpop.eup %8110 }
 0x535   : > { %v2681_v9 = vsel %vm1600_vm2, %v9569_v14, 0.0 }
 0x536   : > { %2682 = vadd.xlane.f32.xlu0 %v2681_v9 }
 0x538   : > { %v9576_v1 = vpop.eup %8112 }
 0x539   : > { %v2684_v9 = vsel %vm1600_vm2, %v9576_v1, 0.0 }
 0x53c   : > { %3122 = vrot.lane.b32.xlu1 %v9120_v5, %s8655_s7 }
 0x551   : > { %v2602_v40 = vpop.xlane.xlu1 %2601 }
 0x552   : > { %v2638_v31 = vsub.f32 %v9496_v52, %v2602_v40 }
 0x554   : > { %v2659_v23 = vmul.f32 1.442695, %v2638_v31 }
 0x55b   : > { %v2593_v18 = vpop.xlane.xlu0 %2592 }
 0x55c   : > { %v2635_v21 = vsub.f32 %v9508_v28, %v2593_v18 }
 0x55e   : > { %v2653_v12 = vmul.f32 1.442695, %v2635_v21 }
 0x55f   : > { %v2596_v39 = vpop.xlane.xlu0 %2595 }
 0x560   : > { %8114 = vpow2.f32 %v2653_v12  ;;  %v2636_v50 = vsub.f32 %v9514_v55, %v2596_v39  ;;  %2685 = vadd.xlane.f32.xlu1 %v2684_v9 }
 0x562   : > { %v2655_v3 = vmul.f32 1.442695, %v2636_v50 }
 0x563   : > { %v2599_v45 = vpop.xlane.xlu0 %2598 }
 0x564   : > { %8116 = vpow2.f32 %v2655_v3  ;;  %v2637_v4 = vsub.f32 %v9494_v62, %v2599_v45 }
 0x565   : > { %8118 = vpow2.f32 %v2659_v23 }
 0x566   : > { %v2657_v43 = vmul.f32 1.442695, %v2637_v4 }
 0x567   : > { %v2605_v28 = vpop.xlane.xlu0 %2604  ;;  %v2608_v18 = vpop.xlane.xlu1 %2607 }
 0x568   : > { %8120 = vpow2.f32 %v2657_v43  ;;  %v2639_v52 = vsub.f32 %v9520_v42, %v2605_v28  ;;  %v2640_v40 = vsub.f32 %v9524_v54, %v2608_v18 }
 0x56a   : > { %v2661_v21 = vmul.f32 1.442695, %v2639_v52  ;;  %v2663_v12 = vmul.f32 1.442695, %v2640_v40 }
 0x56b   : > { %v2611_v25 = vpop.xlane.xlu0 %2610  ;;  %v2614_v39 = vpop.xlane.xlu1 %2613 }
 0x56c   : > { %8122 = vpow2.f32 %v2661_v21  ;;  %v2641_v50 = vsub.f32 %v9502_v58, %v2611_v25  ;;  %v2642_v55 = vsub.f32 %v9506_v47, %v2614_v39 }
 0x56d   : > { %v9588_v31 = vpop.eup %8114  ;;  %8124 = vpow2.f32 %v2663_v12 }
 0x56e   : > { %v2665_v62 = vmul.f32 1.442695, %v2641_v50  ;;  %v2667_v9 = vmul.f32 1.442695, %v2642_v55  ;;  %v2687_v43 = vsel %vm1600_vm2, %v9588_v31, 0.0 }
 0x56f   : > { %v2617_v42 = vpop.xlane.xlu0 %2616  ;;  %v2620_v23 = vpop.xlane.xlu1 %2619  ;;  %2688 = vadd.xlane.f32.xlu0 %v2687_v43 }
 0x570   : > { %8126 = vpow2.f32 %v2665_v62  ;;  %v2643_v54 = vsub.f32 %v9530_v7, %v2617_v42  ;;  %v2644_v3 = vsub.f32 %v9536_v8, %v2620_v23  ;;  %v11187_v62 = vmov 0.0  }
 0x571   : > { %v9594_v45 = vpop.eup %8116  ;;  %8128 = vpow2.f32 %v2667_v9 }
 0x572   : > { %v2669_v25 = vmul.f32 1.442695, %v2643_v54  ;;  %v2671_v58 = vmul.f32 1.442695, %v2644_v3  ;;  %v2690_v47 = vsel %vm1600_vm2, %v9594_v45, 0.0  ;;  %v9598_v4 = vpop.eup %8118 }
 0x573   : > { %v2623_v28 = vpop.xlane.xlu0 %2622  ;;  %v2626_v18 = vpop.xlane.xlu1 %2625  ;;  %2691 = vadd.xlane.f32.xlu1 %v2690_v47  ;;  %v2696_v39 = vsel %vm1600_vm2, %v9598_v4, 0.0 }
 0x574   : > { %8130 = vpow2.f32 %v2669_v25  ;;  %v2645_v52 = vsub.f32 %v9512_v53, %v2623_v28  ;;  %v2646_v7 = vsub.f32 %v9518_v36, %v2626_v18 }
 0x575   : > { %v9602_v40 = vpop.eup %8120  ;;  %8132 = vpow2.f32 %v2671_v58 }
 0x576   : > { %v2673_v8 = vmul.f32 1.442695, %v2645_v52  ;;  %v2675_v21 = vmul.f32 1.442695, %v2646_v7  ;;  %v2693_v12 = vsel %vm1600_vm2, %v9602_v40, 0.0 }
 0x577   : > { %v2835_v50 = vpop.permute.xlu1 %2834  ;;  %2694 = vadd.xlane.f32.xlu0 %v2693_v12  ;;  %v2629_v55 = vpop.xlane.xlu0 %2628  ;;  %2697 = vadd.xlane.f32.xlu1 %v2696_v39 }
 0x578   : > { %8134 = vpow2.f32 %v2673_v8  ;;  %v2647_v53 = vsub.f32 %v9542_v57, %v2629_v55  ;;  %7452 = vmatpush3.bf16.msra.mxu1 %v2835_v50 }
 0x579   : > { %v9609_v36 = vpop.eup %8122  ;;  %8136 = vpow2.f32 %v2675_v21  ;;  %7463 = vmatprep.subr.bf16.mxu1 %v11187_v62 }
 0x57a   : > { %v9612_v9 = vpop.eup %8124  ;;  %v2677_v43 = vmul.f32 1.442695, %v2647_v53  ;;  %v2699_v42 = vsel %vm1600_vm2, %v9609_v36, 0.0 }
 0x57b   : > { %2700 = vadd.xlane.f32.xlu0 %v2699_v42  ;;  %v2787_v23 = vpop.permute.xlu0 %2786  ;;  %v2702_v54 = vsel %vm1600_vm2, %v9612_v9, 0.0  ;;  %v2883_v55 = vpop.permute.xlu1 %2882 }
 0x57c   : > { %8138 = vpow2.f32 %v2677_v43  ;;  %2703 = vadd.xlane.f32.xlu1 %v2702_v54  ;;  %7446 = vmatpush3.bf16.msra.mxu0 %v2787_v23 }
 0x57d   : > { %v9618_v57 = vpop.eup %8126  ;;  %7457 = vmatprep.subr.bf16.mxu0 %v11187_v62 }
 0x57e   : > { %v9621_v3 = vpop.eup %8128  ;;  %v2705_v25 = vsel %vm1600_vm2, %v9618_v57, 0.0 }
 0x57f   : > { %2706 = vadd.xlane.f32.xlu0 %v2705_v25  ;;  %v2708_v58 = vsel %vm1600_vm2, %v9621_v3, 0.0  ;;  %v9655_v53 = vpop.permute.xlu1 %2930 }
 0x580   : > { %2709 = vadd.xlane.f32.xlu1 %v2708_v58 }
 0x581   : > { %v9627_v47 = vpop.eup %8130 }
 0x582   : > { %v9629_v28 = vpop.eup %8132  ;;  %v2711_v18 = vsel %vm1600_vm2, %v9627_v47, 0.0 }
 0x583   : > { %2712 = vadd.xlane.f32.xlu0 %v2711_v18  ;;  %v2714_v52 = vsel %vm1600_vm2, %v9629_v28, 0.0  ;;  %v9659_v43 = vpop.permute.xlu1 %3026 }
 0x584   : > { %2715 = vadd.xlane.f32.xlu1 %v2714_v52 }
 0x585   : > { %v9635_v7 = vpop.eup %8134 }
 0x586   : > { %v9637_v8 = vpop.eup %8136  ;;  %v2717_v21 = vsel %vm1600_vm2, %v9635_v7, 0.0 }
 0x587   : > { %2718 = vadd.xlane.f32.xlu0 %v2717_v21  ;;  %v2720_v12 = vsel %vm1600_vm2, %v9637_v8, 0.0 }
 0x588   : > { %2721 = vadd.xlane.f32.xlu1 %v2720_v12 }
 0x589   : > { %v9643_v39 = vpop.eup %8138 }
 0x58a   : > { %v2723_v50 = vsel %vm1600_vm2, %v9643_v39, 0.0 }
 0x58b   : > { %2724 = vadd.xlane.f32.xlu0 %v2723_v50 }
 0x599   : > { %3222 = vrot.lane.b32.xlu1 %v9035_v32, %s8656_s9 }
 0x5a1   : > { %3171 = vrot.lane.b32.xlu0 %v9022_v17, %s8656_s9 }
 0x5a5   : > { %3169 = vrot.lane.b32.xlu0 %v9032_v30, %s8656_s9 }
 0x5a9   : > { %3220 = vrot.lane.b32.xlu0 %v9056_v49, %s8656_s9 }
 0x5ad   : > { %3271 = vrot.lane.b32.xlu0 %v9077_v13, %s8656_s9 }
 0x5b1   : > { %3322 = vrot.lane.b32.xlu0 %v9100_v44, %s8656_s9 }
 0x5b4   : > { %v2632_v42 = vpop.xlane.xlu1 %2631 }
 0x5b5   : > { %v2648_v23 = vsub.f32 %v9548_v29, %v2632_v42  ;;  %3373 = vrot.lane.b32.xlu0 %v9123_v11, %s8656_s9  ;;  %v9676_v29 = vpop.permute.xlu0 %2978 }
 0x5b7   : > { %v2679_v54 = vmul.f32 1.442695, %v2648_v23 }
 0x5b8   : > { %v9684_v52 = vpop.permute.xlu1 %3122 }
 0x5b9   : > { %8140 = vpow2.f32 %v2679_v54  ;;  %3424 = vrot.lane.b32.xlu0 %v9140_v35, %s8656_s9  ;;  %v9680_v18 = vpop.permute.xlu0 %3074 }
 0x5bd   : > { %3475 = vrot.lane.b32.xlu0 %v9163_v61, %s8656_s9 }
 0x5bf   : > { %v2683_v21 = vpop.xlane.xlu0 %2682 }
 0x5c0   : > { %8142 = vrcp.f32 %v2683_v21 }
 0x5c6   : > { %v9670_v25 = vpop.eup %8140 }
 0x5c7   : > { %v2726_v58 = vsel %vm1600_vm2, %v9670_v25, 0.0 }
 0x5c8   : > { %2727 = vadd.xlane.f32.xlu1 %v2726_v58 }
 0x5cd   : > { %v8143_v50 = vpop.eup %8142 }
 0x5ce   : > { %v2761_v54 = vmul.f32 %v8143_v50, %v9569_v14 }
 0x5d9   : > { %3273 = vrot.lane.b32.xlu1 %v9059_v51, %s8656_s9 }
 0x5dd   : > { %3324 = vrot.lane.b32.xlu1 %v9080_v15, %s8656_s9 }
 0x5e1   : > { %3375 = vrot.lane.b32.xlu1 %v9103_v46, %s8656_s9 }
 0x5e5   : > { %3426 = vrot.lane.b32.xlu1 %v9126_v19, %s8656_s9 }
 0x5e9   : > { %3477 = vrot.lane.b32.xlu1 %v9143_v37, %s8656_s9  ;;  %v2686_v12 = vpop.xlane.xlu1 %2685 }
 0x5ea   : > { %8144 = vrcp.f32 %v2686_v12 }
 0x5ed   : > { %3528 = vrot.lane.b32.xlu1 %v9165_v34, %s8656_s9 }
 0x5f1   : > { %3526 = vrot.lane.b32.xlu1 %v9180_v0, %s8656_s9 }
 0x5f7   : > { %v8145_v42 = vpop.eup %8144 }
 0x5f8   : > { %v2689_v23 = vpop.xlane.xlu0 %2688  ;;  %v2762_v58 = vmul.f32 %v8145_v42, %v9576_v1 }
 0x5f9   : > { %8146 = vrcp.f32 %v2689_v23 }
 0x5fa   : > { %v2777_v63 = vpack.c.bf16 %v2762_v58, %v2761_v54 }
 0x5fc   : > { %7448 = vmatmul.mubr.msk.bf16.vlgmr.msra.gmra.mxu0 %vm1600_vm2, %v2777_v63  ;;  %v2692_v21 = vpop.xlane.xlu1 %2691 }
 0x5fd   : > { %7458 = vmatpush3.bf16.msra.mxu0 %v2883_v55  ;;  %8148 = vrcp.f32 %v2692_v21  ;;  %7459 = vmatprep.mubr.msk.bf16.mxu0 %vm8654_vm0, %v11187_v62 }
 0x5fe   : > { %7469 = vmatprep.subr.bf16.mxu0 %v11187_v62 }
 0x600   : > { %v2695_v12 = vpop.xlane.xlu0 %2694  ;;  %v2698_v41 = vpop.xlane.xlu1 %2697 }
 0x601   : > { %8150 = vrcp.f32 %v2695_v12 }
 0x602   : > { %8152 = vrcp.f32 %v2698_v41 }
 0x604   : > { %v2701_v33 = vpop.xlane.xlu0 %2700 }
 0x605   : > { %8154 = vrcp.f32 %v2701_v33  ;;  %v2704_v14 = vpop.xlane.xlu1 %2703 }
 0x606   : > { %8156 = vrcp.f32 %v2704_v14  ;;  %v8147_v1 = vpop.eup %8146 }
 0x607   : > { %v2763_v55 = vmul.f32 %v8147_v1, %v9588_v31 }
 0x608   : > { %v2707_v50 = vpop.xlane.xlu0 %2706 }
 0x609   : > { %8158 = vrcp.f32 %v2707_v50  ;;  %v2710_v63 = vpop.xlane.xlu1 %2709 }
 0x60a   : > { %v8149_v42 = vpop.eup %8148  ;;  %8160 = vrcp.f32 %v2710_v63 }
 0x60b   : > { %v2764_v23 = vmul.f32 %v8149_v42, %v9594_v45 }
 0x60c   : > { %v2713_v54 = vpop.xlane.xlu0 %2712 }
 0x60d   : > { %8162 = vrcp.f32 %v2713_v54  ;;  %v2716_v58 = vpop.xlane.xlu1 %2715  ;;  %v2778_v21 = vpack.c.bf16 %v2764_v23, %v2763_v55 }
 0x60e   : > { %v8151_v12 = vpop.eup %8150  ;;  %8164 = vrcp.f32 %v2716_v58 }
 0x60f   : > { %v8153_v41 = vpop.eup %8152  ;;  %7454 = vmatmul.mubr.msk.bf16.vlgmr.msra.gmra.mxu1 %vm1600_vm2, %v2778_v21  ;;  %v2765_v33 = vmul.f32 %v8151_v12, %v9602_v40 }
 0x610   : > { %7464 = vmatpush3.bf16.msra.mxu1 %v9655_v53  ;;  %v2719_v14 = vpop.xlane.xlu0 %2718  ;;  %v2766_v50 = vmul.f32 %v8153_v41, %v9598_v4  ;;  %7465 = vmatprep.mubr.msk.bf16.mxu1 %vm8654_vm0, %v11187_v62 }
 0x611   : > { %8166 = vrcp.f32 %v2719_v14  ;;  %v2722_v31 = vpop.xlane.xlu1 %2721  ;;  %7475 = vmatprep.subr.bf16.mxu1 %v11187_v62 }
 0x612   : > { %v8155_v45 = vpop.eup %8154  ;;  %8168 = vrcp.f32 %v2722_v31  ;;  %v2779_v1 = vpack.c.bf16 %v2766_v50, %v2765_v33 }
 0x613   : > { %v8157_v63 = vpop.eup %8156  ;;  %v2767_v42 = vmul.f32 %v8155_v45, %v9609_v36 }
 0x614   : > { %7460 = vmatmul.mubr.msk.bf16.vlgmr.msra.gmra.mxu0 %vm1600_vm2, %v2779_v1  ;;  %v2768_v40 = vmul.f32 %v8157_v63, %v9612_v9  ;;  %v2725_v58 = vpop.xlane.xlu0 %2724 }
 0x615   : > { %7470 = vmatpush3.bf16.msra.mxu0 %v9676_v29  ;;  %7471 = vmatprep.mubr.msk.bf16.mxu0 %vm8654_vm0, %v11187_v62  ;;  %8170 = vrcp.f32 %v2725_v58 }
 0x616   : > { %v8159_v4 = vpop.eup %8158  ;;  %v2780_v53 = vpack.c.bf16 %v2768_v40, %v2767_v42  ;;  %7481 = vmatprep.subr.bf16.mxu0 %v11187_v62 }
 0x617   : > { %v8161_v55 = vpop.eup %8160  ;;  %v2769_v23 = vmul.f32 %v8159_v4, %v9618_v57 }
 0x618   : > { %7466 = vmatmul.mubr.msk.bf16.vlgmr.msra.gmra.mxu1 %vm1600_vm2, %v2780_v53  ;;  %v2770_v36 = vmul.f32 %v8161_v55, %v9621_v3  ;;  %v3172_v33 = vpop.permute.xlu0 %3171 }
 0x619   : > { %7476 = vmatpush3.bf16.msra.mxu1 %v9659_v43  ;;  %7477 = vmatprep.mubr.msk.bf16.mxu1 %vm8654_vm0, %v11187_v62 }
 0x61a   : > { %v8163_v9 = vpop.eup %8162  ;;  %v2781_v29 = vpack.c.bf16 %v2770_v36, %v2769_v23  ;;  %7487 = vmatprep.subr.bf16.mxu1 %v11187_v62 }
 0x61b   : > { %v8165_v54 = vpop.eup %8164  ;;  %v2771_v21 = vmul.f32 %v8163_v9, %v9627_v47 }
 0x61c   : > { %7472 = vmatmul.mubr.msk.bf16.vlgmr.msra.gmra.mxu0 %vm1600_vm2, %v2781_v29  ;;  %v2772_v57 = vmul.f32 %v8165_v54, %v9629_v28 }
 0x61d   : > { %7482 = vmatpush3.bf16.msra.mxu0 %v9680_v18  ;;  %7483 = vmatprep.mubr.msk.bf16.mxu0 %vm8654_vm0, %v11187_v62  ;;  %v3177_v18 = vsel %vm1223_vm1, %v3172_v33, 0 }
 0x61e   : > { %v8167_v3 = vpop.eup %8166  ;;  %v2782_v43 = vpack.c.bf16 %v2772_v57, %v2771_v21  ;;  %7493 = vmatprep.subr.bf16.mxu0 %v11187_v62 }
 0x61f   : > { %v8169_v12 = vpop.eup %8168  ;;  %v2773_v41 = vmul.f32 %v8167_v3, %v9635_v7  ;;  %v3170_v7 = vpop.permute.xlu0 %3169 }
 0x620   : > { %7478 = vmatmul.mubr.msk.bf16.vlgmr.msra.gmra.mxu1 %vm1600_vm2, %v2782_v43  ;;  %v2774_v47 = vmul.f32 %v8169_v12, %v9637_v8  ;;  %v3223_v8 = vpop.permute.xlu1 %3222 }
 0x621   : > { %7488 = vmatpush3.bf16.msra.mxu1 %v9684_v52  ;;  %7489 = vmatprep.mubr.msk.bf16.mxu1 %vm8654_vm0, %v11187_v62  ;;  %v3228_v54 = vsel %vm1223_vm1, %v3223_v8, 0 }
 0x622   : > { %v2783_v28 = vpack.c.bf16 %v2774_v47, %v2773_v41  ;;  %7499 = vmatprep.subr.bf16.mxu1 %v11187_v62  ;;  %v8171_v42 = vpop.eup %8170 }
 0x623   : > { %v3221_v52 = vpop.permute.xlu0 %3220  ;;  %v2775_v55 = vmul.f32 %v8171_v42, %v9643_v39 }
 0x624   : > { %7484 = vmatmul.mubr.msk.bf16.vlgmr.msra.gmra.mxu0 %vm1600_vm2, %v2783_v28 }
 0x625   : > { %7494 = vmatpush3.bf16.xpose.msra.mxu0 %v3177_v18  ;;  %7495 = vmatprep.mubr.msk.bf16.mxu0 %vm8654_vm0, %v11187_v62 }
 0x626   : > { %7505 = vmatprep.subr.bf16.mxu0 %v11187_v62 }
 0x627   : > { %v3272_v50 = vpop.permute.xlu0 %3271 }
 0x62b   : > { %v3323_v63 = vpop.permute.xlu0 %3322 }
 0x62c   : > { %7496 = vmatmul.mubr.msk.bf16.vlgmr.msra.gmra.mxu0 %vm1223_vm1, %v3170_v7 }
 0x62d   : > { %7507 = vmatprep.mubr.msk.bf16.mxu0 %vm8654_vm0, %v11187_v62 }
 0x62f   : > { %v3374_v36 = vpop.permute.xlu0 %3373 }
 0x633   : > { %v3425_v39 = vpop.permute.xlu0 %3424 }
 0x637   : > { %v3476_v57 = vpop.permute.xlu0 %3475 }
 0x651   : > { %v2728_v14 = vpop.xlane.xlu1 %2727 }
 0x652   : > { %8172 = vrcp.f32 %v2728_v14 }
 0x655   : > { %v3274_v31 = vpop.permute.xlu1 %3273 }
 0x656   : > { %v3279_v45 = vsel %vm1223_vm1, %v3274_v31, 0 }
 0x657   : > { %7506 = vmatpush3.bf16.xpose.msra.mxu0 %v3279_v45 }
 0x658   : > { %7517 = vmatprep.subr.bf16.mxu0 %v11187_v62 }
 0x659   : > { %v3325_v1 = vpop.permute.xlu1 %3324 }
 0x65d   : > { %v3376_v40 = vpop.permute.xlu1 %3375 }
 0x65e   : > { %v3381_v4 = vsel %vm1223_vm1, %v3376_v40, 0  ;;  %7508 = vmatmul.mubr.msk.bf16.vlgmr.msra.gmra.mxu0 %vm1223_vm1, %v3272_v50 }
 0x65f   : > { %v8173_v53 = vpop.eup %8172  ;;  %7518 = vmatpush3.bf16.xpose.msra.mxu0 %v3381_v4  ;;  %7519 = vmatprep.mubr.msk.bf16.mxu0 %vm8654_vm0, %v11187_v62 }
 0x660   : > { %v2776_v23 = vmul.f32 %v8173_v53, %v9670_v25  ;;  %7529 = vmatprep.subr.bf16.mxu0 %v11187_v62  ;;  %v3330_v25 = vsel %vm1223_vm1, %v3325_v1, 0 }
 0x661   : > { %v3427_v9 = vpop.permute.xlu1 %3426 }
 0x662   : > { %v2784_v29 = vpack.c.bf16 %v2776_v23, %v2775_v55  ;;  %v3432_v3 = vsel %vm1223_vm1, %v3427_v9, 0 }
 0x664   : > { %7490 = vmatmul.mubr.msk.bf16.vlgmr.msra.gmra.mxu1 %vm1600_vm2, %v2784_v29 }
 0x665   : > { %7500 = vmatpush3.bf16.xpose.msra.mxu1 %v3228_v54  ;;  %v3478_v58 = vpop.permute.xlu1 %3477  ;;  %7501 = vmatprep.mubr.msk.bf16.mxu1 %vm8654_vm0, %v11187_v62 }
 0x666   : > { %v3483_v21 = vsel %vm1223_vm1, %v3478_v58, 0  ;;  %7520 = vmatmul.mubr.msk.bf16.vlgmr.msra.gmra.mxu0 %vm1223_vm1, %v3374_v36  ;;  %7511 = vmatprep.subr.bf16.mxu1 %v11187_v62 }
 0x667   : > { %7530 = vmatpush3.bf16.xpose.msra.mxu0 %v3483_v21  ;;  %7531 = vmatprep.mubr.msk.bf16.mxu0 %vm8654_vm0, %v11187_v62 }
 0x668   : > { %7541 = vmatprep.subr.bf16.mxu0 %v11187_v62 }
 0x669   : > { %v3529_v43 = vpop.permute.xlu1 %3528 }
 0x66a   : > { %v3534_v12 = vsel %vm1223_vm1, %v3529_v43, 0 }
 0x66c   : > { %7502 = vmatmul.mubr.msk.bf16.vlgmr.msra.gmra.mxu1 %vm1223_vm1, %v3221_v52 }
 0x66d   : > { %7512 = vmatpush3.bf16.xpose.msra.mxu1 %v3330_v25  ;;  %7513 = vmatprep.mubr.msk.bf16.mxu1 %vm8654_vm0, %v11187_v62  ;;  %v3527_v41 = vpop.permute.xlu1 %3526 }
 0x66e   : > { %7532 = vmatmul.mubr.msk.bf16.vlgmr.msra.gmra.mxu0 %vm1223_vm1, %v3476_v57  ;;  %7523 = vmatprep.subr.bf16.mxu1 %v11187_v62 }
 0x66f   : > { %7543 = vmatprep.mubr.msk.bf16.mxu0 %vm8654_vm0, %v11187_v62 }
 0x674   : > { %7514 = vmatmul.mubr.msk.bf16.vlgmr.msra.gmra.mxu1 %vm1223_vm1, %v3323_v63 }
 0x675   : > { %7524 = vmatpush3.bf16.xpose.msra.mxu1 %v3432_v3  ;;  %7525 = vmatprep.mubr.msk.bf16.mxu1 %vm8654_vm0, %v11187_v62 }
 0x676   : > { %7535 = vmatprep.subr.bf16.mxu1 %v11187_v62 }
 0x67c   : > { %7526 = vmatmul.mubr.msk.bf16.vlgmr.msra.gmra.mxu1 %vm1223_vm1, %v3425_v39 }
 0x67d   : > { %7536 = vmatpush3.bf16.xpose.msra.mxu1 %v3534_v12  ;;  %7537 = vmatprep.mubr.msk.bf16.mxu1 %vm8654_vm0, %v11187_v62 }
 0x67e   : > { %7547 = vmatprep.subr.bf16.mxu1 %v11187_v62 }
 0x684   : > { %7538 = vmatmul.mubr.msk.bf16.vlgmr.msra.gmra.mxu1 %vm1223_vm1, %v3527_v41 }
 0x685   : > { %7549 = vmatprep.mubr.msk.bf16.mxu1 %vm8654_vm0, %v11187_v62 }
 0x6bc   : > { %v9785_v47 = vpop.f32.mrf.mxu0 }
 0x6be   : > { %v7449_v33 = vpop.f32.mrf.mxu0 }
 0x6c0   : > { %v9787_v28 = vpop.f32.mrf.mxu0 }
 0x6c2   : > { %v7450_v7 = vpop.f32.mrf.mxu0 }
 0x6cf   : > { %v9791_v8 = vpop.f32.mrf.mxu1 }
 0x6d1   : > { %v7455_v52 = vpop.f32.mrf.mxu1 }
 0x6d3   : > { %v9793_v14 = vpop.f32.mrf.mxu1 }
 0x6d4   : > { %v9797_v31 = vpop.f32.mrf.mxu0 }
 0x6d5   : > { %v7456_v45 = vpop.f32.mrf.mxu1 }
 0x6d6   : > { %v7461_v1 = vpop.f32.mrf.mxu0 }
 0x6d8   : > { %v9799_v63 = vpop.f32.mrf.mxu0  ;;  %v9801_v42 = vpop.f32.mrf.mxu1 }
 0x6da   : > { %v7462_v4 = vpop.f32.mrf.mxu0  ;;  %v7467_v53 = vpop.f32.mrf.mxu1 }
 0x6dc   : > { %v9805_v55 = vpop.f32.mrf.mxu1  ;;  %v9807_v23 = vpop.f32.mrf.mxu0 }
 0x6dd   : > { %11188 = vst [vmem:[#allocation42_spill] sm:$0xff] %v9807_v23 }
 0x6de   : > { %v7468_v9 = vpop.f32.mrf.mxu1  ;;  %v7473_v29 = vpop.f32.mrf.mxu0 }
 0x6e0   : > { %v9811_v54 = vpop.f32.mrf.mxu0  ;;  %v9813_v58 = vpop.f32.mrf.mxu1 }
 0x6e1   : > { %11189 = vst [vmem:[#allocation43_spill] sm:$0xff] %v9813_v58 }
 0x6e2   : > { %v7474_v39 = vpop.f32.mrf.mxu0  ;;  %v7479_v25 = vpop.f32.mrf.mxu1 }
 0x6e4   : > { %v9817_v57 = vpop.f32.mrf.mxu1  ;;  %v9819_v3 = vpop.f32.mrf.mxu0 }
 0x6e5   : > { %11190 = vst [vmem:[#allocation44_spill] sm:$0xff] %v9817_v57  ;;  %11191 = vst [vmem:[#allocation45_spill] sm:$0xff] %v9819_v3 }
 0x6e6   : > { %v7480_v12 = vpop.f32.mrf.mxu1  ;;  %v7485_v41 = vpop.f32.mrf.mxu0 }
 0x6e8   : > { %v9823_v33 = vpop.f32.mrf.mxu0 }
 0x6e9   : > { %11192 = vst [vmem:[#allocation46_spill] sm:$0xff] %v9823_v33 }
 0x6ea   : > { %v7486_v52 = vpop.f32.mrf.mxu0 }
 0x6ec   : > { %v9827_v45 = vpop.f32.mrf.mxu0 }
 0x6ed   : > { %v3577_v1 = vsel %vm1600_vm2, %v9827_v45, -inf }
 0x6ee   : > { %3578 = vmax.xlane.f32.xlu0 %v3577_v1  ;;  %v7497_v4 = vpop.f32.mrf.mxu0 }
 0x6f0   : > { %v9831_v53 = vpop.f32.mrf.mxu0 }
 0x6f1   : > { %v3580_v9 = vsel %vm1600_vm2, %v9831_v53, -inf }
 0x6f2   : > { %3581 = vmax.xlane.f32.xlu1 %v3580_v9  ;;  %v7498_v29 = vpop.f32.mrf.mxu0 }
 0x71e   : > { %v9835_v39 = vpop.f32.mrf.mxu0 }
 0x71f   : > { %v3589_v56 = vsel %vm1600_vm2, %v9835_v39, -inf }
 0x720   : > { %v7509_v25 = vpop.f32.mrf.mxu0 }
 0x722   : > { %v9837_v12 = vpop.f32.mrf.mxu0 }
 0x723   : > { %v3592_v41 = vsel %vm1600_vm2, %v9837_v12, -inf }
 0x724   : > { %3593 = vmax.xlane.f32.xlu1 %v3592_v41  ;;  %v9841_v52 = vpop.f32.mrf.mxu1  ;;  %v7510_v1 = vpop.f32.mrf.mxu0 }
 0x725   : > { %11193 = vst [vmem:[#allocation47_spill] sm:$0xff] %v9841_v52 }
 0x726   : > { %v7491_v4 = vpop.f32.mrf.mxu1  ;;  %v9843_v43 = vpop.f32.mrf.mxu0 }
 0x728   : > { %v9845_v7 = vpop.f32.mrf.mxu1  ;;  %v7521_v21 = vpop.f32.mrf.mxu0 }
 0x729   : > { %11194 = vst [vmem:[#allocation48_spill] sm:$0xff] %v9845_v7 }
 0x72a   : > { %v7492_v29 = vpop.f32.mrf.mxu1  ;;  %v9849_v25 = vpop.f32.mrf.mxu0 }
 0x72c   : > { %v9851_v36 = vpop.f32.mrf.mxu1  ;;  %v7522_v40 = vpop.f32.mrf.mxu0 }
 0x72d   : > { %v3583_v41 = vsel %vm1600_vm2, %v9851_v36, -inf }
 0x72e   : > { %v9855_v50 = vpop.f32.mrf.mxu0  ;;  %3584 = vmax.xlane.f32.xlu0 %v3583_v41  ;;  %v7503_v1 = vpop.f32.mrf.mxu1 }
 0x72f   : > { %v3613_v52 = vsel %vm1600_vm2, %v9855_v50, -inf }
 0x730   : > { %v9857_v4 = vpop.f32.mrf.mxu1  ;;  %v7533_v18 = vpop.f32.mrf.mxu0 }
 0x731   : > { %v3586_v21 = vsel %vm1600_vm2, %v9857_v4, -inf }
 0x732   : > { %v9861_v9 = vpop.f32.mrf.mxu0  ;;  %3587 = vmax.xlane.f32.xlu0 %v3586_v21  ;;  %v7504_v29 = vpop.f32.mrf.mxu1 }
 0x734   : > { %v9863_v59 = vpop.f32.mrf.mxu1  ;;  %v7534_v40 = vpop.f32.mrf.mxu0 }
 0x735   : > { %v3595_v18 = vsel %vm1600_vm2, %v9863_v59, -inf  ;;  %v3601_v40 = vsel %vm1600_vm2, %v9843_v43, -inf }
 0x736   : > { %3590 = vmax.xlane.f32.xlu0 %v3589_v56  ;;  %v7515_v26 = vpop.f32.mrf.mxu1  ;;  %v3604_v56 = vsel %vm1600_vm2, %v9849_v25, -inf }
 0x738   : > { %v9867_v41 = vpop.f32.mrf.mxu1 }
 0x739   : > { %v3598_v1 = vsel %vm1600_vm2, %v9867_v41, -inf }
 0x73a   : > { %3596 = vmax.xlane.f32.xlu0 %v3595_v18  ;;  %3599 = vmax.xlane.f32.xlu1 %v3598_v1  ;;  %v7516_v21 = vpop.f32.mrf.mxu1 }
 0x73c   : > { %v9873_v29 = vpop.f32.mrf.mxu1 }
 0x73d   : > { %v3607_v22 = vsel %vm1600_vm2, %v9873_v29, -inf }
 0x73e   : > { %3602 = vmax.xlane.f32.xlu0 %v3601_v40  ;;  %3605 = vmax.xlane.f32.xlu1 %v3604_v56  ;;  %v7527_v26 = vpop.f32.mrf.mxu1  ;;  %v3616_v40 = vsel %vm1600_vm2, %v9861_v9, -inf }
 0x740   : > { %v9879_v10 = vpop.f32.mrf.mxu1 }
 0x741   : > { %v3610_v18 = vsel %vm1600_vm2, %v9879_v10, -inf }
 0x742   : > { %3608 = vmax.xlane.f32.xlu0 %v3607_v22  ;;  %3611 = vmax.xlane.f32.xlu1 %v3610_v18  ;;  %v7528_v1 = vpop.f32.mrf.mxu1 }
 0x744   : > { %v9885_v21 = vpop.f32.mrf.mxu1 }
 0x745   : > { %v3619_v7 = vsel %vm1600_vm2, %v9885_v21, -inf }
 0x746   : > { %3614 = vmax.xlane.f32.xlu0 %v3613_v52  ;;  %3617 = vmax.xlane.f32.xlu1 %v3616_v40  ;;  %v7539_v56 = vpop.f32.mrf.mxu1 }
 0x748   : > { %v9891_v26 = vpop.f32.mrf.mxu1 }
 0x749   : > { %v3622_v1 = vsel %vm1600_vm2, %v9891_v26, -inf }
 0x74a   : > { %3620 = vmax.xlane.f32.xlu0 %v3619_v7  ;;  %v7540_v22 = vpop.f32.mrf.mxu1 }
 0x757   : > { %3824 = vrot.lane.b32.xlu1 %v9182_v2, %s8656_s9 }
 0x75b   : > { %3871 = vrot.lane.b32.xlu1 %v9082_v16, %s8656_s9 }
 0x75f   : > { %3918 = vrot.lane.b32.xlu1 %v9074_v6, %s8656_s9 }
 0x760   : > { %3777 = vrot.lane.b32.xlu0 %v9161_v60, %s8656_s9 }
 0x764   : > { %3965 = vrot.lane.b32.xlu0 %v9105_v48, %s8656_s9 }
 0x768   : > { %4059 = vrot.lane.b32.xlu0 %v9128_v20, %s8656_s9 }
 0x777   : > { %v3579_v7 = vpop.xlane.xlu0 %3578 }
 0x778   : > { %v3625_v52 = vsub.f32 %v9827_v45, %v3579_v7 }
 0x77a   : > { %v3641_v18 = vmul.f32 1.442695, %v3625_v52 }
 0x77b   : > { %v3582_v22 = vpop.xlane.xlu1 %3581 }
 0x77c   : > { %8174 = vpow2.f32 %v3641_v18  ;;  %v3626_v45 = vsub.f32 %v9831_v53, %v3582_v22 }
 0x77e   : > { %v3643_v7 = vmul.f32 1.442695, %v3626_v45 }
 0x780   : > { %8176 = vpow2.f32 %v3643_v7 }
 0x783   : > { %3623 = vmax.xlane.f32.xlu1 %v3622_v1 }
 0x789   : > { %v9910_v40 = vpop.eup %8174 }
 0x78a   : > { %v3673_v56 = vsel %vm1600_vm2, %v9910_v40, 0.0 }
 0x78b   : > { %3674 = vadd.xlane.f32.xlu0 %v3673_v56 }
 0x78d   : > { %v9919_v1 = vpop.eup %8176 }
 0x78e   : > { %v3676_v33 = vsel %vm1600_vm2, %v9919_v1, 0.0 }
 0x794   : > { %4012 = vrot.lane.b32.xlu1 %v9097_v38, %s8656_s9 }
 0x798   : > { %4106 = vrot.lane.b32.xlu1 %v9120_v5, %s8656_s9 }
 0x7ad   : > { %v3594_v52 = vpop.xlane.xlu1 %3593 }
 0x7ae   : > { %v3630_v57 = vsub.f32 %v9837_v12, %v3594_v52 }
 0x7b0   : > { %v3651_v53 = vmul.f32 1.442695, %v3630_v57 }
 0x7b7   : > { %v3585_v18 = vpop.xlane.xlu0 %3584 }
 0x7b8   : > { %v3627_v58 = vsub.f32 %v9851_v36, %v3585_v18 }
 0x7ba   : > { %v3645_v56 = vmul.f32 1.442695, %v3627_v58 }
 0x7bb   : > { %v3588_v3 = vpop.xlane.xlu0 %3587 }
 0x7bc   : > { %8178 = vpow2.f32 %v3645_v56  ;;  %v3628_v24 = vsub.f32 %v9857_v4, %v3588_v3  ;;  %3677 = vadd.xlane.f32.xlu1 %v3676_v33 }
 0x7be   : > { %v3647_v22 = vmul.f32 1.442695, %v3628_v24 }
 0x7bf   : > { %v3591_v45 = vpop.xlane.xlu0 %3590 }
 0x7c0   : > { %8180 = vpow2.f32 %v3647_v22  ;;  %v3629_v7 = vsub.f32 %v9835_v39, %v3591_v45 }
 0x7c1   : > { %8182 = vpow2.f32 %v3651_v53 }
 0x7c2   : > { %v3649_v27 = vmul.f32 1.442695, %v3629_v7 }
 0x7c3   : > { %v3597_v36 = vpop.xlane.xlu0 %3596  ;;  %v3600_v18 = vpop.xlane.xlu1 %3599 }
 0x7c4   : > { %8184 = vpow2.f32 %v3649_v27  ;;  %v3631_v58 = vsub.f32 %v9863_v59, %v3597_v36  ;;  %v3632_v12 = vsub.f32 %v9867_v41, %v3600_v18 }
 0x7c6   : > { %v3653_v52 = vmul.f32 1.442695, %v3631_v58  ;;  %v3655_v56 = vmul.f32 1.442695, %v3632_v12 }
 0x7c7   : > { %v3603_v23 = vpop.xlane.xlu0 %3602  ;;  %v3606_v3 = vpop.xlane.xlu1 %3605 }
 0x7c8   : > { %8186 = vpow2.f32 %v3653_v52  ;;  %v3633_v24 = vsub.f32 %v9843_v43, %v3603_v23  ;;  %v3634_v57 = vsub.f32 %v9849_v25, %v3606_v3 }
 0x7c9   : > { %v9931_v33 = vpop.eup %8178  ;;  %8188 = vpow2.f32 %v3655_v56 }
 0x7ca   : > { %v3657_v39 = vmul.f32 1.442695, %v3633_v24  ;;  %v3659_v4 = vmul.f32 1.442695, %v3634_v57  ;;  %v3679_v27 = vsel %vm1600_vm2, %v9931_v33, 0.0 }
 0x7cb   : > { %v3609_v59 = vpop.xlane.xlu0 %3608  ;;  %v3612_v53 = vpop.xlane.xlu1 %3611  ;;  %3680 = vadd.xlane.f32.xlu0 %v3679_v27 }
 0x7cc   : > { %8190 = vpow2.f32 %v3657_v39  ;;  %v3635_v41 = vsub.f32 %v9873_v29, %v3609_v59  ;;  %v3636_v22 = vsub.f32 %v9879_v10, %v3612_v53 }
 0x7cd   : > { %v9937_v45 = vpop.eup %8180  ;;  %8192 = vpow2.f32 %v3659_v4 }
 0x7ce   : > { %v3661_v23 = vmul.f32 1.442695, %v3635_v41  ;;  %v3663_v43 = vmul.f32 1.442695, %v3636_v22  ;;  %v3682_v25 = vsel %vm1600_vm2, %v9937_v45, 0.0  ;;  %v9941_v7 = vpop.eup %8182 }
 0x7cf   : > { %v3615_v36 = vpop.xlane.xlu0 %3614  ;;  %v3618_v18 = vpop.xlane.xlu1 %3617  ;;  %3683 = vadd.xlane.f32.xlu1 %v3682_v25  ;;  %v3688_v3 = vsel %vm1600_vm2, %v9941_v7, 0.0 }
 0x7d0   : > { %8194 = vpow2.f32 %v3661_v23  ;;  %v3637_v58 = vsub.f32 %v9855_v50, %v3615_v36  ;;  %v3638_v29 = vsub.f32 %v9861_v9, %v3618_v18 }
 0x7d1   : > { %v9945_v12 = vpop.eup %8184  ;;  %8196 = vpow2.f32 %v3663_v43 }
 0x7d2   : > { %v3665_v10 = vmul.f32 1.442695, %v3637_v58  ;;  %v3667_v52 = vmul.f32 1.442695, %v3638_v29  ;;  %v3685_v56 = vsel %vm1600_vm2, %v9945_v12, 0.0 }
 0x7d3   : > { %v3825_v24 = vpop.permute.xlu1 %3824  ;;  %3686 = vadd.xlane.f32.xlu0 %v3685_v56  ;;  %v3621_v57 = vpop.xlane.xlu0 %3620  ;;  %3689 = vadd.xlane.f32.xlu1 %v3688_v3 }
 0x7d4   : > { %8198 = vpow2.f32 %v3665_v10  ;;  %v3639_v50 = vsub.f32 %v9885_v21, %v3621_v57  ;;  %7548 = vmatpush3.bf16.msra.mxu1 %v3825_v24 }
 0x7d5   : > { %v9952_v9 = vpop.eup %8186  ;;  %8200 = vpow2.f32 %v3667_v52  ;;  %7559 = vmatprep.subr.bf16.mxu1 %v11187_v62 }
 0x7d6   : > { %v9955_v39 = vpop.eup %8188  ;;  %v3669_v4 = vmul.f32 1.442695, %v3639_v50  ;;  %v3691_v27 = vsel %vm1600_vm2, %v9952_v9, 0.0 }
 0x7d7   : > { %3692 = vadd.xlane.f32.xlu0 %v3691_v27  ;;  %v3778_v59 = vpop.permute.xlu0 %3777  ;;  %v3694_v53 = vsel %vm1600_vm2, %v9955_v39, 0.0  ;;  %v3872_v24 = vpop.permute.xlu1 %3871 }
 0x7d8   : > { %8202 = vpow2.f32 %v3669_v4  ;;  %3695 = vadd.xlane.f32.xlu1 %v3694_v53  ;;  %7542 = vmatpush3.bf16.msra.mxu0 %v3778_v59 }
 0x7d9   : > { %v9961_v21 = vpop.eup %8190  ;;  %7553 = vmatprep.subr.bf16.mxu0 %v11187_v62 }
 0x7da   : > { %v9964_v41 = vpop.eup %8192  ;;  %v3697_v22 = vsel %vm1600_vm2, %v9961_v21, 0.0 }
 0x7db   : > { %3698 = vadd.xlane.f32.xlu0 %v3697_v22  ;;  %v3700_v23 = vsel %vm1600_vm2, %v9964_v41, 0.0  ;;  %v9996_v57 = vpop.permute.xlu1 %3918 }
 0x7dc   : > { %3701 = vadd.xlane.f32.xlu1 %v3700_v23 }
 0x7dd   : > { %v9970_v43 = vpop.eup %8194 }
 0x7de   : > { %v9972_v25 = vpop.eup %8196  ;;  %v3703_v36 = vsel %vm1600_vm2, %v9970_v43, 0.0 }
 0x7df   : > { %3704 = vadd.xlane.f32.xlu0 %v3703_v36  ;;  %v3706_v18 = vsel %vm1600_vm2, %v9972_v25, 0.0 }
 0x7e0   : > { %3707 = vadd.xlane.f32.xlu1 %v3706_v18 }
 0x7e1   : > { %v9978_v58 = vpop.eup %8198 }
 0x7e2   : > { %v9980_v29 = vpop.eup %8200  ;;  %v3709_v10 = vsel %vm1600_vm2, %v9978_v58, 0.0 }
 0x7e3   : > { %3710 = vadd.xlane.f32.xlu0 %v3709_v10  ;;  %v3712_v52 = vsel %vm1600_vm2, %v9980_v29, 0.0 }
 0x7e4   : > { %3713 = vadd.xlane.f32.xlu1 %v3712_v52 }
 0x7e5   : > { %v9986_v56 = vpop.eup %8202 }
 0x7e6   : > { %v3715_v3 = vsel %vm1600_vm2, %v9986_v56, 0.0 }
 0x7e7   : > { %3716 = vadd.xlane.f32.xlu0 %v3715_v3 }
 0x7fd   : > { %4155 = vrot.lane.b32.xlu0 %v9022_v17, %s8657_s27 }
 0x801   : > { %4153 = vrot.lane.b32.xlu0 %v9032_v30, %s8657_s27 }
 0x805   : > { %4257 = vrot.lane.b32.xlu0 %v9059_v51, %s8657_s27  ;;  %v10017_v51 = vpop.permute.xlu0 %3965 }
 0x809   : > { %4255 = vrot.lane.b32.xlu0 %v9077_v13, %s8657_s27 }
 0x80c   : > { %v3624_v50 = vpop.xlane.xlu1 %3623 }
 0x80d   : > { %v3640_v4 = vsub.f32 %v9891_v26, %v3624_v50  ;;  %4359 = vrot.lane.b32.xlu0 %v9103_v46, %s8657_s27  ;;  %v10023_v46 = vpop.permute.xlu0 %4059 }
 0x80f   : > { %v3671_v27 = vmul.f32 1.442695, %v3640_v4 }
 0x810   : > { %v10021_v13 = vpop.permute.xlu1 %4012 }
 0x811   : > { %8204 = vpow2.f32 %v3671_v27  ;;  %4357 = vrot.lane.b32.xlu0 %v9123_v11, %s8657_s27 }
 0x814   : > { %v3675_v11 = vpop.xlane.xlu0 %3674 }
 0x815   : > { %4461 = vrot.lane.b32.xlu0 %v9143_v37, %s8657_s27  ;;  %v10027_v37 = vpop.permute.xlu1 %4106  ;;  %8206 = vrcp.f32 %v3675_v11 }
 0x819   : > { %4459 = vrot.lane.b32.xlu0 %v9163_v61, %s8657_s27 }
 0x81e   : > { %v10009_v17 = vpop.eup %8204 }
 0x81f   : > { %v3718_v30 = vsel %vm1600_vm2, %v10009_v17, 0.0 }
 0x820   : > { %3719 = vadd.xlane.f32.xlu1 %v3718_v30 }
 0x831   : > { %4206 = vrot.lane.b32.xlu1 %v9035_v32, %s8657_s27 }
 0x835   : > { %4204 = vrot.lane.b32.xlu1 %v9056_v49, %s8657_s27  ;;  %v8207_v49 = vpop.eup %8206 }
 0x836   : > { %v3753_v61 = vmul.f32 %v8207_v49, %v9910_v40 }
 0x839   : > { %4308 = vrot.lane.b32.xlu1 %v9080_v15, %s8657_s27 }
 0x83d   : > { %4306 = vrot.lane.b32.xlu1 %v9100_v44, %s8657_s27 }
 0x841   : > { %4410 = vrot.lane.b32.xlu1 %v9126_v19, %s8657_s27 }
 0x845   : > { %4408 = vrot.lane.b32.xlu1 %v9140_v35, %s8657_s27  ;;  %v3678_v32 = vpop.xlane.xlu1 %3677 }
 0x846   : > { %8208 = vrcp.f32 %v3678_v32 }
 0x849   : > { %4512 = vrot.lane.b32.xlu1 %v9165_v34, %s8657_s27 }
 0x84d   : > { %4510 = vrot.lane.b32.xlu1 %v9180_v0, %s8657_s27 }
 0x853   : > { %v8209_v15 = vpop.eup %8208 }
 0x854   : > { %v3681_v44 = vpop.xlane.xlu0 %3680  ;;  %v3754_v26 = vmul.f32 %v8209_v15, %v9919_v1 }
 0x855   : > { %8210 = vrcp.f32 %v3681_v44 }
 0x856   : > { %v3769_v19 = vpack.c.bf16 %v3754_v26, %v3753_v61 }
 0x858   : > { %7544 = vmatmul.mubr.msk.bf16.vlgmr.msra.gmra.mxu0 %vm1600_vm2, %v3769_v19  ;;  %v3684_v35 = vpop.xlane.xlu1 %3683 }
 0x859   : > { %7554 = vmatpush3.bf16.msra.mxu0 %v3872_v24  ;;  %8212 = vrcp.f32 %v3684_v35  ;;  %7555 = vmatprep.mubr.msk.bf16.mxu0 %vm8654_vm0, %v11187_v62 }
 0x85a   : > { %7565 = vmatprep.subr.bf16.mxu0 %v11187_v62 }
 0x85c   : > { %v3687_v34 = vpop.xlane.xlu0 %3686  ;;  %v3690_v0 = vpop.xlane.xlu1 %3689 }
 0x85d   : > { %8214 = vrcp.f32 %v3687_v34 }
 0x85e   : > { %8216 = vrcp.f32 %v3690_v0 }
 0x860   : > { %v3693_v59 = vpop.xlane.xlu0 %3692 }
 0x861   : > { %8218 = vrcp.f32 %v3693_v59  ;;  %v3696_v40 = vpop.xlane.xlu1 %3695 }
 0x862   : > { %8220 = vrcp.f32 %v3696_v40  ;;  %v8211_v1 = vpop.eup %8210 }
 0x863   : > { %v3755_v36 = vmul.f32 %v8211_v1, %v9931_v33 }
 0x864   : > { %v3699_v53 = vpop.xlane.xlu0 %3698 }
 0x865   : > { %8222 = vrcp.f32 %v3699_v53  ;;  %v3702_v22 = vpop.xlane.xlu1 %3701 }
 0x866   : > { %v8213_v23 = vpop.eup %8212  ;;  %8224 = vrcp.f32 %v3702_v22 }
 0x867   : > { %v3756_v18 = vmul.f32 %v8213_v23, %v9937_v45 }
 0x868   : > { %v3705_v10 = vpop.xlane.xlu0 %3704 }
 0x869   : > { %8226 = vrcp.f32 %v3705_v10  ;;  %v3708_v52 = vpop.xlane.xlu1 %3707  ;;  %v3770_v3 = vpack.c.bf16 %v3756_v18, %v3755_v36 }
 0x86a   : > { %v8215_v24 = vpop.eup %8214  ;;  %8228 = vrcp.f32 %v3708_v52 }
 0x86b   : > { %v8217_v50 = vpop.eup %8216  ;;  %7550 = vmatmul.mubr.msk.bf16.vlgmr.msra.gmra.mxu1 %vm1600_vm2, %v3770_v3  ;;  %v3757_v4 = vmul.f32 %v8215_v24, %v9945_v12 }
 0x86c   : > { %7560 = vmatpush3.bf16.msra.mxu1 %v9996_v57  ;;  %v3711_v27 = vpop.xlane.xlu0 %3710  ;;  %v3758_v30 = vmul.f32 %v8217_v50, %v9941_v7  ;;  %7561 = vmatprep.mubr.msk.bf16.mxu1 %vm8654_vm0, %v11187_v62 }
 0x86d   : > { %8230 = vrcp.f32 %v3711_v27  ;;  %v3714_v33 = vpop.xlane.xlu1 %3713  ;;  %7571 = vmatprep.subr.bf16.mxu1 %v11187_v62 }
 0x86e   : > { %v8219_v45 = vpop.eup %8218  ;;  %8232 = vrcp.f32 %v3714_v33  ;;  %v3771_v11 = vpack.c.bf16 %v3758_v30, %v3757_v4 }
 0x86f   : > { %v8221_v32 = vpop.eup %8220  ;;  %v3759_v49 = vmul.f32 %v8219_v45, %v9952_v9 }
 0x870   : > { %7556 = vmatmul.mubr.msk.bf16.vlgmr.msra.gmra.mxu0 %vm1600_vm2, %v3771_v11  ;;  %v10054_v12 = vpop.xlane.xlu0 %3716  ;;  %v3760_v57 = vmul.f32 %v8221_v32, %v9955_v39 }
 0x871   : > { %7566 = vmatpush3.bf16.msra.mxu0 %v10017_v51  ;;  %7567 = vmatprep.mubr.msk.bf16.mxu0 %vm8654_vm0, %v11187_v62  ;;  %8234 = vrcp.f32 %v10054_v12 }
 0x872   : > { %v8223_v7 = vpop.eup %8222  ;;  %v3772_v15 = vpack.c.bf16 %v3760_v57, %v3759_v49  ;;  %7577 = vmatprep.subr.bf16.mxu0 %v11187_v62 }
 0x873   : > { %v8225_v44 = vpop.eup %8224  ;;  %v3761_v61 = vmul.f32 %v8223_v7, %v9961_v21 }
 0x874   : > { %v3762_v9 = vmul.f32 %v8225_v44, %v9964_v41  ;;  %7562 = vmatmul.mubr.msk.bf16.vlgmr.msra.gmra.mxu1 %vm1600_vm2, %v3772_v15  ;;  %v4156_v26 = vpop.permute.xlu0 %4155 }
 0x875   : > { %7572 = vmatpush3.bf16.msra.mxu1 %v10021_v13  ;;  %7573 = vmatprep.mubr.msk.bf16.mxu1 %vm8654_vm0, %v11187_v62 }
 0x876   : > { %v8227_v39 = vpop.eup %8226  ;;  %v3773_v51 = vpack.c.bf16 %v3762_v9, %v3761_v61  ;;  %7583 = vmatprep.subr.bf16.mxu1 %v11187_v62 }
 0x877   : > { %v8229_v19 = vpop.eup %8228  ;;  %v3763_v35 = vmul.f32 %v8227_v39, %v9970_v43 }
 0x878   : > { %v3764_v34 = vmul.f32 %v8229_v19, %v9972_v25  ;;  %7568 = vmatmul.mubr.msk.bf16.vlgmr.msra.gmra.mxu0 %vm1600_vm2, %v3773_v51  ;;  %v4154_v21 = vpop.permute.xlu0 %4153 }
 0x879   : > { %7578 = vmatpush3.bf16.msra.mxu0 %v10023_v46  ;;  %7579 = vmatprep.mubr.msk.bf16.mxu0 %vm8654_vm0, %v11187_v62  ;;  %v4161_v46 = vsel %vm1223_vm1, %v4156_v26, 0 }
 0x87a   : > { %v8231_v41 = vpop.eup %8230  ;;  %v3774_v13 = vpack.c.bf16 %v3764_v34, %v3763_v35  ;;  %7589 = vmatprep.subr.bf16.mxu0 %v11187_v62 }
 0x87b   : > { %v8233_v0 = vpop.eup %8232  ;;  %v3765_v59 = vmul.f32 %v8231_v41, %v9978_v58 }
 0x87c   : > { %v3766_v40 = vmul.f32 %v8233_v0, %v9980_v29  ;;  %7574 = vmatmul.mubr.msk.bf16.vlgmr.msra.gmra.mxu1 %vm1600_vm2, %v3774_v13  ;;  %v4258_v43 = vpop.permute.xlu0 %4257 }
 0x87d   : > { %7584 = vmatpush3.bf16.msra.mxu1 %v10027_v37  ;;  %7585 = vmatprep.mubr.msk.bf16.mxu1 %vm8654_vm0, %v11187_v62  ;;  %v4263_v29 = vsel %vm1223_vm1, %v4258_v43, 0 }
 0x87e   : > { %v3775_v25 = vpack.c.bf16 %v3766_v40, %v3765_v59  ;;  %7595 = vmatprep.subr.bf16.mxu1 %v11187_v62  ;;  %v8235_v3 = vpop.eup %8234 }
 0x87f   : > { %v3767_v50 = vmul.f32 %v8235_v3, %v9986_v56 }
 0x880   : > { %7580 = vmatmul.mubr.msk.bf16.vlgmr.msra.gmra.mxu0 %vm1600_vm2, %v3775_v25  ;;  %v4256_v58 = vpop.permute.xlu0 %4255 }
 0x881   : > { %7590 = vmatpush3.bf16.xpose.msra.mxu0 %v4161_v46  ;;  %7591 = vmatprep.mubr.msk.bf16.mxu0 %vm8654_vm0, %v11187_v62 }
 0x882   : > { %7601 = vmatprep.subr.bf16.mxu0 %v11187_v62 }
 0x884   : > { %v4360_v37 = vpop.permute.xlu0 %4359 }
 0x885   : > { %v4365_v53 = vsel %vm1223_vm1, %v4360_v37, 0 }
 0x888   : > { %7592 = vmatmul.mubr.msk.bf16.vlgmr.msra.gmra.mxu0 %vm1223_vm1, %v4154_v21  ;;  %v4358_v1 = vpop.permute.xlu0 %4357 }
 0x889   : > { %7602 = vmatpush3.bf16.xpose.msra.mxu0 %v4263_v29  ;;  %7603 = vmatprep.mubr.msk.bf16.mxu0 %vm8654_vm0, %v11187_v62 }
 0x88a   : > { %7613 = vmatprep.subr.bf16.mxu0 %v11187_v62 }
 0x88c   : > { %v4462_v22 = vpop.permute.xlu0 %4461 }
 0x88d   : > { %v4467_v23 = vsel %vm1223_vm1, %v4462_v22, 0 }
 0x890   : > { %7604 = vmatmul.mubr.msk.bf16.vlgmr.msra.gmra.mxu0 %vm1223_vm1, %v4256_v58  ;;  %v4460_v36 = vpop.permute.xlu0 %4459 }
 0x891   : > { %7614 = vmatpush3.bf16.xpose.msra.mxu0 %v4365_v53  ;;  %7615 = vmatprep.mubr.msk.bf16.mxu0 %vm8654_vm0, %v11187_v62 }
 0x892   : > { %7625 = vmatprep.subr.bf16.mxu0 %v11187_v62 }
 0x898   : > { %7616 = vmatmul.mubr.msk.bf16.vlgmr.msra.gmra.mxu0 %vm1223_vm1, %v4358_v1 }
 0x899   : > { %7626 = vmatpush3.bf16.xpose.msra.mxu0 %v4467_v23  ;;  %7627 = vmatprep.mubr.msk.bf16.mxu0 %vm8654_vm0, %v11187_v62 }
 0x89a   : > { %7637 = vmatprep.subr.bf16.mxu0 %v11187_v62 }
 0x8a0   : > { %7628 = vmatmul.mubr.msk.bf16.vlgmr.msra.gmra.mxu0 %vm1223_vm1, %v4460_v36 }
 0x8a1   : > { %7639 = vmatprep.mubr.msk.bf16.mxu0 %vm8654_vm0, %v11187_v62 }
 0x8a9   : > { %v3720_v18 = vpop.xlane.xlu1 %3719 }
 0x8aa   : > { %8236 = vrcp.f32 %v3720_v18 }
 0x8ad   : > { %v4207_v10 = vpop.permute.xlu1 %4206 }
 0x8ae   : > { %v4212_v33 = vsel %vm1223_vm1, %v4207_v10, 0 }
 0x8b1   : > { %v4205_v52 = vpop.permute.xlu1 %4204 }
 0x8b5   : > { %v4309_v27 = vpop.permute.xlu1 %4308 }
 0x8b6   : > { %v4314_v11 = vsel %vm1223_vm1, %v4309_v27, 0 }
 0x8b7   : > { %v8237_v24 = vpop.eup %8236 }
 0x8b8   : > { %v3768_v4 = vmul.f32 %v8237_v24, %v10009_v17 }
 0x8b9   : > { %v4307_v45 = vpop.permute.xlu1 %4306 }
 0x8ba   : > { %v3776_v30 = vpack.c.bf16 %v3768_v4, %v3767_v50 }
 0x8bc   : > { %7586 = vmatmul.mubr.msk.bf16.vlgmr.msra.gmra.mxu1 %vm1600_vm2, %v3776_v30 }
 0x8bd   : > { %7596 = vmatpush3.bf16.xpose.msra.mxu1 %v4212_v33  ;;  %7597 = vmatprep.mubr.msk.bf16.mxu1 %vm8654_vm0, %v11187_v62  ;;  %v4411_v56 = vpop.permute.xlu1 %4410 }
 0x8be   : > { %7607 = vmatprep.subr.bf16.mxu1 %v11187_v62  ;;  %v4416_v32 = vsel %vm1223_vm1, %v4411_v56, 0 }
 0x8c1   : > { %v4409_v17 = vpop.permute.xlu1 %4408 }
 0x8c4   : > { %7598 = vmatmul.mubr.msk.bf16.vlgmr.msra.gmra.mxu1 %vm1223_vm1, %v4205_v52 }
 0x8c5   : > { %7608 = vmatpush3.bf16.xpose.msra.mxu1 %v4314_v11  ;;  %7609 = vmatprep.mubr.msk.bf16.mxu1 %vm8654_vm0, %v11187_v62  ;;  %v4513_v49 = vpop.permute.xlu1 %4512 }
 0x8c6   : > { %7619 = vmatprep.subr.bf16.mxu1 %v11187_v62  ;;  %v4518_v12 = vsel %vm1223_vm1, %v4513_v49, 0 }
 0x8c9   : > { %v4511_v57 = vpop.permute.xlu1 %4510 }
 0x8cc   : > { %7610 = vmatmul.mubr.msk.bf16.vlgmr.msra.gmra.mxu1 %vm1223_vm1, %v4307_v45 }
 0x8cd   : > { %7620 = vmatpush3.bf16.xpose.msra.mxu1 %v4416_v32  ;;  %7621 = vmatprep.mubr.msk.bf16.mxu1 %vm8654_vm0, %v11187_v62 }
 0x8ce   : > { %7631 = vmatprep.subr.bf16.mxu1 %v11187_v62 }
 0x8d4   : > { %7622 = vmatmul.mubr.msk.bf16.vlgmr.msra.gmra.mxu1 %vm1223_vm1, %v4409_v17 }
 0x8d5   : > { %7632 = vmatpush3.bf16.xpose.msra.mxu1 %v4518_v12  ;;  %7633 = vmatprep.mubr.msk.bf16.mxu1 %vm8654_vm0, %v11187_v62 }
 0x8d6   : > { %7643 = vmatprep.subr.bf16.mxu1 %v11187_v62 }
 0x8dc   : > { %7634 = vmatmul.mubr.msk.bf16.vlgmr.msra.gmra.mxu1 %vm1223_vm1, %v4511_v57 }
 0x8dd   : > { %7645 = vmatprep.mubr.msk.bf16.mxu1 %vm8654_vm0, %v11187_v62 }
 0x918   : > { %v10131_v7 = vpop.f32.mrf.mxu0 }
 0x91a   : > { %v7545_v15 = vpop.f32.mrf.mxu0 }
 0x91c   : > { %v10133_v44 = vpop.f32.mrf.mxu0 }
 0x91d   : > { %v7856_v61 = vpack.i.bf16 %v10133_v44, %v10131_v7 }
 0x91e   : > { %v7546_v9 = vpop.f32.mrf.mxu0 }
 0x92b   : > { %v10137_v26 = vpop.f32.mrf.mxu1 }
 0x92d   : > { %v7551_v39 = vpop.f32.mrf.mxu1 }
 0x92f   : > { %v10139_v51 = vpop.f32.mrf.mxu1 }
 0x930   : > { %v7861_v19 = vpack.i.bf16 %v10139_v51, %v10137_v26  ;;  %v10143_v35 = vpop.f32.mrf.mxu0 }
 0x931   : > { %v7552_v34 = vpop.f32.mrf.mxu1 }
 0x932   : > { %v7557_v21 = vpop.f32.mrf.mxu0 }
 0x934   : > { %v10145_v41 = vpop.f32.mrf.mxu0  ;;  %v10147_v13 = vpop.f32.mrf.mxu1 }
 0x936   : > { %v7558_v59 = vpop.f32.mrf.mxu0  ;;  %v7563_v40 = vpop.f32.mrf.mxu1 }
 0x938   : > { %v10151_v43 = vpop.f32.mrf.mxu1  ;;  %v10153_v25 = vpop.f32.mrf.mxu0 }
 0x93a   : > { %v7564_v58 = vpop.f32.mrf.mxu1  ;;  %v7569_v29 = vpop.f32.mrf.mxu0 }
 0x93c   : > { %v10157_v37 = vpop.f32.mrf.mxu0  ;;  %v10159_v1 = vpop.f32.mrf.mxu1 }
 0x93e   : > { %v7570_v22 = vpop.f32.mrf.mxu0  ;;  %v7575_v23 = vpop.f32.mrf.mxu1 }
 0x940   : > { %v10163_v36 = vpop.f32.mrf.mxu1  ;;  %v10165_v18 = vpop.f32.mrf.mxu0 }
 0x942   : > { %v7576_v52 = vpop.f32.mrf.mxu1  ;;  %v7581_v3 = vpop.f32.mrf.mxu0 }
 0x944   : > { %v10169_v24 = vpop.f32.mrf.mxu0 }
 0x946   : > { %v7582_v4 = vpop.f32.mrf.mxu0 }
 0x948   : > { %v10173_v27 = vpop.f32.mrf.mxu0 }
 0x949   : > { %v4561_v30 = vsel %vm1600_vm2, %v10173_v27, -inf }
 0x94a   : > { %4562 = vmax.xlane.f32.xlu0 %v4561_v30  ;;  %v7593_v33 = vpop.f32.mrf.mxu0 }
 0x94c   : > { %v10177_v45 = vpop.f32.mrf.mxu0 }
 0x94d   : > { %v4564_v11 = vsel %vm1600_vm2, %v10177_v45, -inf }
 0x94e   : > { %4565 = vmax.xlane.f32.xlu1 %v4564_v11  ;;  %v7594_v56 = vpop.f32.mrf.mxu0 }
 0x950   : > { %v10181_v17 = vpop.f32.mrf.mxu0 }
 0x952   : > { %v7605_v32 = vpop.f32.mrf.mxu0 }
 0x954   : > { %v10183_v49 = vpop.f32.mrf.mxu0 }
 0x955   : > { %v4576_v12 = vsel %vm1600_vm2, %v10183_v49, -inf }
 0x956   : > { %4577 = vmax.xlane.f32.xlu1 %v4576_v12  ;;  %v7606_v57 = vpop.f32.mrf.mxu0 }
 0x958   : > { %v10187_v15 = vpop.f32.mrf.mxu0 }
 0x95a   : > { %v7617_v9 = vpop.f32.mrf.mxu0 }
 0x95c   : > { %v10189_v39 = vpop.f32.mrf.mxu0 }
 0x95e   : > { %v7618_v34 = vpop.f32.mrf.mxu0 }
 0x960   : > { %v10191_v21 = vpop.f32.mrf.mxu0 }
 0x962   : > { %v7629_v59 = vpop.f32.mrf.mxu0 }
 0x964   : > { %v10193_v40 = vpop.f32.mrf.mxu0 }
 0x966   : > { %v7630_v58 = vpop.f32.mrf.mxu0 }
 0x967   : > { %4808 = vrot.lane.b32.xlu1 %v9182_v2, %s8657_s27  ;;  %v4573_v2 = vsel %vm1600_vm2, %v10181_v17, -inf }
 0x97c   : > { %v10197_v29 = vpop.f32.mrf.mxu1 }
 0x97e   : > { %v7587_v22 = vpop.f32.mrf.mxu1 }
 0x980   : > { %v10199_v23 = vpop.f32.mrf.mxu1 }
 0x982   : > { %v7588_v3 = vpop.f32.mrf.mxu1 }
 0x983   : > { %v4588_v3 = vsel %vm1600_vm2, %v10189_v39, -inf }
 0x984   : > { %v10203_v4 = vpop.f32.mrf.mxu1 }
 0x985   : > { %v4567_v30 = vsel %vm1600_vm2, %v10203_v4, -inf }
 0x986   : > { %4568 = vmax.xlane.f32.xlu0 %v4567_v30  ;;  %v7599_v33 = vpop.f32.mrf.mxu1 }
 0x988   : > { %v10207_v11 = vpop.f32.mrf.mxu1 }
 0x989   : > { %v4570_v12 = vsel %vm1600_vm2, %v10207_v11, -inf }
 0x98a   : > { %4574 = vmax.xlane.f32.xlu0 %v4573_v2  ;;  %v7600_v56 = vpop.f32.mrf.mxu1 }
 0x98c   : > { %v10211_v32 = vpop.f32.mrf.mxu1 }
 0x98d   : > { %v4579_v34 = vsel %vm1600_vm2, %v10211_v32, -inf }
 0x98e   : > { %4571 = vmax.xlane.f32.xlu0 %v4570_v12  ;;  %v7611_v57 = vpop.f32.mrf.mxu1 }
 0x98f   : > { %v4600_v57 = vsel %vm1600_vm2, %v10193_v40, -inf }
 0x990   : > { %v10215_v9 = vpop.f32.mrf.mxu1 }
 0x991   : > { %v4582_v59 = vsel %vm1600_vm2, %v10215_v9, -inf }
 0x992   : > { %4580 = vmax.xlane.f32.xlu0 %v4579_v34  ;;  %4583 = vmax.xlane.f32.xlu1 %v4582_v59  ;;  %v7612_v58 = vpop.f32.mrf.mxu1 }
 0x994   : > { %v10221_v22 = vpop.f32.mrf.mxu1 }
 0x996   : > { %4589 = vmax.xlane.f32.xlu1 %v4588_v3  ;;  %v7623_v30 = vpop.f32.mrf.mxu1 }
 0x997   : > { %v4585_v30 = vsel %vm1600_vm2, %v10187_v15, -inf }
 0x998   : > { %v10225_v33 = vpop.f32.mrf.mxu1 }
 0x999   : > { %v4594_v2 = vsel %vm1600_vm2, %v10225_v33, -inf }
 0x99a   : > { %4595 = vmax.xlane.f32.xlu1 %v4594_v2  ;;  %v7624_v56 = vpop.f32.mrf.mxu1  ;;  %v4591_v2 = vsel %vm1600_vm2, %v10221_v22, -inf }
 0x99b   : > { %v4597_v56 = vsel %vm1600_vm2, %v10191_v21, -inf }
 0x99c   : > { %v10229_v12 = vpop.f32.mrf.mxu1 }
 0x99e   : > { %4601 = vmax.xlane.f32.xlu1 %v4600_v57  ;;  %v7635_v34 = vpop.f32.mrf.mxu1  ;;  %v4603_v57 = vsel %vm1600_vm2, %v10229_v12, -inf }
 0x9a0   : > { %v10233_v59 = vpop.f32.mrf.mxu1 }
 0x9a1   : > { %v4606_v58 = vsel %vm1600_vm2, %v10233_v59, -inf }
 0x9a2   : > { %4607 = vmax.xlane.f32.xlu1 %v4606_v58  ;;  %v7636_v3 = vpop.f32.mrf.mxu1 }
 0x9a8   : > { %4761 = vrot.lane.b32.xlu0 %v9161_v60, %s8657_s27 }
 0x9c7   : > { %4586 = vmax.xlane.f32.xlu0 %v4585_v30 }
 0x9cb   : > { %4592 = vmax.xlane.f32.xlu0 %v4591_v2 }
 0x9cf   : > { %4598 = vmax.xlane.f32.xlu0 %v4597_v56 }
 0x9d3   : > { %v4563_v34 = vpop.xlane.xlu0 %4562  ;;  %4604 = vmax.xlane.f32.xlu0 %v4603_v57 }
 0x9d4   : > { %v4609_v58 = vsub.f32 %v10173_v27, %v4563_v34 }
 0x9d6   : > { %v4625_v60 = vmul.f32 1.442695, %v4609_v58 }
 0x9d7   : > { %v4566_v3 = vpop.xlane.xlu1 %4565 }
 0x9d8   : > { %8238 = vpow2.f32 %v4625_v60  ;;  %v4610_v30 = vsub.f32 %v10177_v45, %v4566_v3 }
 0x9da   : > { %v4627_v52 = vmul.f32 1.442695, %v4610_v30 }
 0x9dc   : > { %8240 = vpow2.f32 %v4627_v52 }
 0x9df   : > { %v4578_v10 = vpop.xlane.xlu1 %4577 }
 0x9e0   : > { %v4614_v60 = vsub.f32 %v10183_v49, %v4578_v10 }
 0x9e3   : > { %v4809_v2 = vpop.permute.xlu1 %4808 }
 0x9e4   : > { %7644 = vmatpush3.bf16.msra.mxu1 %v4809_v2  ;;  %v4635_v2 = vmul.f32 1.442695, %v4614_v60 }
 0x9e5   : > { %v10249_v50 = vpop.eup %8238  ;;  %7655 = vmatprep.subr.bf16.mxu1 %v11187_v62 }
 0x9e6   : > { %v4657_v56 = vsel %vm1600_vm2, %v10249_v50, 0.0 }
 0x9e7   : > { %4658 = vadd.xlane.f32.xlu0 %v4657_v56 }
 0x9e9   : > { %v10254_v57 = vpop.eup %8240 }
 0x9ea   : > { %v4660_v27 = vsel %vm1600_vm2, %v10254_v57, 0.0 }
 0x9eb   : > { %4661 = vadd.xlane.f32.xlu1 %v4660_v27 }
 0x9fc   : > { %4902 = vrot.lane.b32.xlu1 %v9074_v6, %s8657_s27 }
 0xa0f   : > { %v4569_v45 = vpop.xlane.xlu0 %4568 }
 0xa10   : > { %v4611_v52 = vsub.f32 %v10203_v4, %v4569_v45 }
 0xa12   : > { %v4629_v34 = vmul.f32 1.442695, %v4611_v52 }
 0xa13   : > { %v4575_v58 = vpop.xlane.xlu0 %4574 }
 0xa14   : > { %8242 = vpow2.f32 %v4629_v34  ;;  %v4613_v52 = vsub.f32 %v10181_v17, %v4575_v58 }
 0xa16   : > { %v4633_v34 = vmul.f32 1.442695, %v4613_v52 }
 0xa17   : > { %v4572_v3 = vpop.xlane.xlu0 %4571 }
 0xa18   : > { %v4612_v30 = vsub.f32 %v10207_v11, %v4572_v3 }
 0xa1a   : > { %v4631_v56 = vmul.f32 1.442695, %v4612_v30 }
 0xa1b   : > { %v4581_v53 = vpop.xlane.xlu0 %4580  ;;  %v4584_v45 = vpop.xlane.xlu1 %4583 }
 0xa1c   : > { %8244 = vpow2.f32 %v4631_v56  ;;  %v4615_v60 = vsub.f32 %v10211_v32, %v4581_v53 }
 0xa1d   : > { %8246 = vpow2.f32 %v4635_v2 }
 0xa1e   : > { %8248 = vpow2.f32 %v4633_v34  ;;  %v4637_v30 = vmul.f32 1.442695, %v4615_v60 }
 0xa1f   : > { %v4762_v27 = vpop.permute.xlu0 %4761  ;;  %v4590_v3 = vpop.xlane.xlu1 %4589 }
 0xa20   : > { %7638 = vmatpush3.bf16.msra.mxu0 %v4762_v27  ;;  %v4618_v2 = vsub.f32 %v10189_v39, %v4590_v3  ;;  %8250 = vpow2.f32 %v4637_v30 }
 0xa21   : > { %v10263_v46 = vpop.eup %8242  ;;  %7649 = vmatprep.subr.bf16.mxu0 %v11187_v62 }
 0xa22   : > { %v4663_v6 = vsel %vm1600_vm2, %v10263_v46, 0.0  ;;  %v4643_v27 = vmul.f32 1.442695, %v4618_v2 }
 0xa23   : > { %4664 = vadd.xlane.f32.xlu0 %v4663_v6  ;;  %v4596_v56 = vpop.xlane.xlu1 %4595  ;;  %v4616_v6 = vsub.f32 %v10215_v9, %v4584_v45 }
 0xa24   : > { %8252 = vpow2.f32 %v4643_v27  ;;  %v4620_v52 = vsub.f32 %v10225_v33, %v4596_v56 }
 0xa25   : > { %v4639_v0 = vmul.f32 1.442695, %v4616_v6 }
 0xa26   : > { %v4647_v3 = vmul.f32 1.442695, %v4620_v52 }
 0xa29   : > { %v10268_v4 = vpop.eup %8244 }
 0xa2a   : > { %v4666_v10 = vsel %vm1600_vm2, %v10268_v4, 0.0  ;;  %v10272_v49 = vpop.eup %8246 }
 0xa2b   : > { %4667 = vadd.xlane.f32.xlu1 %v4666_v10  ;;  %v4672_v11 = vsel %vm1600_vm2, %v10272_v49, 0.0  ;;  %v4602_v10 = vpop.xlane.xlu1 %4601  ;;  %v10284_v53 = vpop.eup %8248 }
 0xa2c   : > { %v4622_v17 = vsub.f32 %v10193_v40, %v4602_v10  ;;  %v4669_v45 = vsel %vm1600_vm2, %v10284_v53, 0.0 }
 0xa2d   : > { %v10290_v60 = vpop.eup %8250 }
 0xa2e   : > { %v4651_v34 = vmul.f32 1.442695, %v4622_v17 }
 0xa2f   : > { %4673 = vadd.xlane.f32.xlu1 %v4672_v11 }
 0xa39   : > { %4855 = vrot.lane.b32.xlu0 %v9082_v16, %s8657_s27 }
 0xa50   : > { %v4587_v11 = vpop.xlane.xlu0 %4586 }
 0xa51   : > { %v4617_v16 = vsub.f32 %v10187_v15, %v4587_v11 }
 0xa53   : > { %v4641_v58 = vmul.f32 1.442695, %v4617_v16 }
 0xa54   : > { %v4593_v32 = vpop.xlane.xlu0 %4592 }
 0xa55   : > { %8254 = vpow2.f32 %v4641_v58  ;;  %v4619_v39 = vsub.f32 %v10221_v22, %v4593_v32  ;;  %v10295_v22 = vpop.eup %8252 }
 0xa56   : > { %8256 = vpow2.f32 %v4639_v0  ;;  %v4675_v0 = vsel %vm1600_vm2, %v10290_v60, 0.0  ;;  %v4684_v27 = vsel %vm1600_vm2, %v10295_v22, 0.0 }
 0xa57   : > { %v4645_v9 = vmul.f32 1.442695, %v4619_v39 }
 0xa58   : > { %v4599_v15 = vpop.xlane.xlu0 %4598  ;;  %4670 = vadd.xlane.f32.xlu0 %v4669_v45 }
 0xa59   : > { %8258 = vpow2.f32 %v4645_v9  ;;  %v4621_v40 = vsub.f32 %v10191_v21, %v4599_v15  ;;  %v4608_v15 = vpop.xlane.xlu1 %4607 }
 0xa5a   : > { %8260 = vpow2.f32 %v4651_v34 }
 0xa5b   : > { %v4649_v30 = vmul.f32 1.442695, %v4621_v40 }
 0xa5c   : > { %4676 = vadd.xlane.f32.xlu0 %v4675_v0  ;;  %v4605_v33 = vpop.xlane.xlu0 %4604 }
 0xa5d   : > { %8262 = vpow2.f32 %v4649_v30  ;;  %v4623_v2 = vsub.f32 %v10229_v12, %v4605_v33 }
 0xa5e   : > { %8264 = vpow2.f32 %v4647_v3 }
 0xa5f   : > { %v4653_v56 = vmul.f32 1.442695, %v4623_v2 }
 0xa60   : > { %4685 = vadd.xlane.f32.xlu0 %v4684_v27 }
 0xa61   : > { %8266 = vpow2.f32 %v4653_v56 }
 0xa62   : > { %v10300_v21 = vpop.eup %8254 }
 0xa63   : > { %v10302_v6 = vpop.eup %8256  ;;  %v4681_v10 = vsel %vm1600_vm2, %v10300_v21, 0.0 }
 0xa64   : > { %4682 = vadd.xlane.f32.xlu1 %v4681_v10  ;;  %v4678_v16 = vsel %vm1600_vm2, %v10302_v6, 0.0 }
 0xa66   : > { %v10306_v11 = vpop.eup %8258 }
 0xa67   : > { %v4687_v12 = vsel %vm1600_vm2, %v10306_v11, 0.0  ;;  %v10312_v17 = vpop.eup %8260 }
 0xa68   : > { %4688 = vadd.xlane.f32.xlu0 %v4687_v12  ;;  %4679 = vadd.xlane.f32.xlu1 %v4678_v16  ;;  %v4696_v32 = vsel %vm1600_vm2, %v10312_v17, 0.0 }
 0xa6a   : > { %v10314_v58 = vpop.eup %8262 }
 0xa6b   : > { %v4693_v39 = vsel %vm1600_vm2, %v10314_v58, 0.0  ;;  %v10320_v52 = vpop.eup %8264 }
 0xa6c   : > { %4697 = vadd.xlane.f32.xlu0 %v4696_v32  ;;  %4694 = vadd.xlane.f32.xlu1 %v4693_v39  ;;  %v4690_v45 = vsel %vm1600_vm2, %v10320_v52, 0.0 }
 0xa6e   : > { %v10322_v34 = vpop.eup %8266 }
 0xa6f   : > { %v4699_v9 = vsel %vm1600_vm2, %v10322_v34, 0.0 }
 0xa70   : > { %v4659_v40 = vpop.xlane.xlu0 %4658  ;;  %4700 = vadd.xlane.f32.xlu0 %v4699_v9  ;;  %4691 = vadd.xlane.f32.xlu1 %v4690_v45 }
 0xa71   : > { %8268 = vrcp.f32 %v4659_v40 }
 0xa74   : > { %v4662_v3 = vpop.xlane.xlu1 %4661 }
 0xa75   : > { %8270 = vrcp.f32 %v4662_v3 }
 0xa78   : > { %v4903_v10 = vpop.permute.xlu1 %4902 }
 0xa7e   : > { %v8269_v30 = vpop.eup %8268 }
 0xa7f   : > { %v4737_v33 = vmul.f32 %v8269_v30, %v10249_v50 }
 0xa81   : > { %4996 = vrot.lane.b32.xlu1 %v9097_v38, %s8657_s27  ;;  %v11195_v38 = vpack.i.bf16 %v9787_v28, %v9785_v47  ;;  %v11196_v28 = vpack.i.bf16 %v9793_v14, %v9791_v8 }
 0xa82   : > { %v8271_v0 = vpop.eup %8270 }
 0xa83   : > { %v4738_v2 = vmul.f32 %v8271_v0, %v10254_v57 }
 0xa85   : > { %5043 = vrot.lane.b32.xlu1 %v9128_v20, %s8657_s27  ;;  %v4753_v56 = vpack.c.bf16 %v4738_v2, %v4737_v33  ;;  %v4624_v20 = vsub.f32 %v10233_v59, %v4608_v15 }
 0xa86   : > { %4949 = vrot.lane.b32.xlu0 %v9105_v48, %s8657_s27 }
 0xa87   : > { %7640 = vmatmul.mubr.msk.bf16.vlgmr.msra.gmra.mxu0 %vm1600_vm2, %v4753_v56  ;;  %v4655_v50 = vmul.f32 1.442695, %v4624_v20 }
 0xa88   : > { %7651 = vmatprep.mubr.msk.bf16.mxu0 %vm8654_vm0, %v11187_v62 }
 0xa89   : > { %8272 = vpow2.f32 %v4655_v50 }
 0xa8a   : > { %7847 = vrot.lane.b32.xlu0 %v11195_v38, %s8657_s27 }
 0xa8e   : > { %7857 = vrot.lane.b32.xlu0 %v7856_v61, %s8656_s9 }
 0xa96   : > { %v10348_v48 = vpop.eup %8272 }
 0xa97   : > { %v4702_v57 = vsel %vm1600_vm2, %v10348_v48, 0.0 }
 0xaa9   : > { %4703 = vadd.xlane.f32.xlu1 %v4702_v57 }
 0xaac   : > { %v4665_v27 = vpop.xlane.xlu0 %4664 }
 0xaad   : > { %8274 = vrcp.f32 %v4665_v27 }
 0xab0   : > { %v4856_v12 = vpop.permute.xlu0 %4855 }
 0xab1   : > { %7650 = vmatpush3.bf16.msra.mxu0 %v4856_v12 }
 0xab2   : > { %7661 = vmatprep.subr.bf16.mxu0 %v11187_v62 }
 0xab4   : > { %v4668_v47 = vpop.xlane.xlu1 %4667 }
 0xab5   : > { %8276 = vrcp.f32 %v4668_v47 }
 0xaba   : > { %5090 = vrot.lane.b32.xlu1 %v9120_v5, %s8657_s27  ;;  %v8275_v7 = vpop.eup %8274  ;;  %v4674_v5 = vpop.xlane.xlu1 %4673 }
 0xabb   : > { %v4739_v61 = vmul.f32 %v8275_v7, %v10263_v46  ;;  %8278 = vrcp.f32 %v4674_v5 }
 0xabe   : > { %7852 = vrot.lane.b32.xlu1 %v11196_v28, %s8657_s27 }
 0xac2   : > { %v8277_v44 = vpop.eup %8276  ;;  %7862 = vrot.lane.b32.xlu1 %v7861_v19, %s8656_s9 }
 0xac3   : > { %v4740_v59 = vmul.f32 %v8277_v44, %v10268_v4 }
 0xac5   : > { %v4754_v16 = vpack.c.bf16 %v4740_v59, %v4739_v61 }
 0xac7   : > { %7646 = vmatmul.mubr.msk.bf16.vlgmr.msra.gmra.mxu1 %vm1600_vm2, %v4754_v16 }
 0xac8   : > { %7656 = vmatpush3.bf16.msra.mxu1 %v4903_v10  ;;  %7657 = vmatprep.mubr.msk.bf16.mxu1 %vm8654_vm0, %v11187_v62  ;;  %v8279_v51 = vpop.eup %8278 }
 0xac9   : > { %7667 = vmatprep.subr.bf16.mxu1 %v11187_v62  ;;  %v4742_v4 = vmul.f32 %v8279_v51, %v10272_v49 }
 0xae1   : > { %v4671_v8 = vpop.xlane.xlu0 %4670 }
 0xae2   : > { %8280 = vrcp.f32 %v4671_v8 }
 0xae5   : > { %v4677_v14 = vpop.xlane.xlu0 %4676 }
 0xae9   : > { %v4686_v26 = vpop.xlane.xlu0 %4685 }
 0xaea   : > { %8282 = vrcp.f32 %v4686_v26 }
 0xaed   : > { %v4683_v19 = vpop.xlane.xlu1 %4682 }
 0xaee   : > { %8284 = vrcp.f32 %v4683_v19 }
 0xaef   : > { %v8281_v46 = vpop.eup %8280  ;;  %8286 = vrcp.f32 %v4677_v14  ;;  %v11197_v14 = vmov 0  }
 0xaf0   : > { %v4741_v32 = vmul.f32 %v8281_v46, %v10284_v53 }
 0xaf1   : > { %v4689_v39 = vpop.xlane.xlu0 %4688  ;;  %v4680_v9 = vpop.xlane.xlu1 %4679 }
 0xaf2   : > { %v4755_v45 = vpack.c.bf16 %v4742_v4, %v4741_v32  ;;  %8288 = vrcp.f32 %v4680_v9  ;;  %v7998_v4 = vld [vmem:[%s8919_s16 + $0x38] sm:$0xff]   ;;  %v7999_v32 = vld [vmem:[%s8919_s16 + $0x30] sm:$0xff]   ;;  %v8001_v9 = vld [vmem:[%s8919_s16 + $0x20] sm:$0xff]  }
 0xaf4   : > { %7652 = vmatmul.mubr.msk.bf16.vlgmr.msra.gmra.mxu0 %vm1600_vm2, %v4755_v45 }
 0xaf5   : > { %v4698_v15 = vpop.xlane.xlu0 %4697  ;;  %v4695_v40 = vpop.xlane.xlu1 %4694  ;;  %7663 = vmatprep.mubr.msk.bf16.mxu0 %vm8654_vm0, %v11187_v62 }
 0xaf6   : > { %8290 = vrcp.f32 %v4698_v15 }
 0xaf7   : > { %8292 = vrcp.f32 %v4695_v40  ;;  %v8283_v3 = vpop.eup %8282 }
 0xaf8   : > { %8294 = vrcp.f32 %v4689_v39  ;;  %v4746_v53 = vmul.f32 %v8283_v3, %v10295_v22  ;;  %v8000_v39 = vld [vmem:[%s8919_s16 + $0x28] sm:$0xff]  }
 0xaf9   : > { %v4701_v30 = vpop.xlane.xlu0 %4700  ;;  %v4692_v49 = vpop.xlane.xlu1 %4691 }
 0xafa   : > { %8296 = vrcp.f32 %v4692_v49  ;;  %v11200_v49 = vpack.i.bf16 %v9805_v55, %v9801_v42  ;;  %v11202_v42 = vld [vmem:[#allocation42_spill] sm:$0xff] }
 0xafb   : > { %v8285_v0 = vpop.eup %8284  ;;  %8298 = vrcp.f32 %v4701_v30  ;;  %v11203_v55 = vpack.i.bf16 %v9811_v54, %v11202_v42  ;;  %v11206_v54 = vpack.i.bf16 %v10157_v37, %v10153_v25  ;;  %v11207_v37 = vld [vmem:[#allocation46_spill] sm:$0xff] }
 0xafc   : > { %v4745_v33 = vmul.f32 %v8285_v0, %v10300_v21  ;;  %v8287_v38 = vpop.eup %8286  ;;  %v11201_v0 = vpack.i.bf16 %v10151_v43, %v10147_v13  ;;  %v11204_v43 = vld [vmem:[#allocation27_spill] sm:$0xff] }
 0xafd   : > { %v4950_v2 = vpop.permute.xlu0 %4949  ;;  %v4997_v56 = vpop.permute.xlu1 %4996  ;;  %v4743_v57 = vmul.f32 %v8287_v38, %v10290_v60 }
 0xafe   : > { %7662 = vmatpush3.bf16.msra.mxu0 %v4950_v2  ;;  %v4757_v20 = vpack.c.bf16 %v4746_v53, %v4745_v33 }
 0xaff   : > { %7673 = vmatprep.subr.bf16.mxu0 %v11187_v62  ;;  %v8289_v50 = vpop.eup %8288 }
 0xb00   : > { %v4744_v27 = vmul.f32 %v8289_v50, %v10302_v6 }
 0xb01   : > { %7664 = vmatmul.mubr.msk.bf16.vlgmr.msra.gmra.mxu0 %vm1600_vm2, %v4757_v20  ;;  %v5044_v10 = vpop.permute.xlu1 %5043  ;;  %v7848_v33 = vpop.permute.xlu0 %7847 }
 0xb02   : > { %7674 = vmatpush3.bf16.msra.mxu0 %v5044_v10  ;;  %7675 = vmatprep.mubr.msk.bf16.mxu0 %vm8654_vm0, %v11187_v62  ;;  %v4756_v21 = vpack.c.bf16 %v4744_v27, %v4743_v57  ;;  %v7850_v57 = vunpack.i.h.bf16 %v7848_v33  ;;  %v7849_v27 = vunpack.i.l.bf16 %v7848_v33 }
 0xb03   : > { %v8291_v22 = vpop.eup %8290  ;;  %7685 = vmatprep.subr.bf16.mxu0 %v7998_v4 }
 0xb04   : > { %v8293_v12 = vpop.eup %8292  ;;  %v4750_v47 = vmul.f32 %v8291_v22, %v10312_v17  ;;  %7658 = vmatmul.mubr.msk.bf16.vlgmr.msra.gmra.mxu1 %vm1600_vm2, %v4756_v21  ;;  %v5330_v21 = vsel %vm1223_vm1, %v11204_v43, %v7850_v57 }
 0xb05   : > { %v4749_v28 = vmul.f32 %v8293_v12, %v10314_v58  ;;  %v8295_v7 = vpop.eup %8294  ;;  %7668 = vmatpush3.bf16.msra.mxu1 %v4997_v56  ;;  %7669 = vmatprep.mubr.msk.bf16.mxu1 %vm8654_vm0, %v11187_v62  ;;  %v7858_v50 = vpop.permute.xlu0 %7857  ;;  %v11205_v12 = vld [vmem:[#allocation26_spill] sm:$0xff] }
 0xb06   : > { %7679 = vmatprep.subr.bf16.mxu1 %v11187_v62  ;;  %v4747_v44 = vmul.f32 %v8295_v7, %v10306_v11  ;;  %v7860_v10 = vunpack.i.h.bf16 %v7858_v50  ;;  %v7859_v22 = vunpack.i.l.bf16 %v7858_v50  ;;  %v11220_v50 = vld [vmem:[#allocation28_spill] sm:$0xff] }
 0xb07   : > { %v4759_v60 = vpack.c.bf16 %v4750_v47, %v4749_v28  ;;  %v8297_v6 = vpop.eup %8296  ;;  %v5329_v47 = vsel %vm1223_vm1, %v11205_v12, %v7849_v27 }
 0xb08   : > { %v4748_v61 = vmul.f32 %v8297_v6, %v10320_v52  ;;  %v8299_v16 = vpop.eup %8298  ;;  %v5346_v6 = vsel %vm5345_vm3, %v5329_v47, %v7859_v22 }
 0xb09   : > { %7676 = vmatmul.mubr.msk.bf16.vlgmr.msra.gmra.mxu0 %vm1600_vm2, %v4759_v60  ;;  %v4751_v11 = vmul.f32 %v8299_v16, %v10322_v34  ;;  %v11198_v34 = vpack.i.bf16 %v9799_v63, %v9797_v31  ;;  %v8002_v31 = vld [vmem:[%s8919_s16 + $0x18] sm:$0xff]   ;;  %v8003_v63 = vld [vmem:[%s8919_s16 + $0x10] sm:$0xff]  }
 0xb0a   : > { %v4758_v17 = vpack.c.bf16 %v4748_v61, %v4747_v44  ;;  %7686 = vmatpush3.bf16.msra.mxu0 %v7998_v4  ;;  %v5347_v44 = vsel %vm5345_vm3, %v5330_v21, %v7860_v10 }
 0xb0b   : > { %7687 = vmatprep.subr.bf16.mxu0 %v7999_v32 }
 0xb0c   : > { %7670 = vmatmul.mubr.msk.bf16.vlgmr.msra.gmra.mxu1 %vm1600_vm2, %v4758_v17 }
 0xb0d   : > { %7681 = vmatprep.mubr.msk.bf16.mxu1 %vm8654_vm0, %v11187_v62 }
 0xb0e   : > { %7688 = vmatpush3.bf16.msra.mxu0 %v7999_v32 }
 0xb0f   : > { %7689 = vmatprep.subr.bf16.mxu0 %v8000_v39 }
 0xb12   : > { %7690 = vmatpush3.bf16.msra.mxu0 %v8000_v39 }
 0xb13   : > { %7691 = vmatprep.subr.bf16.mxu0 %v8001_v9 }
 0xb16   : > { %7692 = vmatpush3.bf16.msra.mxu0 %v8001_v9  ;;  %v11210_v9 = vld [vmem:[#allocation44_spill] sm:$0xff] }
 0xb17   : > { %7693 = vmatprep.subr.bf16.mxu0 %v8002_v31 }
 0xb1a   : > { %7694 = vmatpush3.bf16.msra.mxu0 %v8002_v31  ;;  %v11211_v31 = vld [vmem:[#allocation43_spill] sm:$0xff] }
 0xb1b   : > { %7695 = vmatprep.subr.bf16.mxu0 %v8003_v63 }
 0xb1e   : > { %7696 = vmatpush3.bf16.msra.mxu0 %v8003_v63  ;;  %v11212_v63 = vpack.i.bf16 %v11210_v9, %v11211_v31 }
 0xb32   : > { %v4704_v58 = vpop.xlane.xlu1 %4703 }
 0xb33   : > { %8300 = vrcp.f32 %v4704_v58 }
 0xb36   : > { %v5091_v59 = vpop.permute.xlu1 %5090 }
 0xb37   : > { %7680 = vmatpush3.bf16.msra.mxu1 %v5091_v59 }
 0xb40   : > { %v8301_v5 = vpop.eup %8300 }
 0xb41   : > { %v4752_v52 = vmul.f32 %v8301_v5, %v10348_v48  ;;  %v11199_v48 = vpack.i.bf16 %v10145_v41, %v10143_v35  ;;  %v8004_v35 = vld [vmem:[%s8919_s16 + $0x8] sm:$0xff]   ;;  %v8005_v41 = vld [vmem:[%s8919_s16] sm:$0xff]  }
 0xb42   : > { %7697 = vmatprep.subr.bf16.mxu0 %v8004_v35 }
 0xb43   : > { %v4760_v8 = vpack.c.bf16 %v4752_v52, %v4751_v11  ;;  %7698 = vmatpush3.bf16.msra.mxu0 %v8004_v35  ;;  %v11213_v35 = vpack.i.bf16 %v10169_v24, %v10165_v18  ;;  %v11218_v18 = vpack.i.bf16 %v10199_v23, %v10197_v29  ;;  %v7853_v24 = vpop.permute.xlu1 %7852 }
 0xb44   : > { %7699 = vmatprep.subr.bf16.mxu0 %v8005_v41  ;;  %v7855_v33 = vunpack.i.h.bf16 %v7853_v24 }
 0xb45   : > { %7682 = vmatmul.mubr.msk.bf16.vlgmr.msra.gmra.mxu1 %vm1600_vm2, %v4760_v8 }
 0xb46   : > { %5974 = vmatprep.mubr.bf16.mxu1 %v11197_v14 }
 0xb47   : > { %v4801_v62 = vpop.f32.mrf.mxu0  ;;  %7700 = vmatpush3.bf16.msra.mxu0 %v8005_v41 }
 0xb49   : > { %v7641_v26 = vpop.f32.mrf.mxu0 }
 0xb4b   : > { %v4804_v51 = vpop.f32.mrf.mxu0 }
 0xb4c   : > { %v7866_v19 = vpack.i.bf16 %v4804_v51, %v4801_v62 }
 0xb4d   : > { %v7642_v46 = vpop.f32.mrf.mxu0 }
 0xb4e   : > { %7867 = vrot.lane.b32.xlu0 %v7866_v19, %s8655_s7  ;;  %v11208_v46 = vld [vmem:[#allocation45_spill] sm:$0xff] }
 0xb52   : > { %7877 = vrot.lane.b32.xlu0 %v11198_v34, %s8657_s27  ;;  %v11209_v34 = vpack.i.bf16 %v11207_v37, %v11208_v46 }
 0xb56   : > { %7887 = vrot.lane.b32.xlu0 %v11199_v48, %s8656_s9 }
 0xb87   : > { %v4848_v45 = vpop.f32.mrf.mxu1 }
 0xb89   : > { %v7647_v15 = vpop.f32.mrf.mxu1 }
 0xb8b   : > { %v4851_v40 = vpop.f32.mrf.mxu1 }
 0xb8c   : > { %v7871_v3 = vpack.i.bf16 %v4851_v40, %v4848_v45  ;;  %v11214_v40 = vpack.i.bf16 %v10163_v36, %v10159_v1  ;;  %v7854_v1 = vunpack.i.l.bf16 %v7853_v24 }
 0xb8d   : > { %v7648_v30 = vpop.f32.mrf.mxu1 }
 0xb8e   : > { %7872 = vrot.lane.b32.xlu1 %v7871_v3, %s8655_s7  ;;  %v11215_v30 = vld [vmem:[#allocation48_spill] sm:$0xff]  ;;  %v5331_v57 = vsel %vm1223_vm1, %v11220_v50, %v7854_v1 }
 0xb92   : > { %7882 = vrot.lane.b32.xlu1 %v11200_v49, %s8657_s27  ;;  %v11216_v49 = vld [vmem:[#allocation47_spill] sm:$0xff] }
 0xb96   : > { %7892 = vrot.lane.b32.xlu1 %v11201_v0, %s8656_s9  ;;  %v11217_v0 = vpack.i.bf16 %v11215_v30, %v11216_v49  ;;  %v11225_v49 = vld [vmem:[#allocation35_spill] sm:$0xff] }
 0xbb4   : > { %v4895_v53 = vpop.f32.mrf.mxu0 }
 0xbb6   : > { %v7653_v2 = vpop.f32.mrf.mxu0 }
 0xbb8   : > { %v4898_v56 = vpop.f32.mrf.mxu0 }
 0xbb9   : > { %v7896_v38 = vpack.i.bf16 %v4898_v56, %v4895_v53  ;;  %v7863_v53 = vpop.permute.xlu1 %7862 }
 0xbba   : > { %v7654_v20 = vpop.f32.mrf.mxu0  ;;  %v7865_v36 = vunpack.i.h.bf16 %v7863_v53  ;;  %v7864_v2 = vunpack.i.l.bf16 %v7863_v53 }
 0xbbb   : > { %7897 = vrot.lane.b32.xlu0 %v7896_v38, %s8655_s7  ;;  %v11219_v38 = vld [vmem:[#allocation29_spill] sm:$0xff] }
 0xbbc   : > { %v5332_v20 = vsel %vm1223_vm1, %v11219_v38, %v7855_v33  ;;  %v5348_v22 = vsel %vm5345_vm3, %v5331_v57, %v7864_v2 }
 0xbbd   : > { %v5349_v29 = vsel %vm5345_vm3, %v5332_v20, %v7865_v36 }
 0xbbf   : > { %7907 = vrot.lane.b32.xlu0 %v11203_v55, %s8657_s27 }
 0xbc0   : > { %v7868_v13 = vpop.permute.xlu0 %7867 }
 0xbc1   : > { %v7870_v28 = vunpack.i.h.bf16 %v7868_v13  ;;  %v7869_v7 = vunpack.i.l.bf16 %v7868_v13  ;;  %v4989_v60 = vpop.f32.mrf.mxu0 }
 0xbc3   : > { %7917 = vrot.lane.b32.xlu0 %v11206_v54, %s8656_s9  ;;  %v7665_v61 = vpop.f32.mrf.mxu0  ;;  %v5363_v17 = vsel %vm5362_vm4, %v5346_v6, %v7869_v7  ;;  %v5364_v58 = vsel %vm5362_vm4, %v5347_v44, %v7870_v28 }
 0xbc4   : > { %v5379_v59 = vpack.c.bf16 %v5364_v58, %v5363_v17  ;;  %v4942_v16 = vpop.f32.mrf.mxu1  ;;  %v7878_v28 = vpop.permute.xlu0 %7877  ;;  %v11221_v17 = vld [vmem:[#allocation31_spill] sm:$0xff] }
 0xbc5   : > { %v4992_v5 = vpop.f32.mrf.mxu0  ;;  %v7879_v6 = vunpack.i.l.bf16 %v7878_v28 }
 0xbc6   : > { %v7926_v11 = vpack.i.bf16 %v4992_v5, %v4989_v60  ;;  %7701 = vmatprep.mubr.bf16.mxu0 %v5379_v59  ;;  %v7659_v52 = vpop.f32.mrf.mxu1  ;;  %v7880_v60 = vunpack.i.h.bf16 %v7878_v28  ;;  %v11222_v59 = vld [vmem:[#allocation30_spill] sm:$0xff] }
 0xbc7   : > { %v7666_v8 = vpop.f32.mrf.mxu0 }
 0xbc8   : > { %7927 = vrot.lane.b32.xlu0 %v7926_v11, %s8655_s7  ;;  %v4945_v62 = vpop.f32.mrf.mxu1  ;;  %v7888_v7 = vpop.permute.xlu0 %7887  ;;  %v5334_v58 = vsel %vm1223_vm1, %v11221_v17, %v7880_v60 }
 0xbc9   : > { %v5083_v26 = vpop.f32.mrf.mxu0  ;;  %v7901_v51 = vpack.i.bf16 %v4945_v62, %v4942_v16  ;;  %v7890_v44 = vunpack.i.h.bf16 %v7888_v7  ;;  %v7889_v54 = vunpack.i.l.bf16 %v7888_v7  ;;  %v5333_v16 = vsel %vm1223_vm1, %v11222_v59, %v7879_v6 }
 0xbca   : > { %v7660_v19 = vpop.f32.mrf.mxu1 }
 0xbcb   : > { %v7677_v25 = vpop.f32.mrf.mxu0  ;;  %7902 = vrot.lane.b32.xlu1 %v7901_v51, %s8655_s7  ;;  %v5350_v52 = vsel %vm5345_vm3, %v5333_v16, %v7889_v54  ;;  %v5351_v8 = vsel %vm5345_vm3, %v5334_v58, %v7890_v44  ;;  %v11228_v58 = vld [vmem:[#allocation38_spill] sm:$0xff]  ;;  %v11229_v16 = vld [vmem:[#allocation37_spill] sm:$0xff] }
 0xbcc   : > { %7937 = vrot.lane.b32.xlu0 %v11209_v34, %s8657_s27  ;;  %v5036_v48 = vpop.f32.mrf.mxu1 }
 0xbcd   : > { %v5086_v4 = vpop.f32.mrf.mxu0 }
 0xbce   : > { %v7671_v32 = vpop.f32.mrf.mxu1  ;;  %v7956_v45 = vpack.i.bf16 %v5086_v4, %v5083_v26 }
 0xbcf   : > { %v7678_v39 = vpop.f32.mrf.mxu0  ;;  %7912 = vrot.lane.b32.xlu1 %v11212_v63, %s8657_s27 }
 0xbd0   : > { %7947 = vrot.lane.b32.xlu0 %v11213_v35, %s8656_s9  ;;  %v5039_v41 = vpop.f32.mrf.mxu1 }
 0xbd1   : > { %v7931_v3 = vpack.i.bf16 %v5039_v41, %v5036_v48 }
 0xbd2   : > { %v7672_v15 = vpop.f32.mrf.mxu1 }
 0xbd3   : > { %7922 = vrot.lane.b32.xlu1 %v11214_v40, %s8656_s9  ;;  %v11223_v15 = vld [vmem:[#allocation33_spill] sm:$0xff] }
 0xbd4   : > { %7957 = vrot.lane.b32.xlu0 %v7956_v45, %s8655_s7 }
 0xbd7   : > { %7932 = vrot.lane.b32.xlu1 %v7931_v3, %s8655_s7  ;;  %v11224_v3 = vld [vmem:[#allocation32_spill] sm:$0xff] }
 0xbdb   : > { %7942 = vrot.lane.b32.xlu1 %v11217_v0, %s8657_s27 }
 0xbdf   : > { %7952 = vrot.lane.b32.xlu1 %v11218_v18, %s8656_s9  ;;  %v11226_v18 = vld [vmem:[#allocation34_spill] sm:$0xff] }
 0xc00   : > { %v7873_v56 = vpop.permute.xlu1 %7872 }
 0xc01   : > { %v7875_v27 = vunpack.i.h.bf16 %v7873_v56  ;;  %v7874_v10 = vunpack.i.l.bf16 %v7873_v56 }
 0xc03   : > { %v5366_v23 = vsel %vm5362_vm4, %v5349_v29, %v7875_v27  ;;  %v5365_v42 = vsel %vm5362_vm4, %v5348_v22, %v7874_v10 }
 0xc04   : > { %v5380_v55 = vpack.c.bf16 %v5366_v23, %v5365_v42  ;;  %v7883_v25 = vpop.permute.xlu1 %7882 }
 0xc05   : > { %v5130_v13 = vpop.f32.mrf.mxu1  ;;  %v7885_v34 = vunpack.i.h.bf16 %v7883_v25  ;;  %v7884_v48 = vunpack.i.l.bf16 %v7883_v25 }
 0xc06   : > { %7702 = vmatmul.mubr.bf16.vlgmr.msra.gmra.mxu0 %v5380_v55 }
 0xc07   : > { %v7683_v43 = vpop.f32.mrf.mxu1  ;;  %v5336_v40 = vsel %vm1223_vm1, %v11223_v15, %v7885_v34  ;;  %v5335_v30 = vsel %vm1223_vm1, %v11224_v3, %v7884_v48 }
 0xc08   : > { %v7893_v46 = vpop.permute.xlu1 %7892 }
 0xc09   : > { %v5133_v21 = vpop.f32.mrf.mxu1  ;;  %v7895_v63 = vunpack.i.h.bf16 %v7893_v46  ;;  %v7894_v35 = vunpack.i.l.bf16 %v7893_v46 }
 0xc0a   : > { %v7961_v12 = vpack.i.bf16 %v5133_v21, %v5130_v13 }
 0xc0b   : > { %v7684_v47 = vpop.f32.mrf.mxu1  ;;  %v5352_v38 = vsel %vm5345_vm3, %v5335_v30, %v7894_v35  ;;  %v5353_v20 = vsel %vm5345_vm3, %v5336_v40, %v7895_v63  ;;  %v11231_v40 = vld [vmem:[#allocation41_spill] sm:$0xff]  ;;  %v11232_v30 = vld [vmem:[#allocation40_spill] sm:$0xff] }
 0xc0c   : > { %7962 = vrot.lane.b32.xlu1 %v7961_v12, %s8655_s7 }
 0xc2d   : > { %v7898_v61 = vpop.permute.xlu0 %7897 }
 0xc2e   : > { %v7900_v5 = vunpack.i.h.bf16 %v7898_v61  ;;  %v7899_v11 = vunpack.i.l.bf16 %v7898_v61  ;;  %v11227_v61 = vld [vmem:[#allocation39_spill] sm:$0xff] }
 0xc30   : > { %v5367_v62 = vsel %vm5362_vm4, %v5350_v52, %v7899_v11  ;;  %v5368_v26 = vsel %vm5362_vm4, %v5351_v8, %v7900_v5  ;;  %v11230_v11 = vld [vmem:[#allocation36_spill] sm:$0xff] }
 0xc31   : > { %v7908_v51 = vpop.permute.xlu0 %7907  ;;  %v5381_v19 = vpack.c.bf16 %v5368_v26, %v5367_v62 }
 0xc32   : > { %v7910_v4 = vunpack.i.h.bf16 %v7908_v51  ;;  %v7909_v32 = vunpack.i.l.bf16 %v7908_v51 }
 0xc33   : > { %7705 = vmatprep.mubr.bf16.mxu0 %v5381_v19 }
 0xc34   : > { %v5338_v0 = vsel %vm1223_vm1, %v11225_v49, %v7910_v4  ;;  %v5337_v24 = vsel %vm1223_vm1, %v11226_v18, %v7909_v32 }
 0xc35   : > { %v7918_v37 = vpop.permute.xlu0 %7917 }
 0xc36   : > { %v7920_v9 = vunpack.i.h.bf16 %v7918_v37  ;;  %v7919_v31 = vunpack.i.l.bf16 %v7918_v37 }
 0xc38   : > { %v5354_v1 = vsel %vm5345_vm3, %v5337_v24, %v7919_v31  ;;  %v5355_v36 = vsel %vm5345_vm3, %v5338_v0, %v7920_v9 }
 0xc3a   : > { %v7928_v39 = vpop.permute.xlu0 %7927 }
 0xc3b   : > { %v7930_v41 = vunpack.i.h.bf16 %v7928_v39  ;;  %v7929_v45 = vunpack.i.l.bf16 %v7928_v39 }
 0xc3d   : > { %v7903_v53 = vpop.permute.xlu1 %7902  ;;  %v5371_v50 = vsel %vm5362_vm4, %v5354_v1, %v7929_v45  ;;  %v5372_v57 = vsel %vm5362_vm4, %v5355_v36, %v7930_v41 }
 0xc3e   : > { %v7938_v33 = vpop.permute.xlu0 %7937  ;;  %v7905_v2 = vunpack.i.h.bf16 %v7903_v53  ;;  %v7904_v56 = vunpack.i.l.bf16 %v7903_v53  ;;  %v5383_v42 = vpack.c.bf16 %v5372_v57, %v5371_v50  ;;  %v8366_v57 = vld [vmem:[#allocation2 + $0x30] sm:$0xff] }
 0xc3f   : > { %v7940_v55 = vunpack.i.h.bf16 %v7938_v33  ;;  %v7939_v13 = vunpack.i.l.bf16 %v7938_v33 }
 0xc40   : > { %v5370_v27 = vsel %vm5362_vm4, %v5353_v20, %v7905_v2  ;;  %v5369_v10 = vsel %vm5362_vm4, %v5352_v38, %v7904_v56  ;;  %v10531_v56 = vld [vmem:[%s11233_s25] ss:$0 sm:$0xff] }
 0xc41   : > { %v5382_v22 = vpack.c.bf16 %v5370_v27, %v5369_v10  ;;  %v7913_v29 = vpop.permute.xlu1 %7912  ;;  %v5342_v17 = vsel %vm1223_vm1, %v11227_v61, %v7940_v55  ;;  %v5341_v59 = vsel %vm1223_vm1, %v11228_v58, %v7939_v13  ;;  %v8009_v61 = vld [vmem:[%s8925_s20 + $0x60] ss:$8 sps:$4 sm:$0xff]   ;;  %v8012_v58 = vld [vmem:[%s8925_s20 + $0x50] ss:$8 sps:$4 sm:$0xff]  }
 0xc42   : > { %v7948_v23 = vpop.permute.xlu0 %7947  ;;  %v7915_v43 = vunpack.i.h.bf16 %v7913_v29  ;;  %v7914_v21 = vunpack.i.l.bf16 %v7913_v29 }
 0xc43   : > { %7706 = vmatmul.mubr.bf16.gmra.mxu0 %v5382_v22  ;;  %v7950_v28 = vunpack.i.h.bf16 %v7948_v23  ;;  %v7949_v7 = vunpack.i.l.bf16 %v7948_v23  ;;  %v8367_v23 = vld [vmem:[#allocation2] sm:$0xff] }
 0xc44   : > { %7709 = vmatprep.mubr.bf16.mxu0 %v5383_v42  ;;  %v5340_v5 = vsel %vm1223_vm1, %v11229_v16, %v7915_v43  ;;  %v5339_v52 = vsel %vm1223_vm1, %v11230_v11, %v7914_v21  ;;  %v8368_v43 = vld [vmem:[#allocation2 + $0x18] sm:$0xff]  ;;  %v8015_v16 = vld [vmem:[%s8925_s20 + $0x40] ss:$8 sps:$4 sm:$0xff]  }
 0xc45   : > { %v7923_v12 = vpop.permute.xlu1 %7922  ;;  %v5358_v62 = vsel %vm5345_vm3, %v5341_v59, %v7949_v7  ;;  %v5359_v26 = vsel %vm5345_vm3, %v5342_v17, %v7950_v28  ;;  %v8014_v17 = vld [vmem:[%s8925_s20 + $0x54] ss:$8 sps:$4 sm:$0xff]   ;;  %v8017_v59 = vld [vmem:[%s8925_s20 + $0x44] ss:$8 sps:$4 sm:$0xff]   ;;  %v8018_v11 = vld [vmem:[%s8925_s20 + $0x30] ss:$8 sps:$4 sm:$0xff]  }
 0xc46   : > { %v7958_v47 = vpop.permute.xlu0 %7957  ;;  %v7925_v60 = vunpack.i.h.bf16 %v7923_v12  ;;  %v7924_v6 = vunpack.i.l.bf16 %v7923_v12 }
 0xc47   : > { %v7960_v44 = vunpack.i.h.bf16 %v7958_v47  ;;  %v7959_v54 = vunpack.i.l.bf16 %v7958_v47  ;;  %v8369_v47 = vld [vmem:[#allocation2 + $0x58] sm:$0xff] }
 0xc48   : > { %v5356_v25 = vsel %vm5345_vm3, %v5339_v52, %v7924_v6  ;;  %v5357_v37 = vsel %vm5345_vm3, %v5340_v5, %v7925_v60  ;;  %v8008_v6 = vld [vmem:[%s8925_s20 + $0x74] ss:$8 sps:$4 sm:$0xff]   ;;  %v8023_v52 = vld [vmem:[%s8925_s20 + $0x24] ss:$8 sps:$4 sm:$0xff]  }
 0xc49   : > { %v7933_v8 = vpop.permute.xlu1 %7932  ;;  %v5375_v46 = vsel %vm5362_vm4, %v5358_v62, %v7959_v54  ;;  %v5376_v34 = vsel %vm5362_vm4, %v5359_v26, %v7960_v44  ;;  %v8006_v44 = vld [vmem:[%s8925_s20 + $0x70] ss:$8 sps:$4 sm:$0xff]   ;;  %5942 = vmatprep.subr.bf16.mxu1 %v8008_v6  ;;  %v8011_v54 = vld [vmem:[%s8925_s20 + $0x64] ss:$8 sps:$4 sm:$0xff]   ;;  %v8020_v5 = vld [vmem:[%s8925_s20 + $0x34] ss:$8 sps:$4 sm:$0xff]  }
 0xc4a   : > { %v7935_v51 = vunpack.i.h.bf16 %v7933_v8  ;;  %v7934_v19 = vunpack.i.l.bf16 %v7933_v8  ;;  %v5385_v39 = vpack.c.bf16 %v5376_v34, %v5375_v46  ;;  %5943 = vmatpush1.bf16.msra.mxu1 %v8006_v44  ;;  %v8021_v8 = vld [vmem:[%s8925_s20 + $0x20] ss:$8 sps:$4 sm:$0xff]   ;;  %v8024_v62 = vld [vmem:[%s8925_s20 + $0x10] ss:$8 sps:$4 sm:$0xff]   ;;  %v8026_v26 = vld [vmem:[%s8925_s20 + $0x14] ss:$8 sps:$4 sm:$0xff]  }
 0xc4b   : > { %5944 = vmatprep.subr.bf16.mxu1 %v8011_v54  ;;  %v8378_v54 = vld [vmem:[#allocation2 + $0x60] sm:$0xff] }
 0xc4c   : > { %v5374_v48 = vsel %vm5362_vm4, %v5357_v37, %v7935_v51  ;;  %v5373_v4 = vsel %vm5362_vm4, %v5356_v25, %v7934_v19  ;;  %v8029_v51 = vld [vmem:[%s8925_s20 + $0x4] ss:$8 sps:$4 sm:$0xff]   ;;  %v8027_v19 = vld [vmem:[%s8925_s20] ss:$8 sps:$4 sm:$0xff]  }
 0xc4d   : > { %v5384_v32 = vpack.c.bf16 %v5374_v48, %v5373_v4  ;;  %v7943_v9 = vpop.permute.xlu1 %7942  ;;  %v8370_v48 = vld [vmem:[#allocation2 + $0x50] sm:$0xff] }
 0xc4e   : > { %v7945_v63 = vunpack.i.h.bf16 %v7943_v9  ;;  %v7944_v35 = vunpack.i.l.bf16 %v7943_v9  ;;  %5945 = vmatpush1.bf16.msra.mxu1 %v8009_v61 }
 0xc4f   : > { %7710 = vmatmul.mubr.bf16.gmra.mxu0 %v5384_v32  ;;  %5946 = vmatprep.subr.bf16.mxu1 %v8014_v17 }
 0xc50   : > { %7713 = vmatprep.mubr.bf16.mxu0 %v5385_v39  ;;  %v5344_v3 = vsel %vm1223_vm1, %v11231_v40, %v7945_v63  ;;  %v5343_v49 = vsel %vm1223_vm1, %v11232_v30, %v7944_v35 }
 0xc51   : > { %v7953_v31 = vpop.permute.xlu1 %7952 }
 0xc52   : > { %v7955_v41 = vunpack.i.h.bf16 %v7953_v31  ;;  %v7954_v45 = vunpack.i.l.bf16 %v7953_v31  ;;  %5947 = vmatpush1.bf16.msra.mxu1 %v8012_v58  ;;  %v8371_v31 = vld [vmem:[#allocation2 + $0x68] sm:$0xff] }
 0xc53   : > { %5948 = vmatprep.subr.bf16.mxu1 %v8017_v59 }
 0xc54   : > { %v5360_v24 = vsel %vm5345_vm3, %v5343_v49, %v7954_v45  ;;  %v5361_v53 = vsel %vm5345_vm3, %v5344_v3, %v7955_v41  ;;  %v8372_v45 = vld [vmem:[#allocation2 + $0x8] sm:$0xff] }
 0xc56   : > { %5949 = vmatpush1.bf16.msra.mxu1 %v8015_v16  ;;  %v8379_v16 = vld [vmem:[#allocation2 + $0x70] sm:$0xff] }
 0xc57   : > { %5950 = vmatprep.subr.bf16.mxu1 %v8020_v5 }
 0xc5a   : > { %5951 = vmatpush1.bf16.msra.mxu1 %v8018_v11 }
 0xc5b   : > { %5952 = vmatprep.subr.bf16.mxu1 %v8023_v52  ;;  %v8380_v52 = vld [vmem:[#allocation2 + $0x78] sm:$0xff] }
 0xc5e   : > { %5953 = vmatpush1.bf16.msra.mxu1 %v8021_v8 }
 0xc5f   : > { %5954 = vmatprep.subr.bf16.mxu1 %v8026_v26 }
 0xc62   : > { %5955 = vmatpush1.bf16.msra.mxu1 %v8024_v62 }
 0xc63   : > { %5956 = vmatprep.subr.bf16.mxu1 %v8029_v51  ;;  %v8381_v51 = vld [vmem:[#allocation2 + $0x28] sm:$0xff] }
 0xc66   : > { %5957 = vmatpush1.bf16.msra.mxu1 %v8027_v19 }
 0xc7e   : > { %v7963_v15 = vpop.permute.xlu1 %7962 }
 0xc7f   : > { %v7965_v0 = vunpack.i.h.bf16 %v7963_v15  ;;  %v7964_v18 = vunpack.i.l.bf16 %v7963_v15 }
 0xc81   : > { %v5378_v33 = vsel %vm5362_vm4, %v5361_v53, %v7965_v0  ;;  %v5377_v1 = vsel %vm5362_vm4, %v5360_v24, %v7964_v18  ;;  %v8373_v0 = vld [vmem:[#allocation2 + $0x48] sm:$0xff] }
 0xc82   : > { %v5386_v36 = vpack.c.bf16 %v5378_v33, %v5377_v1  ;;  %v8374_v1 = vld [vmem:[#allocation2 + $0x40] sm:$0xff] }
 0xc84   : > { %7714 = vmatmul.mubr.bf16.gmra.mxu0 %v5386_v36 }
 0xcc6   : > { %v7703_v2 = vpop.f32.mrf.mxu0 }
 0xcc7   : > { %v5501_v13 = vadd.f32 %v7703_v2, %v10531_v56 }
 0xcc8   : > { %v5492_v38 = vpop.f32.mrf.mxu0 }
 0xcc9   : > { %v5493_v20 = vadd.f32 %v10531_v56, %v5492_v38  ;;  %v10550_v28 = vadd.f32 %v8369_v47, %v5501_v13  ;;  %v8377_v13 = vld [vmem:[#allocation2 + $0x38] sm:$0xff] }
 0xcca   : > { %v7704_v50 = vpop.f32.mrf.mxu0 }
 0xccb   : > { %v10534_v27 = vadd.f32 %v8366_v57, %v5493_v20  ;;  %v5504_v29 = vadd.f32 %v7704_v50, %v10531_v56  ;;  %v5622_v60 = vmul.f32 %v10550_v28, %v10550_v28  ;;  %v8375_v50 = vld [vmem:[#allocation2 + $0x20] sm:$0xff] }
 0xccc   : > { %v5495_v10 = vpop.f32.mrf.mxu0 }
 0xccd   : > { %v5496_v22 = vadd.f32 %v10531_v56, %v5495_v10  ;;  %5571 = vadd.xlane.f32.xlu0 %v10534_v27  ;;  %v5620_v55 = vmul.f32 %v10534_v27, %v10534_v27  ;;  %v10545_v21 = vadd.f32 %v8368_v43, %v5504_v29 }
 0xccf   : > { %v10539_v42 = vadd.f32 %v8367_v23, %v5496_v22  ;;  %v5623_v7 = vmul.f32 %v10545_v21, %v10545_v21  ;;  %v8376_v22 = vld [vmem:[#allocation2 + $0x10] sm:$0xff] }
 0xcd1   : > { %5636 = vadd.xlane.f32.xlu0 %v5620_v55  ;;  %5573 = vadd.xlane.f32.xlu1 %v10539_v42  ;;  %v5621_v12 = vmul.f32 %v10539_v42, %v10539_v42 }
 0xcd5   : > { %5638 = vadd.xlane.f32.xlu0 %v5621_v12  ;;  %5577 = vadd.xlane.f32.xlu1 %v10545_v21 }
 0xcd9   : > { %5575 = vadd.xlane.f32.xlu0 %v10550_v28  ;;  %5642 = vadd.xlane.f32.xlu1 %v5623_v7 }
 0xcdd   : > { %5640 = vadd.xlane.f32.xlu0 %v5622_v60 }
 0xd03   : > { %v7707_v25 = vpop.f32.mrf.mxu0 }
 0xd04   : > { %v5517_v9 = vadd.f32 %v7707_v25, %v10531_v56 }
 0xd05   : > { %v5508_v37 = vpop.f32.mrf.mxu0 }
 0xd06   : > { %v5509_v46 = vadd.f32 %v10531_v56, %v5508_v37  ;;  %v10584_v15 = vadd.f32 %v8372_v45, %v5517_v9 }
 0xd07   : > { %v7708_v34 = vpop.f32.mrf.mxu0 }
 0xd08   : > { %v10574_v4 = vadd.f32 %v8370_v48, %v5509_v46  ;;  %v5520_v40 = vadd.f32 %v7708_v34, %v10531_v56  ;;  %v5626_v53 = vmul.f32 %v10584_v15, %v10584_v15 }
 0xd09   : > { %v5511_v32 = vpop.f32.mrf.mxu0 }
 0xd0a   : > { %v5512_v39 = vadd.f32 %v10531_v56, %v5511_v32  ;;  %5579 = vadd.xlane.f32.xlu0 %v10574_v4  ;;  %v5624_v35 = vmul.f32 %v10574_v4, %v10574_v4  ;;  %v10590_v18 = vadd.f32 %v8373_v0, %v5520_v40 }
 0xd0c   : > { %v10579_v63 = vadd.f32 %v8371_v31, %v5512_v39  ;;  %v5627_v38 = vmul.f32 %v10590_v18, %v10590_v18 }
 0xd0e   : > { %5644 = vadd.xlane.f32.xlu0 %v5624_v35  ;;  %5581 = vadd.xlane.f32.xlu1 %v10579_v63  ;;  %v5625_v3 = vmul.f32 %v10579_v63, %v10579_v63 }
 0xd0f   : > { %v7711_v41 = vpop.f32.mrf.mxu0 }
 0xd10   : > { %v5533_v20 = vadd.f32 %v7711_v41, %v10531_v56 }
 0xd11   : > { %v5524_v30 = vpop.f32.mrf.mxu0 }
 0xd12   : > { %5583 = vadd.xlane.f32.xlu0 %v10584_v15  ;;  %5646 = vadd.xlane.f32.xlu1 %v5625_v3  ;;  %v5525_v24 = vadd.f32 %v10531_v56, %v5524_v30  ;;  %v10608_v29 = vadd.f32 %v8376_v22, %v5533_v20 }
 0xd13   : > { %v7712_v49 = vpop.f32.mrf.mxu0 }
 0xd14   : > { %v10596_v36 = vadd.f32 %v8374_v1, %v5525_v24  ;;  %v5536_v23 = vadd.f32 %v7712_v49, %v10531_v56  ;;  %v5630_v12 = vmul.f32 %v10608_v29, %v10608_v29 }
 0xd15   : > { %v5527_v33 = vpop.f32.mrf.mxu0 }
 0xd16   : > { %5648 = vadd.xlane.f32.xlu0 %v5626_v53  ;;  %5585 = vadd.xlane.f32.xlu1 %v10590_v18  ;;  %v5528_v2 = vadd.f32 %v10531_v56, %v5527_v33  ;;  %v5628_v10 = vmul.f32 %v10596_v36, %v10596_v36  ;;  %v10614_v43 = vadd.f32 %v8377_v13, %v5536_v23 }
 0xd18   : > { %v10603_v57 = vadd.f32 %v8375_v50, %v5528_v2  ;;  %v5631_v47 = vmul.f32 %v10614_v43, %v10614_v43 }
 0xd1a   : > { %5587 = vadd.xlane.f32.xlu0 %v10596_v36  ;;  %5650 = vadd.xlane.f32.xlu1 %v5627_v38  ;;  %v5629_v55 = vmul.f32 %v10603_v57, %v10603_v57 }
 0xd1e   : > { %5652 = vadd.xlane.f32.xlu0 %v5628_v10  ;;  %5589 = vadd.xlane.f32.xlu1 %v10603_v57 }
 0xd22   : > { %5591 = vadd.xlane.f32.xlu0 %v10608_v29  ;;  %5654 = vadd.xlane.f32.xlu1 %v5629_v55 }
 0xd26   : > { %5656 = vadd.xlane.f32.xlu0 %v5630_v12  ;;  %5593 = vadd.xlane.f32.xlu1 %v10614_v43 }
 0xd2a   : > { %5658 = vadd.xlane.f32.xlu1 %v5631_v47 }
 0xd44   : > { %v7715_v7 = vpop.f32.mrf.mxu0 }
 0xd45   : > { %v5549_v59 = vadd.f32 %v7715_v7, %v10531_v56  ;;  %v10651_v7 = vld [vmem:[%s11235_s15] ss:$0 sm:$0xff] }
 0xd46   : > { %v5540_v60 = vpop.f32.mrf.mxu0 }
 0xd47   : > { %v5541_v6 = vadd.f32 %v10531_v56, %v5540_v60  ;;  %v10632_v8 = vadd.f32 %v8380_v52, %v5549_v59 }
 0xd48   : > { %v7716_v44 = vpop.f32.mrf.mxu0 }
 0xd49   : > { %v10622_v61 = vadd.f32 %v8378_v54, %v5541_v6  ;;  %v5552_v62 = vadd.f32 %v7716_v44, %v10531_v56  ;;  %v5634_v25 = vmul.f32 %v10632_v8, %v10632_v8 }
 0xd4a   : > { %v5543_v17 = vpop.f32.mrf.mxu0 }
 0xd4b   : > { %v5544_v58 = vadd.f32 %v10531_v56, %v5543_v17  ;;  %5595 = vadd.xlane.f32.xlu0 %v10622_v61  ;;  %v5632_v11 = vmul.f32 %v10622_v61, %v10622_v61  ;;  %v10638_v19 = vadd.f32 %v8381_v51, %v5552_v62 }
 0xd4d   : > { %v10627_v5 = vadd.f32 %v8379_v16, %v5544_v58  ;;  %v5635_v56 = vmul.f32 %v10638_v19, %v10638_v19 }
 0xd4f   : > { %5597 = vadd.xlane.f32.xlu1 %v10627_v5  ;;  %5660 = vadd.xlane.f32.xlu0 %v5632_v11  ;;  %v5633_v26 = vmul.f32 %v10627_v5, %v10627_v5 }
 0xd53   : > { %5662 = vadd.xlane.f32.xlu1 %v5633_v26  ;;  %5599 = vadd.xlane.f32.xlu0 %v10632_v8 }
 0xd56   : > { %v5572_v37 = vpop.xlane.xlu0 %5571 }
 0xd57   : > { %v5604_v46 = vmul.f32 0.0078125, %v5572_v37  ;;  %5601 = vadd.xlane.f32.xlu1 %v10638_v19  ;;  %5664 = vadd.xlane.f32.xlu0 %v5634_v25 }
 0xd59   : > { %v5700_v32 = vmul.f32 %v5604_v46, %v5604_v46  ;;  %v5684_v13 = vsub.f32 %v10534_v27, %v5604_v46  ;;  %v10660_v27 = vld [vmem:[%s728_s14] ss:$0 sm:$0xff] }
 0xd5a   : > { %v5637_v34 = vpop.xlane.xlu0 %5636  ;;  %v5574_v48 = vpop.xlane.xlu1 %5573 }
 0xd5b   : > { %v5668_v39 = vmul.f32 0.0078125, %v5637_v34  ;;  %v5605_v9 = vmul.f32 0.0078125, %v5574_v48  ;;  %5666 = vadd.xlane.f32.xlu1 %v5635_v56  ;;  %v8030_v56 = vld [vmem:[%s8927_s12 + $0x78] sm:$0xff]   ;;  %v8032_v48 = vld [vmem:[%s8927_s12 + $0x70] sm:$0xff]  }
 0xd5c   : > { %v8031_v34 = vld [vmem:[%s8927_s12 + $0x38] sm:$0xff]   ;;  %7205 = vmatprep.subr.bf16.mxu0 %v8030_v56  ;;  %7717 = vmatprep.subr.bf16.mxu1 %v8030_v56 }
 0xd5d   : > { %v5716_v31 = vsub.f32 %v5668_v39, %v5700_v32  ;;  %v5701_v40 = vmul.f32 %v5605_v9, %v5605_v9  ;;  %v5685_v60 = vsub.f32 %v10539_v42, %v5605_v9  ;;  %7206 = vmatpush3.bf16.msra.mxu0 %v8031_v34  ;;  %v8033_v32 = vld [vmem:[%s8927_s12 + $0x30] sm:$0xff]   ;;  %v8034_v39 = vld [vmem:[%s8927_s12 + $0x68] sm:$0xff]  }
 0xd5e   : > { %v5639_v35 = vpop.xlane.xlu0 %5638  ;;  %v5578_v41 = vpop.xlane.xlu1 %5577  ;;  %7207 = vmatprep.subr.bf16.mxu0 %v8032_v48  ;;  %v8035_v9 = vld [vmem:[%s8927_s12 + $0x28] sm:$0xff]  }
 0xd5f   : > { %v5732_v45 = vadd.f32 1e-05, %v5716_v31  ;;  %v5669_v3 = vmul.f32 0.0078125, %v5639_v35  ;;  %v5607_v30 = vmul.f32 0.0078125, %v5578_v41  ;;  %v8036_v31 = vld [vmem:[%s8927_s12 + $0x60] sm:$0xff]   ;;  %v8038_v41 = vld [vmem:[%s8927_s12 + $0x58] sm:$0xff]  }
 0xd60   : > { %v8037_v35 = vld [vmem:[%s8927_s12 + $0x20] sm:$0xff]  }
 0xd61   : > { %8302 = vrsqrt.f32 %v5732_v45  ;;  %v5717_v49 = vsub.f32 %v5669_v3, %v5701_v40  ;;  %v5703_v33 = vmul.f32 %v5607_v30, %v5607_v30  ;;  %v5687_v17 = vsub.f32 %v10545_v21, %v5607_v30  ;;  %7208 = vmatpush3.bf16.msra.mxu0 %v8033_v32  ;;  %v8039_v45 = vld [vmem:[%s8927_s12 + $0x18] sm:$0xff]  }
 0xd62   : > { %v5576_v0 = vpop.xlane.xlu0 %5575  ;;  %v5643_v24 = vpop.xlane.xlu1 %5642  ;;  %7209 = vmatprep.subr.bf16.mxu0 %v8034_v39 }
 0xd63   : > { %v5733_v53 = vadd.f32 1e-05, %v5717_v49  ;;  %v5606_v1 = vmul.f32 0.0078125, %v5576_v0  ;;  %v5671_v2 = vmul.f32 0.0078125, %v5643_v24 }
 0xd65   : > { %8304 = vrsqrt.f32 %v5733_v53  ;;  %v5719_v38 = vsub.f32 %v5671_v2, %v5703_v33  ;;  %v5702_v50 = vmul.f32 %v5606_v1, %v5606_v1  ;;  %v5686_v52 = vsub.f32 %v10550_v28, %v5606_v1  ;;  %7210 = vmatpush3.bf16.msra.mxu0 %v8035_v9 }
 0xd66   : > { %v5641_v20 = vpop.xlane.xlu0 %5640  ;;  %7211 = vmatprep.subr.bf16.mxu0 %v8036_v31 }
 0xd67   : > { %v5735_v10 = vadd.f32 1e-05, %v5719_v38  ;;  %v5670_v22 = vmul.f32 0.0078125, %v5641_v20 }
 0xd69   : > { %8306 = vrsqrt.f32 %v5735_v10  ;;  %v5718_v23 = vsub.f32 %v5670_v22, %v5702_v50  ;;  %7212 = vmatpush3.bf16.msra.mxu0 %v8037_v35 }
 0xd6a   : > { %7213 = vmatprep.subr.bf16.mxu0 %v8038_v41 }
 0xd6b   : > { %v5734_v55 = vadd.f32 1e-05, %v5718_v23 }
 0xd6d   : > { %8308 = vrsqrt.f32 %v5734_v55  ;;  %7214 = vmatpush3.bf16.msra.mxu0 %v8039_v45 }
 0xd6e   : > { %v8303_v12 = vpop.eup %8302 }
 0xd6f   : > { %v5764_v47 = vmul.f32 %v8303_v12, %v5684_v13 }
 0xd71   : > { %v5787_v54 = vmul.f32 %v10651_v7, %v5764_v47 }
 0xd72   : > { %v8305_v6 = vpop.eup %8304 }
 0xd73   : > { %v5765_v44 = vmul.f32 %v8305_v6, %v5685_v60  ;;  %v10665_v16 = vadd.f32 %v10660_v27, %v5787_v54 }
 0xd75   : > { %v5788_v58 = vmul.f32 %v10651_v7, %v5765_v44 }
 0xd76   : > { %v8307_v59 = vpop.eup %8306 }
 0xd77   : > { %v10668_v42 = vadd.f32 %v10660_v27, %v5788_v58  ;;  %v5767_v11 = vmul.f32 %v8307_v59, %v5687_v17 }
 0xd79   : > { %v5826_v62 = vpack.c.bf16 %v10668_v42, %v10665_v16  ;;  %v5790_v51 = vmul.f32 %v10651_v7, %v5767_v11 }
 0xd7a   : > { %v8309_v26 = vpop.eup %8308 }
 0xd7b   : > { %5975 = vmatmul.mubr.bf16.vlgmr.msra.gmra.mxu1 %v5826_v62  ;;  %v5766_v21 = vmul.f32 %v8309_v26, %v5686_v52  ;;  %v10680_v46 = vadd.f32 %v10660_v27, %v5790_v51 }
 0xd7c   : > { %5984 = vmatprep.mubr.bf16.mxu1 %v11197_v14  ;;  %7725 = vmatpush3.bf16.msra.mxu1 %v8031_v34 }
 0xd7d   : > { %v5789_v25 = vmul.f32 %v10651_v7, %v5766_v21  ;;  %7718 = vmatprep.subr.bf16.mxu1 %v8032_v48 }
 0xd7f   : > { %v10677_v37 = vadd.f32 %v10660_v27, %v5789_v25 }
 0xd80   : > { %7726 = vmatpush3.bf16.msra.mxu1 %v8033_v32 }
 0xd81   : > { %v5827_v28 = vpack.c.bf16 %v10680_v46, %v10677_v37  ;;  %7719 = vmatprep.subr.bf16.mxu1 %v8034_v39 }
 0xd83   : > { %5985 = vmatmul.mubr.bf16.gmra.mxu1 %v5827_v28 }
 0xd84   : > { %5994 = vmatprep.mubr.bf16.mxu1 %v11197_v14  ;;  %7727 = vmatpush3.bf16.msra.mxu1 %v8035_v9 }
 0xd85   : > { %7720 = vmatprep.subr.bf16.mxu1 %v8036_v31 }
 0xd88   : > { %7728 = vmatpush3.bf16.msra.mxu1 %v8037_v35 }
 0xd89   : > { %7721 = vmatprep.subr.bf16.mxu1 %v8038_v41 }
 0xd8c   : > { %7729 = vmatpush3.bf16.msra.mxu1 %v8039_v45 }
 0xd93   : > { %v5580_v40 = vpop.xlane.xlu0 %5579 }
 0xd94   : > { %v5608_v3 = vmul.f32 0.0078125, %v5580_v40 }
 0xd96   : > { %v5704_v0 = vmul.f32 %v5608_v3, %v5608_v3  ;;  %v5688_v48 = vsub.f32 %v10574_v4, %v5608_v3 }
 0xd97   : > { %v5645_v30 = vpop.xlane.xlu0 %5644  ;;  %v5582_v49 = vpop.xlane.xlu1 %5581 }
 0xd98   : > { %v5672_v24 = vmul.f32 0.0078125, %v5645_v30  ;;  %v5609_v53 = vmul.f32 0.0078125, %v5582_v49 }
 0xd9a   : > { %v5720_v33 = vsub.f32 %v5672_v24, %v5704_v0  ;;  %v5705_v20 = vmul.f32 %v5609_v53, %v5609_v53  ;;  %v5689_v40 = vsub.f32 %v10579_v63, %v5609_v53 }
 0xd9b   : > { %v5584_v1 = vpop.xlane.xlu0 %5583  ;;  %v5647_v2 = vpop.xlane.xlu1 %5646 }
 0xd9c   : > { %v5736_v38 = vadd.f32 1e-05, %v5720_v33  ;;  %v5610_v50 = vmul.f32 0.0078125, %v5584_v1  ;;  %v5673_v10 = vmul.f32 0.0078125, %v5647_v2 }
 0xd9e   : > { %8310 = vrsqrt.f32 %v5736_v38  ;;  %v5721_v22 = vsub.f32 %v5673_v10, %v5705_v20  ;;  %v5706_v13 = vmul.f32 %v5610_v50, %v5610_v50  ;;  %v5690_v20 = vsub.f32 %v10584_v15, %v5610_v50 }
 0xd9f   : > { %v5649_v23 = vpop.xlane.xlu0 %5648  ;;  %v5586_v55 = vpop.xlane.xlu1 %5585 }
 0xda0   : > { %v5737_v12 = vadd.f32 1e-05, %v5721_v22  ;;  %v5674_v47 = vmul.f32 0.0078125, %v5649_v23  ;;  %v5611_v60 = vmul.f32 0.0078125, %v5586_v55 }
 0xda2   : > { %8312 = vrsqrt.f32 %v5737_v12  ;;  %v5722_v6 = vsub.f32 %v5674_v47, %v5706_v13  ;;  %v5707_v58 = vmul.f32 %v5611_v60, %v5611_v60  ;;  %v5691_v15 = vsub.f32 %v10590_v18, %v5611_v60 }
 0xda3   : > { %v5588_v44 = vpop.xlane.xlu0 %5587  ;;  %v5651_v54 = vpop.xlane.xlu1 %5650 }
 0xda4   : > { %v5738_v17 = vadd.f32 1e-05, %v5722_v6  ;;  %v5612_v59 = vmul.f32 0.0078125, %v5588_v44  ;;  %v5675_v11 = vmul.f32 0.0078125, %v5651_v54 }
 0xda6   : > { %8314 = vrsqrt.f32 %v5738_v17  ;;  %v5723_v52 = vsub.f32 %v5675_v11, %v5707_v58  ;;  %v5708_v21 = vmul.f32 %v5612_v59, %v5612_v59 }
 0xda7   : > { %v5653_v62 = vpop.xlane.xlu0 %5652  ;;  %v5590_v26 = vpop.xlane.xlu1 %5589 }
 0xda8   : > { %v5739_v51 = vadd.f32 1e-05, %v5723_v52  ;;  %v5676_v25 = vmul.f32 0.0078125, %v5653_v62  ;;  %v10695_v28 = vmul.f32 0.0078125, %v5590_v26  ;;  %v5692_v52 = vsub.f32 %v10596_v36, %v5612_v59 }
 0xdaa   : > { %8316 = vrsqrt.f32 %v5739_v51  ;;  %v5724_v56 = vsub.f32 %v5676_v25, %v5708_v21  ;;  %v5709_v31 = vmul.f32 %v10695_v28, %v10695_v28  ;;  %v8040_v51 = vld [vmem:[%s8927_s12 + $0x50] sm:$0xff]   ;;  %v5693_v36 = vsub.f32 %v10603_v57, %v10695_v28 }
 0xdab   : > { %v8311_v34 = vpop.eup %8310  ;;  %v5592_v32 = vpop.xlane.xlu0 %5591  ;;  %v8041_v25 = vld [vmem:[%s8927_s12 + $0x10] sm:$0xff]   ;;  %7215 = vmatprep.subr.bf16.mxu0 %v8040_v51  ;;  %7722 = vmatprep.subr.bf16.mxu1 %v8040_v51 }
 0xdac   : > { %v5655_v39 = vpop.xlane.xlu1 %5654  ;;  %v5740_v9 = vadd.f32 1e-05, %v5724_v56  ;;  %v10700_v35 = vmul.f32 0.0078125, %v5592_v32  ;;  %v5768_v45 = vmul.f32 %v8311_v34, %v5688_v48  ;;  %7216 = vmatpush3.bf16.msra.mxu0 %v8041_v25  ;;  %7730 = vmatpush3.bf16.msra.mxu1 %v8041_v25  ;;  %v8042_v32 = vld [vmem:[%s8927_s12 + $0x48] sm:$0xff]  }
 0xdad   : > { %v5677_v41 = vmul.f32 0.0078125, %v5655_v39  ;;  %v8043_v39 = vld [vmem:[%s8927_s12 + $0x8] sm:$0xff]   ;;  %7217 = vmatprep.subr.bf16.mxu0 %v8042_v32  ;;  %7723 = vmatprep.subr.bf16.mxu1 %v8042_v32 }
 0xdae   : > { %8318 = vrsqrt.f32 %v5740_v9  ;;  %v5710_v0 = vmul.f32 %v10700_v35, %v10700_v35  ;;  %v5791_v38 = vmul.f32 %v10651_v7, %v5768_v45  ;;  %v5694_v9 = vsub.f32 %v10608_v29, %v10700_v35 }
 0xdaf   : > { %v5725_v30 = vsub.f32 %v5677_v41, %v5709_v31  ;;  %v8313_v49 = vpop.eup %8312  ;;  %v5657_v24 = vpop.xlane.xlu0 %5656 }
 0xdb0   : > { %v5594_v4 = vpop.xlane.xlu1 %5593  ;;  %v5678_v33 = vmul.f32 0.0078125, %v5657_v24  ;;  %v5769_v2 = vmul.f32 %v8313_v49, %v5689_v40  ;;  %v10713_v47 = vadd.f32 %v10660_v27, %v5791_v38  ;;  %7218 = vmatpush3.bf16.msra.mxu0 %v8043_v39  ;;  %v8044_v40 = vld [vmem:[%s8927_s12 + $0x40] sm:$0xff]   ;;  %7731 = vmatpush3.bf16.msra.mxu1 %v8043_v39 }
 0xdb1   : > { %v5741_v3 = vadd.f32 1e-05, %v5725_v30  ;;  %v10705_v1 = vmul.f32 0.0078125, %v5594_v4  ;;  %v8045_v30 = vld [vmem:[%s8927_s12] sm:$0xff]   ;;  %7219 = vmatprep.subr.bf16.mxu0 %v8044_v40  ;;  %7724 = vmatprep.subr.bf16.mxu1 %v8044_v40 }
 0xdb2   : > { %v5726_v10 = vsub.f32 %v5678_v33, %v5710_v0  ;;  %v5792_v22 = vmul.f32 %v10651_v7, %v5769_v2 }
 0xdb3   : > { %8320 = vrsqrt.f32 %v5741_v3  ;;  %v8315_v63 = vpop.eup %8314  ;;  %v5711_v55 = vmul.f32 %v10705_v1, %v10705_v1  ;;  %v5695_v29 = vsub.f32 %v10614_v43, %v10705_v1 }
 0xdb4   : > { %v5659_v53 = vpop.xlane.xlu1 %5658  ;;  %v5742_v23 = vadd.f32 1e-05, %v5726_v10  ;;  %v5770_v12 = vmul.f32 %v8315_v63, %v5690_v20  ;;  %v10716_v6 = vadd.f32 %v10660_v27, %v5792_v22  ;;  %7220 = vmatpush3.bf16.msra.mxu0 %v8045_v30  ;;  %7732 = vmatpush3.bf16.msra.mxu1 %v8045_v30 }
 0xdb5   : > { %v5679_v13 = vmul.f32 0.0078125, %v5659_v53 }
 0xdb6   : > { %8322 = vrsqrt.f32 %v5742_v23  ;;  %v5828_v54 = vpack.c.bf16 %v10716_v6, %v10713_v47  ;;  %v5793_v11 = vmul.f32 %v10651_v7, %v5770_v12 }
 0xdb7   : > { %v5727_v50 = vsub.f32 %v5679_v13, %v5711_v55  ;;  %v8317_v44 = vpop.eup %8316 }
 0xdb8   : > { %v5771_v58 = vmul.f32 %v8317_v44, %v5691_v15  ;;  %5995 = vmatmul.mubr.bf16.gmra.mxu1 %v5828_v54  ;;  %v10726_v62 = vadd.f32 %v10660_v27, %v5793_v11 }
 0xdb9   : > { %v5743_v17 = vadd.f32 1e-05, %v5727_v50  ;;  %6004 = vmatprep.mubr.bf16.mxu1 %v11197_v14 }
 0xdba   : > { %v5794_v18 = vmul.f32 %v10651_v7, %v5771_v58 }
 0xdbb   : > { %8324 = vrsqrt.f32 %v5743_v17  ;;  %v8319_v60 = vpop.eup %8318 }
 0xdbc   : > { %v10729_v26 = vadd.f32 %v10660_v27, %v5794_v18  ;;  %v5772_v21 = vmul.f32 %v8319_v60, %v5692_v52 }
 0xdbe   : > { %v5829_v59 = vpack.c.bf16 %v10729_v26, %v10726_v62  ;;  %v5795_v48 = vmul.f32 %v10651_v7, %v5772_v21 }
 0xdc0   : > { %v8321_v56 = vpop.eup %8320  ;;  %6005 = vmatmul.mubr.bf16.gmra.mxu1 %v5829_v59  ;;  %v10745_v31 = vadd.f32 %v10660_v27, %v5795_v48 }
 0xdc1   : > { %v5773_v34 = vmul.f32 %v8321_v56, %v5693_v36  ;;  %6014 = vmatprep.mubr.bf16.mxu1 %v11197_v14 }
 0xdc3   : > { %v5796_v57 = vmul.f32 %v10651_v7, %v5773_v34  ;;  %v8323_v28 = vpop.eup %8322 }
 0xdc4   : > { %v5774_v45 = vmul.f32 %v8323_v28, %v5694_v9 }
 0xdc5   : > { %v10748_v41 = vadd.f32 %v10660_v27, %v5796_v57 }
 0xdc6   : > { %v5797_v24 = vmul.f32 %v10651_v7, %v5774_v45 }
 0xdc7   : > { %v5830_v35 = vpack.c.bf16 %v10748_v41, %v10745_v31 }
 0xdc8   : > { %v8325_v49 = vpop.eup %8324  ;;  %v10760_v3 = vadd.f32 %v10660_v27, %v5797_v24 }
 0xdc9   : > { %v5775_v0 = vmul.f32 %v8325_v49, %v5695_v29  ;;  %6015 = vmatmul.mubr.bf16.gmra.mxu1 %v5830_v35 }
 0xdca   : > { %6024 = vmatprep.mubr.bf16.mxu1 %v11197_v14 }
 0xdcb   : > { %v5798_v4 = vmul.f32 %v10651_v7, %v5775_v0 }
 0xdcd   : > { %v10763_v43 = vadd.f32 %v10660_v27, %v5798_v4 }
 0xdcf   : > { %v5831_v33 = vpack.c.bf16 %v10763_v43, %v10760_v3 }
 0xdd1   : > { %6025 = vmatmul.mubr.bf16.gmra.mxu1 %v5831_v33 }
 0xdd2   : > { %6034 = vmatprep.mubr.bf16.mxu1 %v11197_v14 }
 0xdd4   : > { %v5596_v1 = vpop.xlane.xlu0 %5595 }
 0xdd5   : > { %v5616_v2 = vmul.f32 0.0078125, %v5596_v1 }
 0xdd7   : > { %v5712_v10 = vmul.f32 %v5616_v2, %v5616_v2  ;;  %v5696_v34 = vsub.f32 %v10622_v61, %v5616_v2  ;;  %v5850_v2 = vld [vmem:[%s8953_s1] sm:$0x3] }
 0xdd8   : > { %v5598_v38 = vpop.xlane.xlu1 %5597  ;;  %v5661_v20 = vpop.xlane.xlu0 %5660 }
 0xdd9   : > { %v5617_v63 = vmul.f32 0.0078125, %v5598_v38  ;;  %v5680_v53 = vmul.f32 0.0078125, %v5661_v20  ;;  %v11237_v20 = vld [vmem:[#allocation25_spill] sm:$0xff] }
 0xddb   : > { %v5728_v22 = vsub.f32 %v5680_v53, %v5712_v10  ;;  %v5713_v13 = vmul.f32 %v5617_v63, %v5617_v63  ;;  %v5697_v39 = vsub.f32 %v10627_v5, %v5617_v63  ;;  %v11238_v10 = vsub.s32 1, %v11237_v20 }
 0xddc   : > { %v5663_v23 = vpop.xlane.xlu1 %5662  ;;  %v5600_v55 = vpop.xlane.xlu0 %5599 }
 0xddd   : > { %v5744_v12 = vadd.f32 1e-05, %v5728_v22  ;;  %v5681_v15 = vmul.f32 0.0078125, %v5663_v23  ;;  %v5618_v50 = vmul.f32 0.0078125, %v5600_v55  ;;  %v10796_v63 = vrot.slane %v5850_v2, %v11238_v10 }
 0xddf   : > { %8326 = vrsqrt.f32 %v5744_v12  ;;  %v5729_v44 = vsub.f32 %v5681_v15, %v5713_v13  ;;  %v5714_v11 = vmul.f32 %v5618_v50, %v5618_v50  ;;  %v5698_v45 = vsub.f32 %v10632_v8, %v5618_v50 }
 0xde0   : > { %v5602_v54 = vpop.xlane.xlu1 %5601  ;;  %v5665_v17 = vpop.xlane.xlu0 %5664 }
 0xde1   : > { %v5745_v58 = vadd.f32 1e-05, %v5729_v44  ;;  %v5619_v52 = vmul.f32 0.0078125, %v5602_v54  ;;  %v5682_v18 = vmul.f32 0.0078125, %v5665_v17 }
 0xde3   : > { %8328 = vrsqrt.f32 %v5745_v58  ;;  %v5730_v60 = vsub.f32 %v5682_v18, %v5714_v11  ;;  %v5715_v51 = vmul.f32 %v5619_v52, %v5619_v52  ;;  %v5699_v49 = vsub.f32 %v10638_v19, %v5619_v52 }
 0xde4   : > { %v5667_v21 = vpop.xlane.xlu1 %5666 }
 0xde5   : > { %v5746_v25 = vadd.f32 1e-05, %v5730_v60  ;;  %v5683_v36 = vmul.f32 0.0078125, %v5667_v21 }
 0xde7   : > { %8330 = vrsqrt.f32 %v5746_v25  ;;  %v5731_v59 = vsub.f32 %v5683_v36, %v5715_v51 }
 0xde9   : > { %v5747_v56 = vadd.f32 1e-05, %v5731_v59 }
 0xdeb   : > { %8332 = vrsqrt.f32 %v5747_v56 }
 0xdec   : > { %v8327_v48 = vpop.eup %8326 }
 0xded   : > { %v5776_v32 = vmul.f32 %v8327_v48, %v5696_v34 }
 0xdef   : > { %v5799_v28 = vmul.f32 %v10651_v7, %v5776_v32 }
 0xdf0   : > { %v8329_v9 = vpop.eup %8328 }
 0xdf1   : > { %v5777_v57 = vmul.f32 %v8329_v9, %v5697_v39  ;;  %v10774_v29 = vadd.f32 %v10660_v27, %v5799_v28 }
 0xdf3   : > { %v5800_v40 = vmul.f32 %v10651_v7, %v5777_v57 }
 0xdf4   : > { %v8331_v30 = vpop.eup %8330 }
 0xdf5   : > { %v10777_v61 = vadd.f32 %v10660_v27, %v5800_v40  ;;  %v5778_v35 = vmul.f32 %v8331_v30, %v5698_v45 }
 0xdf7   : > { %v5832_v5 = vpack.c.bf16 %v10777_v61, %v10774_v29  ;;  %v5801_v8 = vmul.f32 %v10651_v7, %v5778_v35 }
 0xdf8   : > { %v8333_v0 = vpop.eup %8332 }
 0xdf9   : > { %6035 = vmatmul.mubr.bf16.gmra.mxu1 %v5832_v5  ;;  %v5779_v24 = vmul.f32 %v8333_v0, %v5699_v49  ;;  %v10786_v33 = vadd.f32 %v10660_v27, %v5801_v8 }
 0xdfa   : > { %6044 = vmatprep.mubr.bf16.mxu1 %v11197_v14  ;;  %v11239_v14 = vsub.s32 0, %v11237_v20 }
 0xdfb   : > { %v5802_v4 = vmul.f32 %v10651_v7, %v5779_v24 }
 0xdfc   : > { %v10800_v53 = vrot.slane %v5850_v2, %v11239_v14 }
 0xdfd   : > { %v10789_v1 = vadd.f32 %v10660_v27, %v5802_v4 }
 0xdff   : > { %v5833_v19 = vpack.c.bf16 %v10789_v1, %v10786_v33 }
 0xe01   : > { %6045 = vmatmul.mubr.bf16.gmra.mxu1 %v5833_v19 }
 0xe3b   : > { %v5976_v38 = vpop.f32.mrf.mxu1 }
 0xe3c   : > { %v5977_v55 = vadd.f32 %v5976_v38, %v10800_v53 }
 0xe3d   : > { %v5978_v7 = vpop.f32.mrf.mxu1 }
 0xe3e   : > { %v5979_v23 = vadd.f32 %v5978_v7, %v10796_v63  ;;  %v6055_v17 = vmax.f32 %v5977_v55, 0.0 }
 0xe3f   : > { %v5980_v22 = vpop.f32.mrf.mxu1 }
 0xe40   : > { %v5981_v27 = vadd.f32 %v5980_v22, %v10800_v53  ;;  %v6056_v44 = vmax.f32 %v5979_v23, 0.0 }
 0xe41   : > { %v5982_v13 = vpop.f32.mrf.mxu1 }
 0xe42   : > { %v5983_v12 = vadd.f32 %v5982_v13, %v10796_v63  ;;  %v6057_v15 = vmax.f32 %v5981_v27, 0.0 }
 0xe43   : > { %v5986_v50 = vpop.f32.mrf.mxu1 }
 0xe44   : > { %v6058_v54 = vmax.f32 %v5983_v12, 0.0  ;;  %v6087_v52 = vpack.c.bf16 %v6057_v15, %v6055_v17  ;;  %v5987_v51 = vadd.f32 %v5986_v50, %v10800_v53 }
 0xe45   : > { %v5988_v58 = vpop.f32.mrf.mxu1 }
 0xe46   : > { %v6088_v11 = vpack.c.bf16 %v6058_v54, %v6056_v44  ;;  %v5989_v60 = vadd.f32 %v5988_v58, %v10796_v63  ;;  %v6059_v48 = vmax.f32 %v5987_v51, 0.0 }
 0xe47   : > { %v5990_v18 = vpop.f32.mrf.mxu1 }
 0xe48   : > { %v5991_v21 = vadd.f32 %v5990_v18, %v10800_v53  ;;  %6270 = vmatprep.mubr.bf16.mxu0 %v6088_v11  ;;  %v6060_v56 = vmax.f32 %v5989_v60, 0.0 }
 0xe49   : > { %v5992_v25 = vpop.f32.mrf.mxu1  ;;  %6271 = vmatmul.mubr.bf16.vlgmr.msra.gmra.mxu0 %v6087_v52 }
 0xe4a   : > { %v5993_v36 = vadd.f32 %v5992_v25, %v10796_v63  ;;  %v6061_v59 = vmax.f32 %v5991_v21, 0.0 }
 0xe4c   : > { %v6062_v34 = vmax.f32 %v5993_v36, 0.0  ;;  %v6089_v39 = vpack.c.bf16 %v6061_v59, %v6059_v48 }
 0xe4e   : > { %v6090_v32 = vpack.c.bf16 %v6062_v34, %v6060_v56 }
 0xe50   : > { %6278 = vmatprep.mubr.bf16.mxu0 %v6090_v32 }
 0xe51   : > { %6279 = vmatmul.mubr.bf16.gmra.mxu0 %v6089_v39 }
 0xe78   : > { %v5996_v9 = vpop.f32.mrf.mxu1 }
 0xe79   : > { %v5997_v30 = vadd.f32 %v5996_v9, %v10800_v53 }
 0xe7a   : > { %v5998_v57 = vpop.f32.mrf.mxu1 }
 0xe7b   : > { %v5999_v45 = vadd.f32 %v5998_v57, %v10796_v63  ;;  %v6063_v4 = vmax.f32 %v5997_v30, 0.0 }
 0xe7c   : > { %v6000_v28 = vpop.f32.mrf.mxu1 }
 0xe7d   : > { %v6001_v40 = vadd.f32 %v6000_v28, %v10800_v53  ;;  %v6064_v24 = vmax.f32 %v5999_v45, 0.0 }
 0xe7e   : > { %v6002_v35 = vpop.f32.mrf.mxu1 }
 0xe7f   : > { %v6003_v49 = vadd.f32 %v6002_v35, %v10796_v63  ;;  %v6065_v5 = vmax.f32 %v6001_v40, 0.0 }
 0xe80   : > { %v6006_v0 = vpop.f32.mrf.mxu1 }
 0xe81   : > { %v6066_v8 = vmax.f32 %v6003_v49, 0.0  ;;  %v6091_v38 = vpack.c.bf16 %v6065_v5, %v6063_v4  ;;  %v6007_v7 = vadd.f32 %v6006_v0, %v10800_v53 }
 0xe82   : > { %v6008_v19 = vpop.f32.mrf.mxu1 }
 0xe83   : > { %v6092_v2 = vpack.c.bf16 %v6066_v8, %v6064_v24  ;;  %v6009_v10 = vadd.f32 %v6008_v19, %v10796_v63  ;;  %v6067_v15 = vmax.f32 %v6007_v7, 0.0 }
 0xe84   : > { %v6010_v20 = vpop.f32.mrf.mxu1 }
 0xe85   : > { %v6011_v14 = vadd.f32 %v6010_v20, %v10800_v53  ;;  %6286 = vmatprep.mubr.bf16.mxu0 %v6092_v2  ;;  %v6068_v13 = vmax.f32 %v6009_v10, 0.0 }
 0xe86   : > { %v6012_v22 = vpop.f32.mrf.mxu1  ;;  %6287 = vmatmul.mubr.bf16.gmra.mxu0 %v6091_v38 }
 0xe87   : > { %v6013_v23 = vadd.f32 %v6012_v22, %v10796_v63  ;;  %v6069_v27 = vmax.f32 %v6011_v14, 0.0 }
 0xe89   : > { %v6016_v55 = vpop.f32.mrf.mxu1  ;;  %v6070_v12 = vmax.f32 %v6013_v23, 0.0  ;;  %v6093_v54 = vpack.c.bf16 %v6069_v27, %v6067_v15 }
 0xe8a   : > { %v6017_v52 = vadd.f32 %v6016_v55, %v10800_v53 }
 0xe8b   : > { %v6018_v50 = vpop.f32.mrf.mxu1  ;;  %v6094_v44 = vpack.c.bf16 %v6070_v12, %v6068_v13 }
 0xe8c   : > { %v6019_v58 = vadd.f32 %v6018_v50, %v10796_v63  ;;  %v6071_v59 = vmax.f32 %v6017_v52, 0.0 }
 0xe8d   : > { %v6020_v17 = vpop.f32.mrf.mxu1  ;;  %6294 = vmatprep.mubr.bf16.mxu0 %v6094_v44 }
 0xe8e   : > { %v6021_v11 = vadd.f32 %v6020_v17, %v10800_v53  ;;  %6295 = vmatmul.mubr.bf16.gmra.mxu0 %v6093_v54  ;;  %v6072_v25 = vmax.f32 %v6019_v58, 0.0 }
 0xe8f   : > { %v6022_v18 = vpop.f32.mrf.mxu1 }
 0xe90   : > { %v6023_v60 = vadd.f32 %v6022_v18, %v10796_v63  ;;  %v6073_v21 = vmax.f32 %v6021_v11, 0.0 }
 0xe91   : > { %v6026_v51 = vpop.f32.mrf.mxu1 }
 0xe92   : > { %v6074_v36 = vmax.f32 %v6023_v60, 0.0  ;;  %v6095_v48 = vpack.c.bf16 %v6073_v21, %v6071_v59  ;;  %v6027_v57 = vadd.f32 %v6026_v51, %v10800_v53 }
 0xe93   : > { %v6028_v56 = vpop.f32.mrf.mxu1 }
 0xe94   : > { %v6096_v34 = vpack.c.bf16 %v6074_v36, %v6072_v25  ;;  %v6029_v39 = vadd.f32 %v6028_v56, %v10796_v63  ;;  %v6075_v49 = vmax.f32 %v6027_v57, 0.0  ;;  %v10839_v36 = vld [vmem:[%s735_s0] ss:$0 sm:$0xff] }
 0xe95   : > { %v6030_v32 = vpop.f32.mrf.mxu1 }
 0xe96   : > { %v6031_v9 = vadd.f32 %v6030_v32, %v10800_v53  ;;  %6302 = vmatprep.mubr.bf16.mxu0 %v6096_v34  ;;  %v6076_v30 = vmax.f32 %v6029_v39, 0.0 }
 0xe97   : > { %v6032_v28 = vpop.f32.mrf.mxu1  ;;  %6303 = vmatmul.mubr.bf16.gmra.mxu0 %v6095_v48 }
 0xe98   : > { %v6033_v45 = vadd.f32 %v6032_v28, %v10796_v63  ;;  %v6077_v40 = vmax.f32 %v6031_v9, 0.0 }
 0xe9a   : > { %v6078_v35 = vmax.f32 %v6033_v45, 0.0  ;;  %v6097_v0 = vpack.c.bf16 %v6077_v40, %v6075_v49 }
 0xe9c   : > { %v6098_v5 = vpack.c.bf16 %v6078_v35, %v6076_v30 }
 0xe9e   : > { %6310 = vmatprep.mubr.bf16.mxu0 %v6098_v5 }
 0xe9f   : > { %6311 = vmatmul.mubr.bf16.gmra.mxu0 %v6097_v0 }
 0xeb9   : > { %v6036_v24 = vpop.f32.mrf.mxu1 }
 0xeba   : > { %v6037_v38 = vadd.f32 %v6036_v24, %v10800_v53 }
 0xebb   : > { %v6038_v8 = vpop.f32.mrf.mxu1 }
 0xebc   : > { %v6039_v19 = vadd.f32 %v6038_v8, %v10796_v63  ;;  %v6079_v27 = vmax.f32 %v6037_v38, 0.0 }
 0xebd   : > { %v6040_v4 = vpop.f32.mrf.mxu1 }
 0xebe   : > { %v6041_v2 = vadd.f32 %v6040_v4, %v10800_v53  ;;  %v6080_v22 = vmax.f32 %v6039_v19, 0.0 }
 0xebf   : > { %v6042_v20 = vpop.f32.mrf.mxu1 }
 0xec0   : > { %v6043_v10 = vadd.f32 %v6042_v20, %v10796_v63  ;;  %v6081_v14 = vmax.f32 %v6041_v2, 0.0 }
 0xec1   : > { %v6046_v7 = vpop.f32.mrf.mxu1 }
 0xec2   : > { %v6082_v23 = vmax.f32 %v6043_v10, 0.0  ;;  %v6099_v12 = vpack.c.bf16 %v6081_v14, %v6079_v27  ;;  %v6047_v54 = vadd.f32 %v6046_v7, %v10800_v53 }
 0xec3   : > { %v6048_v55 = vpop.f32.mrf.mxu1 }
 0xec4   : > { %v6100_v13 = vpack.c.bf16 %v6082_v23, %v6080_v22  ;;  %v6049_v50 = vadd.f32 %v6048_v55, %v10796_v63  ;;  %v6083_v60 = vmax.f32 %v6047_v54, 0.0 }
 0xec5   : > { %v6050_v15 = vpop.f32.mrf.mxu1 }
 0xec6   : > { %v6051_v44 = vadd.f32 %v6050_v15, %v10800_v53  ;;  %6318 = vmatprep.mubr.bf16.mxu1 %v6100_v13  ;;  %v6084_v52 = vmax.f32 %v6049_v50, 0.0 }
 0xec7   : > { %v6052_v17 = vpop.f32.mrf.mxu1  ;;  %6319 = vmatmul.mubr.bf16.vlgmr.msra.gmra.mxu1 %v6099_v12 }
 0xec8   : > { %v6053_v58 = vadd.f32 %v6052_v17, %v10796_v63  ;;  %v6085_v11 = vmax.f32 %v6051_v44, 0.0 }
 0xeca   : > { %v6086_v18 = vmax.f32 %v6053_v58, 0.0  ;;  %v6101_v51 = vpack.c.bf16 %v6085_v11, %v6083_v60 }
 0xecc   : > { %v6102_v21 = vpack.c.bf16 %v6086_v18, %v6084_v52 }
 0xece   : > { %6326 = vmatprep.mubr.bf16.mxu1 %v6102_v21 }
 0xecf   : > { %6327 = vmatmul.mubr.bf16.gmra.mxu1 %v6101_v51 }
 0xf09   : > { %v7221_v25 = vpop.f32.mrf.mxu0 }
 0xf0b   : > { %v7222_v53 = vpop.f32.mrf.mxu0 }
 0xf0c   : > { %v7223_v59 = vadd.f32 %v7222_v53, %v7221_v25 }
 0xf0d   : > { %v7224_v56 = vpop.f32.mrf.mxu0 }
 0xf0e   : > { %v6273_v63 = vadd.f32 %v7223_v59, %v10839_v36 }
 0xf0f   : > { %v7225_v34 = vpop.f32.mrf.mxu0 }
 0xf10   : > { %v7226_v48 = vadd.f32 %v7225_v34, %v7224_v56  ;;  %v10843_v32 = vadd.f32 %v6273_v63, %v10665_v16 }
 0xf11   : > { %v7227_v39 = vpop.f32.mrf.mxu0 }
 0xf12   : > { %v6276_v9 = vadd.f32 %v7226_v48, %v10839_v36  ;;  %6351 = vadd.xlane.f32.xlu0 %v10843_v32  ;;  %v6399_v40 = vmul.f32 %v10843_v32, %v10843_v32 }
 0xf13   : > { %v7228_v57 = vpop.f32.mrf.mxu0 }
 0xf14   : > { %v7229_v28 = vadd.f32 %v7228_v57, %v7227_v39  ;;  %v10848_v45 = vadd.f32 %v6276_v9, %v10668_v42 }
 0xf15   : > { %v7230_v30 = vpop.f32.mrf.mxu0 }
 0xf16   : > { %v6281_v35 = vadd.f32 %v7229_v28, %v10839_v36  ;;  %6353 = vadd.xlane.f32.xlu1 %v10848_v45  ;;  %6415 = vadd.xlane.f32.xlu0 %v6399_v40  ;;  %v6400_v5 = vmul.f32 %v10848_v45, %v10848_v45 }
 0xf17   : > { %v7231_v16 = vpop.f32.mrf.mxu0 }
 0xf18   : > { %v7232_v49 = vadd.f32 %v7231_v16, %v7230_v30  ;;  %v10857_v0 = vadd.f32 %v6281_v35, %v10677_v37 }
 0xf1a   : > { %v6284_v42 = vadd.f32 %v7232_v49, %v10839_v36  ;;  %6417 = vadd.xlane.f32.xlu1 %v6400_v5  ;;  %6355 = vadd.xlane.f32.xlu0 %v10857_v0  ;;  %v6401_v8 = vmul.f32 %v10857_v0, %v10857_v0 }
 0xf1c   : > { %v10862_v24 = vadd.f32 %v6284_v42, %v10680_v46 }
 0xf1e   : > { %6357 = vadd.xlane.f32.xlu1 %v10862_v24  ;;  %6419 = vadd.xlane.f32.xlu0 %v6401_v8  ;;  %v6402_v4 = vmul.f32 %v10862_v24, %v10862_v24 }
 0xf22   : > { %6421 = vadd.xlane.f32.xlu1 %v6402_v4 }
 0xf46   : > { %v7233_v37 = vpop.f32.mrf.mxu0 }
 0xf48   : > { %v7234_v19 = vpop.f32.mrf.mxu0 }
 0xf49   : > { %v7235_v2 = vadd.f32 %v7234_v19, %v7233_v37 }
 0xf4a   : > { %v7236_v38 = vpop.f32.mrf.mxu0 }
 0xf4b   : > { %v6289_v20 = vadd.f32 %v7235_v2, %v10839_v36 }
 0xf4c   : > { %v7237_v10 = vpop.f32.mrf.mxu0 }
 0xf4d   : > { %v7238_v14 = vadd.f32 %v7237_v10, %v7236_v38  ;;  %v10871_v46 = vadd.f32 %v6289_v20, %v10713_v47 }
 0xf4e   : > { %v7239_v7 = vpop.f32.mrf.mxu0 }
 0xf4f   : > { %v6292_v22 = vadd.f32 %v7238_v14, %v10839_v36  ;;  %6359 = vadd.xlane.f32.xlu0 %v10871_v46  ;;  %v6403_v13 = vmul.f32 %v10871_v46, %v10871_v46 }
 0xf50   : > { %v7240_v23 = vpop.f32.mrf.mxu0 }
 0xf51   : > { %v7241_v27 = vadd.f32 %v7240_v23, %v7239_v7  ;;  %v10876_v55 = vadd.f32 %v6292_v22, %v10716_v6 }
 0xf52   : > { %v7242_v12 = vpop.f32.mrf.mxu0 }
 0xf53   : > { %v6297_v15 = vadd.f32 %v7241_v27, %v10839_v36  ;;  %6361 = vadd.xlane.f32.xlu1 %v10876_v55  ;;  %6423 = vadd.xlane.f32.xlu0 %v6403_v13  ;;  %v6404_v44 = vmul.f32 %v10876_v55, %v10876_v55 }
 0xf54   : > { %v7243_v47 = vpop.f32.mrf.mxu0 }
 0xf55   : > { %v7244_v50 = vadd.f32 %v7243_v47, %v7242_v12  ;;  %v10885_v54 = vadd.f32 %v6297_v15, %v10726_v62 }
 0xf57   : > { %v7245_v17 = vpop.f32.mrf.mxu0  ;;  %v6300_v6 = vadd.f32 %v7244_v50, %v10839_v36  ;;  %6425 = vadd.xlane.f32.xlu1 %v6404_v44  ;;  %6363 = vadd.xlane.f32.xlu0 %v10885_v54  ;;  %v6405_v18 = vmul.f32 %v10885_v54, %v10885_v54 }
 0xf59   : > { %v7246_v58 = vpop.f32.mrf.mxu0  ;;  %v10890_v52 = vadd.f32 %v6300_v6, %v10729_v26 }
 0xf5a   : > { %v7247_v11 = vadd.f32 %v7246_v58, %v7245_v17 }
 0xf5b   : > { %v7248_v60 = vpop.f32.mrf.mxu0  ;;  %6365 = vadd.xlane.f32.xlu1 %v10890_v52  ;;  %6427 = vadd.xlane.f32.xlu0 %v6405_v18  ;;  %v6406_v25 = vmul.f32 %v10890_v52, %v10890_v52 }
 0xf5c   : > { %v6305_v21 = vadd.f32 %v7247_v11, %v10839_v36 }
 0xf5d   : > { %v7249_v62 = vpop.f32.mrf.mxu0 }
 0xf5e   : > { %v7250_v51 = vadd.f32 %v7249_v62, %v7248_v60  ;;  %v10899_v53 = vadd.f32 %v6305_v21, %v10745_v31 }
 0xf5f   : > { %v7251_v59 = vpop.f32.mrf.mxu0  ;;  %6429 = vadd.xlane.f32.xlu1 %v6406_v25 }
 0xf60   : > { %v6308_v26 = vadd.f32 %v7250_v51, %v10839_v36  ;;  %6367 = vadd.xlane.f32.xlu0 %v10899_v53  ;;  %v6407_v48 = vmul.f32 %v10899_v53, %v10899_v53 }
 0xf61   : > { %v7252_v56 = vpop.f32.mrf.mxu0 }
 0xf62   : > { %v7253_v63 = vadd.f32 %v7252_v56, %v7251_v59  ;;  %v10904_v34 = vadd.f32 %v6308_v26, %v10748_v41 }
 0xf63   : > { %v7254_v39 = vpop.f32.mrf.mxu0 }
 0xf64   : > { %v6313_v9 = vadd.f32 %v7253_v63, %v10839_v36  ;;  %6369 = vadd.xlane.f32.xlu1 %v10904_v34  ;;  %6431 = vadd.xlane.f32.xlu0 %v6407_v48  ;;  %v6408_v28 = vmul.f32 %v10904_v34, %v10904_v34 }
 0xf65   : > { %v7255_v31 = vpop.f32.mrf.mxu0 }
 0xf66   : > { %v7256_v57 = vadd.f32 %v7255_v31, %v7254_v39  ;;  %v10913_v40 = vadd.f32 %v6313_v9, %v10760_v3 }
 0xf68   : > { %v6316_v41 = vadd.f32 %v7256_v57, %v10839_v36  ;;  %6433 = vadd.xlane.f32.xlu1 %v6408_v28  ;;  %6371 = vadd.xlane.f32.xlu0 %v10913_v40  ;;  %v6409_v35 = vmul.f32 %v10913_v40, %v10913_v40 }
 0xf6a   : > { %v10918_v30 = vadd.f32 %v6316_v41, %v10763_v43 }
 0xf6c   : > { %6373 = vadd.xlane.f32.xlu1 %v10918_v30  ;;  %6435 = vadd.xlane.f32.xlu0 %v6409_v35  ;;  %v6410_v16 = vmul.f32 %v10918_v30, %v10918_v30 }
 0xf70   : > { %6437 = vadd.xlane.f32.xlu1 %v6410_v16 }
 0xf87   : > { %v7257_v3 = vpop.f32.mrf.mxu1 }
 0xf89   : > { %v7258_v49 = vpop.f32.mrf.mxu1 }
 0xf8a   : > { %v7259_v5 = vadd.f32 %v7258_v49, %v7257_v3 }
 0xf8b   : > { %v7260_v42 = vpop.f32.mrf.mxu1 }
 0xf8c   : > { %v6321_v8 = vadd.f32 %v7259_v5, %v10839_v36  ;;  %v10959_v5 = vld [vmem:[%s738_s29] ss:$0 sm:$0xff] }
 0xf8d   : > { %v7261_v4 = vpop.f32.mrf.mxu1 }
 0xf8e   : > { %v7262_v37 = vadd.f32 %v7261_v4, %v7260_v42  ;;  %v10927_v43 = vadd.f32 %v6321_v8, %v10774_v29  ;;  %v10966_v8 = vld [vmem:[%s741_s2] ss:$0 sm:$0xff] }
 0xf8f   : > { %v7263_v19 = vpop.f32.mrf.mxu1 }
 0xf90   : > { %v6324_v2 = vadd.f32 %v7262_v37, %v10839_v36  ;;  %6375 = vadd.xlane.f32.xlu0 %v10927_v43  ;;  %v6411_v14 = vmul.f32 %v10927_v43, %v10927_v43 }
 0xf91   : > { %v7264_v38 = vpop.f32.mrf.mxu1 }
 0xf92   : > { %v7265_v20 = vadd.f32 %v7264_v38, %v7263_v19  ;;  %v10932_v10 = vadd.f32 %v6324_v2, %v10777_v61 }
 0xf93   : > { %v7266_v7 = vpop.f32.mrf.mxu1 }
 0xf94   : > { %v6329_v22 = vadd.f32 %v7265_v20, %v10839_v36  ;;  %6377 = vadd.xlane.f32.xlu1 %v10932_v10  ;;  %6439 = vadd.xlane.f32.xlu0 %v6411_v14  ;;  %v6412_v27 = vmul.f32 %v10932_v10, %v10932_v10 }
 0xf95   : > { %v7267_v29 = vpop.f32.mrf.mxu1 }
 0xf96   : > { %v7268_v23 = vadd.f32 %v7267_v29, %v7266_v7  ;;  %v10941_v13 = vadd.f32 %v6329_v22, %v10786_v33 }
 0xf98   : > { %v6332_v61 = vadd.f32 %v7268_v23, %v10839_v36  ;;  %6441 = vadd.xlane.f32.xlu1 %v6412_v27  ;;  %6379 = vadd.xlane.f32.xlu0 %v10941_v13  ;;  %v6413_v15 = vmul.f32 %v10941_v13, %v10941_v13 }
 0xf9a   : > { %v10946_v12 = vadd.f32 %v6332_v61, %v10789_v1 }
 0xf9b   : > { %v6352_v47 = vpop.xlane.xlu0 %6351 }
 0xf9c   : > { %v6383_v50 = vmul.f32 0.0078125, %v6352_v47  ;;  %6381 = vadd.xlane.f32.xlu1 %v10946_v12  ;;  %6443 = vadd.xlane.f32.xlu0 %v6413_v15  ;;  %v6414_v33 = vmul.f32 %v10946_v12, %v10946_v12 }
 0xf9e   : > { %v6479_v36 = vmul.f32 %v6383_v50, %v6383_v50  ;;  %v6463_v3 = vsub.f32 %v10843_v32, %v6383_v50 }
 0xf9f   : > { %v6354_v44 = vpop.xlane.xlu1 %6353  ;;  %v6416_v17 = vpop.xlane.xlu0 %6415 }
 0xfa0   : > { %v6384_v6 = vmul.f32 0.0078125, %v6354_v44  ;;  %v6447_v58 = vmul.f32 0.0078125, %v6416_v17  ;;  %6445 = vadd.xlane.f32.xlu1 %v6414_v33 }
 0xfa2   : > { %v6495_v11 = vsub.f32 %v6447_v58, %v6479_v36  ;;  %v6480_v60 = vmul.f32 %v6384_v6, %v6384_v6  ;;  %v6464_v4 = vsub.f32 %v10848_v45, %v6384_v6 }
 0xfa3   : > { %v6418_v1 = vpop.xlane.xlu1 %6417  ;;  %v6356_v18 = vpop.xlane.xlu0 %6355 }
 0xfa4   : > { %v6511_v21 = vadd.f32 1e-05, %v6495_v11  ;;  %v6448_v62 = vmul.f32 0.0078125, %v6418_v1  ;;  %v6385_v51 = vmul.f32 0.0078125, %v6356_v18 }
 0xfa6   : > { %8334 = vrsqrt.f32 %v6511_v21  ;;  %v6496_v25 = vsub.f32 %v6448_v62, %v6480_v60  ;;  %v6481_v63 = vmul.f32 %v6385_v51, %v6385_v51  ;;  %v6465_v20 = vsub.f32 %v10857_v0, %v6385_v51 }
 0xfa7   : > { %v6358_v59 = vpop.xlane.xlu1 %6357  ;;  %v6420_v26 = vpop.xlane.xlu0 %6419 }
 0xfa8   : > { %v6512_v56 = vadd.f32 1e-05, %v6496_v25  ;;  %v6386_v48 = vmul.f32 0.0078125, %v6358_v59  ;;  %v6449_v39 = vmul.f32 0.0078125, %v6420_v26 }
 0xfaa   : > { %8336 = vrsqrt.f32 %v6512_v56  ;;  %v6497_v9 = vsub.f32 %v6449_v39, %v6481_v63  ;;  %v6482_v57 = vmul.f32 %v6386_v48, %v6386_v48  ;;  %v6466_v45 = vsub.f32 %v10862_v24, %v6386_v48 }
 0xfab   : > { %v6422_v31 = vpop.xlane.xlu1 %6421 }
 0xfac   : > { %v6513_v28 = vadd.f32 1e-05, %v6497_v9  ;;  %v6450_v41 = vmul.f32 0.0078125, %v6422_v31 }
 0xfae   : > { %8338 = vrsqrt.f32 %v6513_v28  ;;  %v6498_v35 = vsub.f32 %v6450_v41, %v6482_v57 }
 0xfb0   : > { %v6514_v16 = vadd.f32 1e-05, %v6498_v35 }
 0xfb2   : > { %8340 = vrsqrt.f32 %v6514_v16 }
 0xfb3   : > { %v8335_v49 = vpop.eup %8334 }
 0xfb4   : > { %v6543_v42 = vmul.f32 %v8335_v49, %v6463_v3 }
 0xfb6   : > { %v6566_v37 = vmul.f32 %v10959_v5, %v6543_v42 }
 0xfb7   : > { %v8337_v32 = vpop.eup %8336 }
 0xfb8   : > { %v10971_v19 = vadd.f32 %v10966_v8, %v6566_v37  ;;  %v6544_v2 = vmul.f32 %v8337_v32, %v6464_v4 }
 0xfba   : > { %6605 = vst [vmem:[#allocation2 + $0x30] sm:$0xff] %v10971_v19  ;;  %v6567_v38 = vmul.f32 %v10959_v5, %v6544_v2 }
 0xfbb   : > { %v8339_v14 = vpop.eup %8338 }
 0xfbc   : > { %v10977_v7 = vadd.f32 %v10966_v8, %v6567_v38  ;;  %v6545_v22 = vmul.f32 %v8339_v14, %v6465_v20 }
 0xfbe   : > { %6606 = vst [vmem:[#allocation2] sm:$0xff] %v10977_v7  ;;  %v6568_v29 = vmul.f32 %v10959_v5, %v6545_v22 }
 0xfbf   : > { %v8341_v23 = vpop.eup %8340 }
 0xfc0   : > { %v10983_v27 = vadd.f32 %v10966_v8, %v6568_v29  ;;  %v6546_v61 = vmul.f32 %v8341_v23, %v6466_v45 }
 0xfc2   : > { %6607 = vst [vmem:[#allocation2 + $0x58] sm:$0xff] %v10983_v27  ;;  %v6569_v0 = vmul.f32 %v10959_v5, %v6546_v61 }
 0xfc4   : > { %v10988_v15 = vadd.f32 %v10966_v8, %v6569_v0 }
 0xfc6   : > { %6608 = vst [vmem:[#allocation2 + $0x18] sm:$0xff] %v10988_v15 }
 0xfd8   : > { %v6360_v47 = vpop.xlane.xlu0 %6359 }
 0xfd9   : > { %v6387_v50 = vmul.f32 0.0078125, %v6360_v47 }
 0xfdb   : > { %v6483_v44 = vmul.f32 %v6387_v50, %v6387_v50  ;;  %v6467_v32 = vsub.f32 %v10871_v46, %v6387_v50 }
 0xfdc   : > { %v6362_v33 = vpop.xlane.xlu1 %6361  ;;  %v6424_v24 = vpop.xlane.xlu0 %6423 }
 0xfdd   : > { %v6388_v17 = vmul.f32 0.0078125, %v6362_v33  ;;  %v6451_v36 = vmul.f32 0.0078125, %v6424_v24 }
 0xfdf   : > { %v6499_v6 = vsub.f32 %v6451_v36, %v6483_v44  ;;  %v6484_v1 = vmul.f32 %v6388_v17, %v6388_v17  ;;  %v6468_v0 = vsub.f32 %v10876_v55, %v6388_v17 }
 0xfe0   : > { %v6426_v58 = vpop.xlane.xlu1 %6425  ;;  %v6364_v11 = vpop.xlane.xlu0 %6363 }
 0xfe1   : > { %v6515_v18 = vadd.f32 1e-05, %v6499_v6  ;;  %v6452_v60 = vmul.f32 0.0078125, %v6426_v58  ;;  %v6389_v21 = vmul.f32 0.0078125, %v6364_v11 }
 0xfe3   : > { %8342 = vrsqrt.f32 %v6515_v18  ;;  %v6500_v62 = vsub.f32 %v6452_v60, %v6484_v1  ;;  %v6485_v26 = vmul.f32 %v6389_v21, %v6389_v21  ;;  %v6469_v55 = vsub.f32 %v10885_v54, %v6389_v21 }
 0xfe4   : > { %v6366_v51 = vpop.xlane.xlu1 %6365  ;;  %v6428_v25 = vpop.xlane.xlu0 %6427 }
 0xfe5   : > { %v6516_v59 = vadd.f32 1e-05, %v6500_v62  ;;  %v6390_v56 = vmul.f32 0.0078125, %v6366_v51  ;;  %v6453_v63 = vmul.f32 0.0078125, %v6428_v25 }
 0xfe7   : > { %8344 = vrsqrt.f32 %v6516_v59  ;;  %v6501_v48 = vsub.f32 %v6453_v63, %v6485_v26  ;;  %v6486_v31 = vmul.f32 %v6390_v56, %v6390_v56 }
 0xfe8   : > { %v6430_v39 = vpop.xlane.xlu1 %6429 }
 0xfe9   : > { %v6368_v9 = vpop.xlane.xlu0 %6367  ;;  %v6517_v57 = vadd.f32 1e-05, %v6501_v48  ;;  %v6454_v28 = vmul.f32 0.0078125, %v6430_v39  ;;  %v6470_v48 = vsub.f32 %v10890_v52, %v6390_v56 }
 0xfea   : > { %v6391_v41 = vmul.f32 0.0078125, %v6368_v9 }
 0xfeb   : > { %8346 = vrsqrt.f32 %v6517_v57  ;;  %v6502_v35 = vsub.f32 %v6454_v28, %v6486_v31 }
 0xfec   : > { %v6487_v42 = vmul.f32 %v6391_v41, %v6391_v41 }
 0xfed   : > { %v6370_v16 = vpop.xlane.xlu1 %6369  ;;  %v6432_v3 = vpop.xlane.xlu0 %6431  ;;  %v6518_v49 = vadd.f32 1e-05, %v6502_v35  ;;  %v6471_v35 = vsub.f32 %v10899_v53, %v6391_v41 }
 0xfee   : > { %v6392_v4 = vmul.f32 0.0078125, %v6370_v16  ;;  %v6455_v37 = vmul.f32 0.0078125, %v6432_v3 }
 0xfef   : > { %8348 = vrsqrt.f32 %v6518_v49 }
 0xff0   : > { %v6503_v2 = vsub.f32 %v6455_v37, %v6487_v42  ;;  %v8343_v38 = vpop.eup %8342  ;;  %v6488_v45 = vmul.f32 %v6392_v4, %v6392_v4  ;;  %v6472_v3 = vsub.f32 %v10904_v34, %v6392_v4 }
 0xff1   : > { %v6434_v20 = vpop.xlane.xlu1 %6433  ;;  %v6372_v14 = vpop.xlane.xlu0 %6371  ;;  %v6547_v22 = vmul.f32 %v8343_v38, %v6467_v32 }
 0xff2   : > { %v6519_v29 = vadd.f32 1e-05, %v6503_v2  ;;  %v6456_v23 = vmul.f32 0.0078125, %v6434_v20  ;;  %v6393_v61 = vmul.f32 0.0078125, %v6372_v14 }
 0xff3   : > { %v6570_v47 = vmul.f32 %v10959_v5, %v6547_v22 }
 0xff4   : > { %8350 = vrsqrt.f32 %v6519_v29  ;;  %v6504_v33 = vsub.f32 %v6456_v23, %v6488_v45  ;;  %v8345_v24 = vpop.eup %8344  ;;  %v6489_v11 = vmul.f32 %v6393_v61, %v6393_v61  ;;  %v6473_v41 = vsub.f32 %v10913_v40, %v6393_v61 }
 0xff5   : > { %v6374_v44 = vpop.xlane.xlu1 %6373  ;;  %v6436_v36 = vpop.xlane.xlu0 %6435  ;;  %v10995_v46 = vadd.f32 %v10966_v8, %v6570_v47  ;;  %v6548_v50 = vmul.f32 %v8345_v24, %v6468_v0 }
 0xff6   : > { %v6520_v6 = vadd.f32 1e-05, %v6504_v33  ;;  %v6394_v58 = vmul.f32 0.0078125, %v6374_v44  ;;  %v6457_v1 = vmul.f32 0.0078125, %v6436_v36 }
 0xff7   : > { %6609 = vst [vmem:[#allocation2 + $0x50] sm:$0xff] %v10995_v46  ;;  %v6571_v18 = vmul.f32 %v10959_v5, %v6548_v50 }
 0xff8   : > { %8352 = vrsqrt.f32 %v6520_v6  ;;  %v8347_v17 = vpop.eup %8346  ;;  %v6505_v60 = vsub.f32 %v6457_v1, %v6489_v11  ;;  %v6490_v59 = vmul.f32 %v6394_v58, %v6394_v58  ;;  %v6474_v34 = vsub.f32 %v10918_v30, %v6394_v58 }
 0xff9   : > { %v6438_v62 = vpop.xlane.xlu1 %6437  ;;  %v11001_v51 = vadd.f32 %v10966_v8, %v6571_v18  ;;  %v6549_v25 = vmul.f32 %v8347_v17, %v6469_v55 }
 0xffa   : > { %v6458_v26 = vmul.f32 0.0078125, %v6438_v62  ;;  %v6521_v63 = vadd.f32 1e-05, %v6505_v60 }
 0xffb   : > { %6610 = vst [vmem:[#allocation2 + $0x68] sm:$0xff] %v11001_v51  ;;  %v6572_v39 = vmul.f32 %v10959_v5, %v6549_v25 }
 0xffc   : > { %v6506_v9 = vsub.f32 %v6458_v26, %v6490_v59  ;;  %v8349_v31 = vpop.eup %8348  ;;  %8354 = vrsqrt.f32 %v6521_v63 }
 0xffd   : > { %v11007_v54 = vadd.f32 %v10966_v8, %v6572_v39  ;;  %v6550_v21 = vmul.f32 %v8349_v31, %v6470_v48 }
 0xffe   : > { %v6522_v57 = vadd.f32 1e-05, %v6506_v9 }
 0xfff   : > { %6611 = vst [vmem:[#allocation2 + $0x8] sm:$0xff] %v11007_v54  ;;  %v6573_v28 = vmul.f32 %v10959_v5, %v6550_v21 }
0x1000   : > { %8356 = vrsqrt.f32 %v6522_v57 }
0x1001   : > { %v8351_v16 = vpop.eup %8350  ;;  %v11013_v52 = vadd.f32 %v10966_v8, %v6573_v28 }
0x1002   : > { %v6551_v56 = vmul.f32 %v8351_v16, %v6471_v35 }
0x1003   : > { %6612 = vst [vmem:[#allocation2 + $0x48] sm:$0xff] %v11013_v52 }
0x1004   : > { %v6574_v49 = vmul.f32 %v10959_v5, %v6551_v56 }
0x1005   : > { %v8353_v42 = vpop.eup %8352 }
0x1006   : > { %v11019_v37 = vadd.f32 %v10966_v8, %v6574_v49  ;;  %v6552_v32 = vmul.f32 %v8353_v42, %v6472_v3 }
0x1008   : > { %6613 = vst [vmem:[#allocation2 + $0x40] sm:$0xff] %v11019_v37  ;;  %v6575_v53 = vmul.f32 %v10959_v5, %v6552_v32 }
0x1009   : > { %v8355_v2 = vpop.eup %8354 }
0x100a   : > { %v11025_v38 = vadd.f32 %v10966_v8, %v6575_v53  ;;  %v6553_v20 = vmul.f32 %v8355_v2, %v6473_v41 }
0x100c   : > { %6614 = vst [vmem:[#allocation2 + $0x20] sm:$0xff] %v11025_v38  ;;  %v6576_v14 = vmul.f32 %v10959_v5, %v6553_v20 }
0x100d   : > { %v8357_v4 = vpop.eup %8356 }
0x100e   : > { %v6554_v22 = vmul.f32 %v8357_v4, %v6474_v34  ;;  %v11031_v45 = vadd.f32 %v10966_v8, %v6576_v14 }
0x1010   : > { %v6577_v29 = vmul.f32 %v10959_v5, %v6554_v22  ;;  %6615 = vst [vmem:[#allocation2 + $0x10] sm:$0xff] %v11031_v45 }
0x1012   : > { %v11036_v40 = vadd.f32 %v10966_v8, %v6577_v29 }
0x1014   : > { %6616 = vst [vmem:[#allocation2 + $0x38] sm:$0xff] %v11036_v40 }
0x1019   : > { %v6376_v23 = vpop.xlane.xlu0 %6375 }
0x101a   : > { %v6395_v61 = vmul.f32 0.0078125, %v6376_v23 }
0x101c   : > { %v6491_v47 = vmul.f32 %v6395_v61, %v6395_v61  ;;  %v6475_v57 = vsub.f32 %v10927_v43, %v6395_v61 }
0x101d   : > { %v6378_v0 = vpop.xlane.xlu1 %6377  ;;  %v6440_v30 = vpop.xlane.xlu0 %6439 }
0x101e   : > { %v6396_v33 = vmul.f32 0.0078125, %v6378_v0  ;;  %v6459_v24 = vmul.f32 0.0078125, %v6440_v30 }
0x1020   : > { %v6507_v44 = vsub.f32 %v6459_v24, %v6491_v47  ;;  %v6492_v6 = vmul.f32 %v6396_v33, %v6396_v33  ;;  %v6476_v16 = vsub.f32 %v10932_v10, %v6396_v33 }
0x1021   : > { %v6442_v36 = vpop.xlane.xlu1 %6441  ;;  %v6380_v50 = vpop.xlane.xlu0 %6379 }
0x1022   : > { %v6523_v58 = vadd.f32 1e-05, %v6507_v44  ;;  %v6460_v11 = vmul.f32 0.0078125, %v6442_v36  ;;  %v6397_v1 = vmul.f32 0.0078125, %v6380_v50 }
0x1024   : > { %8358 = vrsqrt.f32 %v6523_v58  ;;  %v6508_v18 = vsub.f32 %v6460_v11, %v6492_v6  ;;  %v6493_v62 = vmul.f32 %v6397_v1, %v6397_v1  ;;  %v6477_v53 = vsub.f32 %v10941_v13, %v6397_v1 }
0x1025   : > { %v6382_v55 = vpop.xlane.xlu1 %6381  ;;  %v6444_v17 = vpop.xlane.xlu0 %6443 }
0x1026   : > { %v6524_v60 = vadd.f32 1e-05, %v6508_v18  ;;  %v6398_v25 = vmul.f32 0.0078125, %v6382_v55  ;;  %v6461_v59 = vmul.f32 0.0078125, %v6444_v17 }
0x1028   : > { %8360 = vrsqrt.f32 %v6524_v60  ;;  %v6509_v26 = vsub.f32 %v6461_v59, %v6493_v62  ;;  %v6494_v48 = vmul.f32 %v6398_v25, %v6398_v25  ;;  %v6478_v20 = vsub.f32 %v10946_v12, %v6398_v25 }
0x1029   : > { %v6446_v63 = vpop.xlane.xlu1 %6445 }
0x102a   : > { %v6525_v39 = vadd.f32 1e-05, %v6509_v26  ;;  %v6462_v9 = vmul.f32 0.0078125, %v6446_v63 }
0x102c   : > { %8362 = vrsqrt.f32 %v6525_v39  ;;  %v6510_v31 = vsub.f32 %v6462_v9, %v6494_v48 }
0x102e   : > { %v6526_v21 = vadd.f32 1e-05, %v6510_v31 }
0x1030   : > { %8364 = vrsqrt.f32 %v6526_v21 }
0x1031   : > { %v8359_v28 = vpop.eup %8358 }
0x1032   : > { %v6555_v35 = vmul.f32 %v8359_v28, %v6475_v57 }
0x1034   : > { %v6578_v56 = vmul.f32 %v10959_v5, %v6555_v35 }
0x1035   : > { %v8361_v3 = vpop.eup %8360 }
0x1036   : > { %v6601_v49 = vadd.f32 %v10966_v8, %v6578_v56  ;;  %v6556_v42 = vmul.f32 %v8361_v3, %v6476_v16 }
0x1038   : > { %6617 = vst [vmem:[#allocation2 + $0x60] sm:$0xff] %v6601_v49  ;;  %v6579_v32 = vmul.f32 %v10959_v5, %v6556_v42 }
0x1039   : > { %v8363_v41 = vpop.eup %8362 }
0x103a   : > { %v6602_v2 = vadd.f32 %v10966_v8, %v6579_v32  ;;  %v6557_v43 = vmul.f32 %v8363_v41, %v6477_v53 }
0x103c   : > { %6618 = vst [vmem:[#allocation2 + $0x70] sm:$0xff] %v6602_v2  ;;  %v6580_v10 = vmul.f32 %v10959_v5, %v6557_v43 }
0x103d   : > { %v8365_v34 = vpop.eup %8364 }
0x103e   : > { %v6603_v4 = vadd.f32 %v10966_v8, %v6580_v10  ;;  %v6558_v14 = vmul.f32 %v8365_v34, %v6478_v20 }
0x1040   : > { %6619 = vst [vmem:[#allocation2 + $0x78] sm:$0xff] %v6603_v4  ;;  %v6581_v22 = vmul.f32 %v10959_v5, %v6558_v14  ;;  %6624 = sbr.rel (%p7037_p11) target bundleno = 4173 (0x104d), region = 104 }
0x1042   : > { %v6604_v29 = vadd.f32 %v10966_v8, %v6581_v22 }
0x1044   : > { %6620 = vst [vmem:[#allocation2 + $0x28] sm:$0xff] %v6604_v29 }
0x1045   : > { %6625 = vst [vmem:[#allocation14] sm:$0xff] %v10971_v19  ;;  %6626 = vst [vmem:[#allocation14 + $0x8] sm:$0xff] %v10977_v7 }
0x1046   : > { %6627 = vst [vmem:[#allocation14 + $0x10] sm:$0xff] %v10983_v27  ;;  %6628 = vst [vmem:[#allocation14 + $0x18] sm:$0xff] %v10988_v15 }
0x1047   : > { %6629 = vst [vmem:[#allocation14 + $0x20] sm:$0xff] %v10995_v46  ;;  %6630 = vst [vmem:[#allocation14 + $0x28] sm:$0xff] %v11001_v51 }
0x1048   : > { %6631 = vst [vmem:[#allocation14 + $0x30] sm:$0xff] %v11007_v54  ;;  %6632 = vst [vmem:[#allocation14 + $0x38] sm:$0xff] %v11013_v52 }
0x1049   : > { %6633 = vst [vmem:[#allocation14 + $0x40] sm:$0xff] %v11019_v37  ;;  %6634 = vst [vmem:[#allocation14 + $0x48] sm:$0xff] %v11025_v38 }
0x104a   : > { %6635 = vst [vmem:[#allocation14 + $0x50] sm:$0xff] %v11031_v45  ;;  %6636 = vst [vmem:[#allocation14 + $0x58] sm:$0xff] %v11036_v40 }
0x104b   : > { %6637 = vst [vmem:[#allocation14 + $0x60] sm:$0xff] %v6601_v49  ;;  %6638 = vst [vmem:[#allocation14 + $0x68] sm:$0xff] %v6602_v2 }
0x104c   : > { %6639 = vst [vmem:[#allocation14 + $0x70] sm:$0xff] %v6603_v4  ;;  %6640 = vst [vmem:[#allocation14 + $0x78] sm:$0xff] %v6604_v29 }
0x104d PF: > { %p7780_p0 = scmp.eq.s32.totalorder %s8820_s5, 1  ;;  %s8658_s28 = smov [#allocation14]  }
0x104e   : > { %s6651_s29 = sshll.u32 %s8658_s28, 4  ;;  %s6652_s29 = int_to_ptr.vmem [resolvable:$true] %s6651_s29 }
0x104f   : > { %s8548_s23 = scalar_lea.vmem %s6652_s29, 2048  ;;  %p8555_p10 = scmp.lt.s32.totalorder %s6652_s29, %s6652_s29 }
0x1050   : > { %p8549_p1 = scmp.ne.s32.totalorder %s6652_s29, %s8548_s23  ;;  %p8556_p12 = scmp.lt.s32.totalorder %s8548_s23, %s8548_s23 }
0x1052   : > { %p8550_p3 = pnand %p8549_p1, %p7780_p0  ;;  %p8557_p13 = por %p8556_p12, %p8555_p10 }
0x1054   : > { %p8551_p9 = pneg %p8550_p3 }
0x1056   : > { %p8558_p2 = pnand %p8557_p13, %p8551_p9 }
0x1058   : > { %8561 = shalt.err (!%p8558_p2)
}
0x1059   : > { %s8659_s2 = smov 128   ;;  %s8660_s30 = smov 8  }
0x105a   : > { %s11243_s9 = sld [smem:[#allocation61_spill]] }
0x1060   : > { %7754 = dma.vmem_to_hbm [thread:$0]  (%p7780_p0), %s6652_s29, 2048, %s11243_s9, [#allocation5], %s8659_s2, %s8659_s2, %s8660_s30  }
0x1061   : > { %8613 = dma.done.wait (%p7780_p0), [#allocation5], 2048  }
0x1062   : > { %8615 = vsyncadd (%p7780_p0), [#allocation5], 4294965248 }
0x1063 PF: > { %s11244_s27 = sld [smem:[#allocation22_spill]]  ;;  %s11249_s25 = smov %s8622_s26 }
0x1064   : > { %s11245_s24 = sld [smem:[#allocation20_spill]] }
0x1065   : > { %s11247_s28 = sld [smem:[#allocation21_spill]] }
0x1066   : > { %s11248_s29 = sld [smem:[#allocation23_spill]] }
0x1069   : > { %s34_s30 = sadd.s32 1, %s11244_s27   ;;  %s11246_s27 = sld [smem:[#allocation24_spill]] }
0x106a   : > { %p31_p4 = scmp.ge.s32.totalorder %s34_s30, 4   ;;  %s11250_s26 = smov %s11245_s24 }
0x106c   :  { %33 = sbr.rel (!%p31_p4) target bundleno = 24 (0x18), region = 193 }
0x1071   :  { %6667 = vsyncpa [#allocation4], 1 }
0x1072   :  { %6669 = vsyncpa [#allocation4 + $0x1], 1 }
0x1073   :  { %6670 = vsyncpa [#allocation7], 1 }
0x1074   :  { %6672 = vsyncpa [#allocation7 + $0x1], 1 }
0x1075   :  { %6673 = vsyncpa [#allocation10], 1 }
0x1076   :  { %6675 = vsyncpa [#allocation10 + $0x1], 1 }
0x1077   :  { %6676 = vsyncpa [#allocation13], 1 }
0x1078   :  { %6678 = vsyncpa [#allocation13 + $0x1], 1 }
0x1079   :  { %6679 = vsyncpa [#allocation5], 1 }
0x107a   :  { %6681 = vsyncpa [#allocation5 + $0x1], 1 }

</bundles_post_ra>
